<compile_context>
chip_gen: v6e
topology: v6e:2x2x1
jax: 0.10.0
libtpu: 0.0.40
codegen_flags: <defaults>
</compile_context>

<pallas_src>
import functools

import jax
import jax.numpy as jnp
from jax import lax
from jax.experimental import pallas as pl
from jax.experimental.pallas import tpu as pltpu


# ----------------------------------------------------------------------------
# One EdgeConv layer, traced inside the fused kernel (operates on VMEM values).
# ----------------------------------------------------------------------------
def _edge_layer(x, w_cat, shift, *, k, pool):
    # x:      [Bb, N, Cin]  f32
    # w_cat:  [Cin, 2*Cout] = [Wa*scale | (Wb-Wa)*scale]  (bias/BN folded)
    # shift:  [1, Cout]
    bb, n, cin = x.shape
    cout = w_cat.shape[1] // 2
    inf = jnp.float32(jnp.inf)

    # ---- pairwise squared distances inside each cloud (f32 keeps the kNN graph
    #      identical to the reference) ---------------------------------------
    gram = jnp.einsum("bnc,bmc->bnm", x, x,
                      preferred_element_type=jnp.float32)            # [Bb,N,N]
    sq = jnp.sum(x * x, axis=2)                                      # [Bb,N]
    dist = jnp.maximum(sq[:, :, None] + sq[:, None, :] - 2.0 * gram, 0.0)
    diag = (lax.broadcasted_iota(jnp.int32, (bb, n, n), 1)
            == lax.broadcasted_iota(jnp.int32, (bb, n, n), 2))
    dist = jnp.where(diag, inf, dist)                                 # loop=False

    # ---- edge-MLP terms, hoisted out of the selection loop ------------------
    # pre(m, c) = xa_s[m] + t_s[c]  with  xa_s = x@(Wa*s),  t_s = x@((Wb-Wa)*s)+shift
    y = jnp.dot(x.reshape(bb * n, cin), w_cat,
                preferred_element_type=jnp.float32).reshape(bb, n, 2 * cout)
    xa_s = y[..., :cout].astype(jnp.bfloat16)         # gather operand (bf16 MXU)
    t_s = y[..., cout:] + shift                        # stays f32

    # ---- k-NN selection fused with gather / edge-ReLU / scatter-add ---------
    # dwork   is center-major  [Bb, N(center), N(nbr)]
    # dwork_t is neighbor-major [Bb, N(nbr), N(center)]  (dist is symmetric, so
    # both start equal); keeping the mirrored copy lets us derive the
    # lane-indexed pick with a sublane reduction instead of a transpose / MXU op.
    def body(_, carry):
        dwork, dwork_t, acc = carry
        col_id = lax.broadcasted_iota(jnp.int32, (bb, n, n), 2)
        row_id = lax.broadcasted_iota(jnp.int32, (bb, n, n), 1)

        # center-side pick (deterministic tie-break: smallest neighbor index)
        dmin = jnp.min(dwork, axis=2, keepdims=True)                  # [Bb,N,1]
        first = jnp.min(jnp.where(dwork == dmin, col_id, n),
                        axis=2, keepdims=True)                        # [Bb,N,1]
        chosen = col_id == first                                      # [Bb,Nc,Nm]
        sel = chosen.astype(jnp.bfloat16)

        # neighbor-side (transposed) pick, same tie-break, via sublane reduce
        dmin_t = jnp.min(dwork_t, axis=1, keepdims=True)              # [Bb,1,N]
        first_t = jnp.min(jnp.where(dwork_t == dmin_t, row_id, n),
                          axis=1, keepdims=True)                      # [Bb,1,N]
        chosen_t = row_id == first_t                                  # [Bb,Nm,Nc]
        sel_t = chosen_t.astype(jnp.bfloat16)

        # gather neighbor features: evaluate exactly k*N edges (bf16 MXU, f32 acc)
        nbr = jnp.einsum("bcm,bmd->bcd", sel, xa_s,
                         preferred_element_type=jnp.float32)          # xa_s[pick(c)]
        h = jnp.maximum(nbr + t_s, 0.0)                               # [Bb,N,Cout]
        # scatter-add each edge activation onto its NEIGHBOR node (row)
        acc = acc + jnp.einsum("bmc,bcd->bmd", sel_t, h.astype(jnp.bfloat16),
                               preferred_element_type=jnp.float32)

        dwork = jnp.where(chosen, inf, dwork)
        dwork_t = jnp.where(chosen_t, inf, dwork_t)
        return dwork, dwork_t, acc

    acc0 = jnp.zeros((bb, n, cout), jnp.float32)
    _, _, acc = lax.fori_loop(0, k, body, (dist, dist, acc0),
                              unroll=True if k <= 8 else False)

    if pool:
        return jnp.max(acc, axis=1, keepdims=True)      # fused global_max_pool
    return acc


# ----------------------------------------------------------------------------
# Fused backbone kernel: 4 EdgeConv layers + global max pool, one grid step
# processes Bb point clouds and keeps all intermediates in VMEM.
# ----------------------------------------------------------------------------
def _dgcnn_backbone_kernel(x_ref,
                           w1_ref, s1_ref, w2_ref, s2_ref,
                           w3_ref, s3_ref, w4_ref, s4_ref,
                           o_ref, *, k):
    x = x_ref[...].astype(jnp.float32)
    x = _edge_layer(x, w1_ref[...], s1_ref[...], k=k, pool=False)
    x = _edge_layer(x, w2_ref[...], s2_ref[...], k=k, pool=False)
    x = _edge_layer(x, w3_ref[...], s3_ref[...], k=k, pool=False)
    x = _edge_layer(x, w4_ref[...], s4_ref[...], k=k, pool=True)
    o_ref[...] = x.astype(o_ref.dtype)                  # [Bb, 1, emb]


def _vmem_budget_bytes():
    cap = 64 * 1024 * 1024                              # conservative fallback
    try:
        info = pltpu.get_tpu_info()
        cap = int(getattr(info, "vmem_capacity_bytes", cap))
    except Exception:
        pass
    # ~75% of physical: ≈96 MiB on v5e/v6e (128 MiB), ≈48 MiB on v7x (64 MiB)
    return (cap * 3) // 4


def _pick_block_b(b, n, c_max, budget, fixed_bytes):
    # per-cloud live set: ~8 [N,N] slabs (dwork/dwork_t f32 carries, gram/dist,
    # two i32 iotas, bf16 sel/sel_t, masks) ≈ 32*N^2 bytes, plus ~6 f32 [N,Cmax]
    # activation/pre-matmul buffers, plus double-buffered block I/O.
    per_cloud = 32 * n * n + 6 * 4 * n * c_max + 4 * 4 * n * 8
    cap = max(1, int((budget - fixed_bytes) // per_cloud))
    cap = min(cap, 16)
    if b >= 2:
        cap = min(cap, b // 2)   # >= 2 grid steps so both v7x TensorCores get work
    return max(1, cap)


def dgcnn_backbone(pos, layers, *, k):
    # pos: [B, N, 3] dense per-cloud layout (== data.pos / data.batch flattened)
    b, n, cin = pos.shape
    if k >= n:
        raise ValueError("k must be smaller than the number of points per cloud")
    emb = layers[-1]["w_cat"].shape[1] // 2

    # zero-pad the first contraction dim to a sublane multiple (numerical no-op:
    # zero channels + zero weight rows)
    cpad = (-cin) % 8
    x = jnp.pad(pos, ((0, 0), (0, 0), (0, cpad))) if cpad else pos
    w1 = layers[0]["w_cat"]
    w1 = jnp.pad(w1, ((0, cpad), (0, 0))) if cpad else w1
    w_cats = [w1] + [l["w_cat"] for l in layers[1:]]
    shifts = [l["shift"] for l in layers]

    c_max = max(w.shape[1] // 2 for w in w_cats)
    budget = _vmem_budget_bytes()
    fixed = 2 * sum(int(w.size) * 4 for w in w_cats) \
          + 2 * sum(int(s.size) * 4 for s in shifts)
    block_b = _pick_block_b(b, n, c_max, budget, fixed)

    # pad the batch so it divides evenly (dummy all-zero clouds, sliced off below)
    b_pad = -(-b // block_b) * block_b
    if b_pad != b:
        x = jnp.pad(x, ((0, b_pad - b), (0, 0), (0, 0)))

    cin_p = x.shape[2]
    grid = (b_pad // block_b,)

    in_specs = [pl.BlockSpec((block_b, n, cin_p), lambda i: (i, 0, 0))]
    args = [x]
    for w, s in zip(w_cats, shifts):
        in_specs.append(pl.BlockSpec(w.shape, lambda i: (0, 0)))
        in_specs.append(pl.BlockSpec(s.shape, lambda i: (0, 0)))
        args.extend([w, s])

    out = pl.pallas_call(
        functools.partial(_dgcnn_backbone_kernel, k=k),
        out_shape=jax.ShapeDtypeStruct((b_pad, 1, emb), jnp.float32),
        grid=grid,
        in_specs=in_specs,
        out_specs=pl.BlockSpec((block_b, 1, emb), lambda i: (i, 0, 0)),
        compiler_params=pltpu.CompilerParams(
            dimension_semantics=("parallel",),
            vmem_limit_bytes=int(budget),
        ),
    )(*args)
    return out.reshape(b_pad, emb)[:b]


# ----------------------------------------------------------------------------
# Classifier (Linear -> ReLU -> [Dropout=identity] -> Linear) on pooled features
# ----------------------------------------------------------------------------
def _classifier_kernel(p_ref, w1_ref, b1_ref, w2_ref, b2_ref, o_ref):
    h = jnp.maximum(
        jnp.dot(p_ref[...], w1_ref[...], preferred_element_type=jnp.float32)
        + b1_ref[...], 0.0)
    # TODO(synk): Dropout(0.3) skipped (eval-mode identity).
    o_ref[...] = (jnp.dot(h, w2_ref[...], preferred_element_type=jnp.float32)
                  + b2_ref[...]).astype(o_ref.dtype)


def classify(pooled, w1, b1, w2, b2):
    b, e = pooled.shape
    hid = w1.shape[1]
    nc = w2.shape[1]
    block_b = 128 if (b > 128 and b % 128 == 0) else b
    return pl.pallas_call(
        _classifier_kernel,
        out_shape=jax.ShapeDtypeStruct((b, nc), jnp.float32),
        grid=(b // block_b,),
        in_specs=[
            pl.BlockSpec((block_b, e), lambda i: (i, 0)),
            pl.BlockSpec((e, hid), lambda i: (0, 0)),
            pl.BlockSpec((1, hid), lambda i: (0, 0)),
            pl.BlockSpec((hid, nc), lambda i: (0, 0)),
            pl.BlockSpec((1, nc), lambda i: (0, 0)),
        ],
        out_specs=pl.BlockSpec((block_b, nc), lambda i: (i, 0)),
        compiler_params=pltpu.CompilerParams(dimension_semantics=("parallel",)),
    )(pooled, w1, b1, w2, b2)


# ----------------------------------------------------------------------------
# Deterministic parameter construction (synthetic; no checkpoint loading).
# Linear bias + eval-mode BN are folded into w_cat / shift on the host.
# ----------------------------------------------------------------------------
def init_dgcnn_params(key, emb_dims=64, hidden=512, num_classes=40):
    layer_dims = [(3, 64), (64, 64), (64, 128), (128, emb_dims)]
    eps = 1e-5
    params = {"edgeconvs": []}
    for cin, cout in layer_dims:
        key, kw, kb, krm = jax.random.split(key, 4)
        w = jax.random.normal(kw, (2 * cin, cout), jnp.float32) / jnp.sqrt(2.0 * cin)
        bias = jax.random.normal(kb, (cout,), jnp.float32) * 0.05
        gamma = jnp.ones((cout,), jnp.float32)
        beta = jnp.zeros((cout,), jnp.float32)
        run_mean = jax.random.normal(krm, (cout,), jnp.float32) * 0.01
        run_var = jnp.ones((cout,), jnp.float32)
        scale = (gamma / jnp.sqrt(run_var + eps)).reshape(1, cout)
        shift = ((bias - run_mean) * scale[0] + beta).reshape(1, cout)
        wa, wb = w[:cin], w[cin:]        # Wa acts on (x_i - x_j), Wb acts on x_j
        # pre-fold BN scale:  edge pre-act = x_i @ (Wa*s) + x_j @ ((Wb-Wa)*s) + shift
        w_cat = jnp.concatenate([wa * scale, (wb - wa) * scale], axis=1)
        params["edgeconvs"].append(dict(w_cat=w_cat, shift=shift))
    key, k1, k2, k3, k4 = jax.random.split(key, 5)
    params["w1"] = jax.random.normal(k1, (emb_dims, hidden), jnp.float32) / jnp.sqrt(emb_dims)
    params["b1"] = jax.random.normal(k2, (1, hidden), jnp.float32) * 0.05
    params["w2"] = jax.random.normal(k3, (hidden, num_classes), jnp.float32) / jnp.sqrt(hidden)
    params["b2"] = jax.random.normal(k4, (1, num_classes), jnp.float32) * 0.05
    return params


def dgcnn_forward(pos, params, *, k):
    pooled = dgcnn_backbone(pos, params["edgeconvs"], k=k)   # [B, emb]
    return classify(pooled, params["w1"], params["b1"], params["w2"], params["b2"])


if __name__ == "__main__":
    key = jax.random.PRNGKey(0)
    k_pos, k_params = jax.random.split(key)

    B, N, K, EMB = 2, 16, 4, 64          # small demo: 2 clouds x 16 points, k=4
    pos = jax.random.normal(k_pos, (B, N, 3), jnp.float32)   # data.pos, dense layout
    params = init_dgcnn_params(k_params, emb_dims=EMB)

    logits = dgcnn_forward(pos, params, k=K)
    logits = jax.block_until_ready(logits)
    assert logits.shape == (B, 40) and logits.dtype == jnp.float32
    assert bool(jnp.all(jnp.isfinite(logits)))
    print("KERNEL_OK")
</pallas_src>

<mosaic_0001>
module attributes {stable_mosaic.version = 11 : i64} {
  func.func @_dgcnn_backbone_kernel(%arg0: i32, %arg1: memref<1x16x8xf32, #tpu.memory_space<vmem>>, %arg2: memref<8x128xf32, #tpu.memory_space<vmem>>, %arg3: memref<1x64xf32, #tpu.memory_space<vmem>>, %arg4: memref<64x128xf32, #tpu.memory_space<vmem>>, %arg5: memref<1x64xf32, #tpu.memory_space<vmem>>, %arg6: memref<64x256xf32, #tpu.memory_space<vmem>>, %arg7: memref<1x128xf32, #tpu.memory_space<vmem>>, %arg8: memref<128x128xf32, #tpu.memory_space<vmem>>, %arg9: memref<1x64xf32, #tpu.memory_space<vmem>>, %arg10: memref<1x1x64xf32, #tpu.memory_space<vmem>>) attributes {dimension_semantics = [#tpu.dimension_semantics<parallel>], iteration_bounds = array<i64: 2>, scalar_prefetch = 0 : i64, scratch_operands = 0 : i64, tpu.core_type = #tpu.core_type<tc>, window_params = [{transform_indices = @transform_0, window_bounds = array<i64: 1, 16, 8>}, {pipeline_mode = #tpu.pipeline_mode<synchronous>, transform_indices = @transform_1, window_bounds = array<i64: 8, 128>}, {pipeline_mode = #tpu.pipeline_mode<synchronous>, transform_indices = @transform_2, window_bounds = array<i64: 1, 64>}, {pipeline_mode = #tpu.pipeline_mode<synchronous>, transform_indices = @transform_3, window_bounds = array<i64: 64, 128>}, {pipeline_mode = #tpu.pipeline_mode<synchronous>, transform_indices = @transform_4, window_bounds = array<i64: 1, 64>}, {pipeline_mode = #tpu.pipeline_mode<synchronous>, transform_indices = @transform_5, window_bounds = array<i64: 64, 256>}, {pipeline_mode = #tpu.pipeline_mode<synchronous>, transform_indices = @transform_6, window_bounds = array<i64: 1, 128>}, {pipeline_mode = #tpu.pipeline_mode<synchronous>, transform_indices = @transform_7, window_bounds = array<i64: 128, 128>}, {pipeline_mode = #tpu.pipeline_mode<synchronous>, transform_indices = @transform_8, window_bounds = array<i64: 1, 64>}, {transform_indices = @transform_9, window_bounds = array<i64: 1, 1, 64>}]} {
    %c0 = arith.constant 0 : index
    %c0_0 = arith.constant 0 : index
    %c0_1 = arith.constant 0 : index
    %0 = vector.load %arg1[%c0, %c0_0, %c0_1] : memref<1x16x8xf32, #tpu.memory_space<vmem>>, vector<1x16x8xf32>
    %c0_2 = arith.constant 0 : index
    %c0_3 = arith.constant 0 : index
    %1 = vector.load %arg2[%c0_2, %c0_3] : memref<8x128xf32, #tpu.memory_space<vmem>>, vector<8x128xf32>
    %c0_4 = arith.constant 0 : index
    %c0_5 = arith.constant 0 : index
    %2 = vector.load %arg3[%c0_4, %c0_5] : memref<1x64xf32, #tpu.memory_space<vmem>>, vector<1x64xf32>
    "tpu.trace_start"() <{level = 10 : i32, message = "bnc,bmc->bnm"}> : () -> ()
    %cst = arith.constant dense<0.000000e+00> : vector<1x16x16xf32>
    %3 = tpu.matmul %0, %0, %cst {dimension_numbers = #tpu.dot_dimension_numbers<[2], [2], [1], [1], [0, 0, 0, 1, 1, 1], [0], [0]>} : vector<1x16x8xf32>, vector<1x16x8xf32>, vector<1x16x16xf32> -> vector<1x16x16xf32>
    "tpu.trace_stop"() : () -> ()
    %4 = arith.mulf %0, %0 : vector<1x16x8xf32>
    %cst_6 = arith.constant dense<0.000000e+00> : vector<1x16xf32>
    %5 = vector.multi_reduction <add>, %4, %cst_6 [2] : vector<1x16x8xf32> to vector<1x16xf32>
    %6 = vector.shape_cast %5 : vector<1x16xf32> to vector<1x16x1xf32>
    %7 = vector.shape_cast %5 : vector<1x16xf32> to vector<1x1x16xf32>
    %8 = vector.broadcast %6 : vector<1x16x1xf32> to vector<1x16x16xf32>
    %9 = vector.broadcast %7 : vector<1x1x16xf32> to vector<1x16x16xf32>
    %10 = arith.addf %8, %9 : vector<1x16x16xf32>
    %cst_7 = arith.constant 2.000000e+00 : f32
    %11 = vector.broadcast %cst_7 : f32 to vector<1x16x16xf32>
    %12 = arith.mulf %11, %3 : vector<1x16x16xf32>
    %13 = arith.subf %10, %12 : vector<1x16x16xf32>
    %cst_8 = arith.constant 0.000000e+00 : f32
    %14 = vector.broadcast %cst_8 : f32 to vector<1x16x16xf32>
    %15 = arith.maximumf %13, %14 : vector<1x16x16xf32>
    %16 = tpu.iota {dimensions = array<i32: 1>} : vector<1x16x16xi32>
    %17 = tpu.iota {dimensions = array<i32: 2>} : vector<1x16x16xi32>
    %18 = arith.cmpi eq, %16, %17 : vector<1x16x16xi32>
    %cst_9 = arith.constant 0x7F800000 : f32
    %19 = vector.broadcast %cst_9 : f32 to vector<1x16x16xf32>
    %20 = arith.select %18, %19, %15 : vector<1x16x16xi1>, vector<1x16x16xf32>
    %21 = vector.shape_cast %0 : vector<1x16x8xf32> to vector<16x8xf32>
    %cst_10 = arith.constant dense<0.000000e+00> : vector<16x128xf32>
    %22 = tpu.matmul %21, %1, %cst_10 {dimension_numbers = #tpu.dot_dimension_numbers<[1], [0], [0], [1], [0, 0, 1, 1], [], []>} : vector<16x8xf32>, vector<8x128xf32>, vector<16x128xf32> -> vector<16x128xf32>
    %23 = vector.shape_cast %22 : vector<16x128xf32> to vector<1x16x128xf32>
    %24 = vector.extract_strided_slice %23 {offsets = [0, 0, 0], sizes = [1, 16, 64], strides = [1, 1, 1]} : vector<1x16x128xf32> to vector<1x16x64xf32>
    %25 = arith.truncf %24 : vector<1x16x64xf32> to vector<1x16x64xbf16>
    %26 = vector.extract_strided_slice %23 {offsets = [0, 0, 64], sizes = [1, 16, 64], strides = [1, 1, 1]} : vector<1x16x128xf32> to vector<1x16x64xf32>
    %27 = vector.shape_cast %2 : vector<1x64xf32> to vector<1x1x64xf32>
    %28 = vector.broadcast %27 : vector<1x1x64xf32> to vector<1x16x64xf32>
    %29 = arith.addf %26, %28 : vector<1x16x64xf32>
    %cst_11 = arith.constant 0.000000e+00 : f32
    %30 = vector.broadcast %cst_11 : f32 to vector<1x16x64xf32>
    %cst_12 = arith.constant 0x7F800000 : f32
    %c0_i32 = arith.constant 0 : i32
    %31 = tpu.iota {dimensions = array<i32: 2>} : vector<1x16x16xi32>
    %32 = tpu.iota {dimensions = array<i32: 1>} : vector<1x16x16xi32>
    %cst_13 = arith.constant dense<0x7F800000> : vector<1x16xf32>
    %33 = vector.multi_reduction <minimumf>, %20, %cst_13 [2] : vector<1x16x16xf32> to vector<1x16xf32>
    %34 = vector.shape_cast %33 : vector<1x16xf32> to vector<1x16x1xf32>
    %35 = vector.broadcast %34 : vector<1x16x1xf32> to vector<1x16x16xf32>
    %36 = arith.cmpf oeq, %20, %35 : vector<1x16x16xf32>
    %c16_i32 = arith.constant 16 : i32
    %37 = vector.broadcast %c16_i32 : i32 to vector<1x16x16xi32>
    %38 = arith.select %36, %31, %37 : vector<1x16x16xi1>, vector<1x16x16xi32>
    %cst_14 = arith.constant dense<2147483647> : vector<1x16xi32>
    %39 = vector.multi_reduction <minsi>, %38, %cst_14 [2] : vector<1x16x16xi32> to vector<1x16xi32>
    %40 = vector.shape_cast %39 : vector<1x16xi32> to vector<1x16x1xi32>
    %41 = vector.broadcast %40 : vector<1x16x1xi32> to vector<1x16x16xi32>
    %42 = arith.cmpi eq, %31, %41 : vector<1x16x16xi32>
    %43 = arith.extui %42 : vector<1x16x16xi1> to vector<1x16x16xi32>
    %44 = arith.sitofp %43 : vector<1x16x16xi32> to vector<1x16x16xf32>
    %45 = arith.truncf %44 : vector<1x16x16xf32> to vector<1x16x16xbf16>
    %cst_15 = arith.constant dense<0x7F800000> : vector<1x16xf32>
    %46 = vector.multi_reduction <minimumf>, %20, %cst_15 [1] : vector<1x16x16xf32> to vector<1x16xf32>
    %47 = vector.shape_cast %46 : vector<1x16xf32> to vector<1x1x16xf32>
    %48 = vector.broadcast %47 : vector<1x1x16xf32> to vector<1x16x16xf32>
    %49 = arith.cmpf oeq, %20, %48 : vector<1x16x16xf32>
    %c16_i32_16 = arith.constant 16 : i32
    %50 = vector.broadcast %c16_i32_16 : i32 to vector<1x16x16xi32>
    %51 = arith.select %49, %32, %50 : vector<1x16x16xi1>, vector<1x16x16xi32>
    %cst_17 = arith.constant dense<2147483647> : vector<1x16xi32>
    %52 = vector.multi_reduction <minsi>, %51, %cst_17 [1] : vector<1x16x16xi32> to vector<1x16xi32>
    %53 = vector.shape_cast %52 : vector<1x16xi32> to vector<1x1x16xi32>
    %54 = vector.broadcast %53 : vector<1x1x16xi32> to vector<1x16x16xi32>
    %55 = arith.cmpi eq, %32, %54 : vector<1x16x16xi32>
    %56 = arith.extui %55 : vector<1x16x16xi1> to vector<1x16x16xi32>
    %57 = arith.sitofp %56 : vector<1x16x16xi32> to vector<1x16x16xf32>
    %58 = arith.truncf %57 : vector<1x16x16xf32> to vector<1x16x16xbf16>
    "tpu.trace_start"() <{level = 10 : i32, message = "bcm,bmd->bcd"}> : () -> ()
    %cst_18 = arith.constant dense<0.000000e+00> : vector<1x16x64xf32>
    %59 = tpu.matmul %45, %25, %cst_18 {dimension_numbers = #tpu.dot_dimension_numbers<[2], [1], [1], [2], [0, 0, 0, 1, 1, 2], [0], [0]>} : vector<1x16x16xbf16>, vector<1x16x64xbf16>, vector<1x16x64xf32> -> vector<1x16x64xf32>
    "tpu.trace_stop"() : () -> ()
    %60 = arith.addf %59, %29 : vector<1x16x64xf32>
    %cst_19 = arith.constant 0.000000e+00 : f32
    %61 = vector.broadcast %cst_19 : f32 to vector<1x16x64xf32>
    %62 = arith.maximumf %60, %61 : vector<1x16x64xf32>
    %63 = arith.truncf %62 : vector<1x16x64xf32> to vector<1x16x64xbf16>
    "tpu.trace_start"() <{level = 10 : i32, message = "bmc,bcd->bmd"}> : () -> ()
    %cst_20 = arith.constant dense<0.000000e+00> : vector<1x16x64xf32>
    %64 = tpu.matmul %58, %63, %cst_20 {dimension_numbers = #tpu.dot_dimension_numbers<[2], [1], [1], [2], [0, 0, 0, 1, 1, 2], [0], [0]>} : vector<1x16x16xbf16>, vector<1x16x64xbf16>, vector<1x16x64xf32> -> vector<1x16x64xf32>
    "tpu.trace_stop"() : () -> ()
    %65 = arith.addf %30, %64 : vector<1x16x64xf32>
    %66 = vector.broadcast %cst_12 : f32 to vector<1x16x16xf32>
    %67 = arith.select %42, %66, %20 : vector<1x16x16xi1>, vector<1x16x16xf32>
    %68 = vector.broadcast %cst_12 : f32 to vector<1x16x16xf32>
    %69 = arith.select %55, %68, %20 : vector<1x16x16xi1>, vector<1x16x16xf32>
    %c1_i32 = arith.constant 1 : i32
    %70 = tpu.iota {dimensions = array<i32: 2>} : vector<1x16x16xi32>
    %71 = tpu.iota {dimensions = array<i32: 1>} : vector<1x16x16xi32>
    %cst_21 = arith.constant dense<0x7F800000> : vector<1x16xf32>
    %72 = vector.multi_reduction <minimumf>, %67, %cst_21 [2] : vector<1x16x16xf32> to vector<1x16xf32>
    %73 = vector.shape_cast %72 : vector<1x16xf32> to vector<1x16x1xf32>
    %74 = vector.broadcast %73 : vector<1x16x1xf32> to vector<1x16x16xf32>
    %75 = arith.cmpf oeq, %67, %74 : vector<1x16x16xf32>
    %c16_i32_22 = arith.constant 16 : i32
    %76 = vector.broadcast %c16_i32_22 : i32 to vector<1x16x16xi32>
    %77 = arith.select %75, %70, %76 : vector<1x16x16xi1>, vector<1x16x16xi32>
    %cst_23 = arith.constant dense<2147483647> : vector<1x16xi32>
    %78 = vector.multi_reduction <minsi>, %77, %cst_23 [2] : vector<1x16x16xi32> to vector<1x16xi32>
    %79 = vector.shape_cast %78 : vector<1x16xi32> to vector<1x16x1xi32>
    %80 = vector.broadcast %79 : vector<1x16x1xi32> to vector<1x16x16xi32>
    %81 = arith.cmpi eq, %70, %80 : vector<1x16x16xi32>
    %82 = arith.extui %81 : vector<1x16x16xi1> to vector<1x16x16xi32>
    %83 = arith.sitofp %82 : vector<1x16x16xi32> to vector<1x16x16xf32>
    %84 = arith.truncf %83 : vector<1x16x16xf32> to vector<1x16x16xbf16>
    %cst_24 = arith.constant dense<0x7F800000> : vector<1x16xf32>
    %85 = vector.multi_reduction <minimumf>, %69, %cst_24 [1] : vector<1x16x16xf32> to vector<1x16xf32>
    %86 = vector.shape_cast %85 : vector<1x16xf32> to vector<1x1x16xf32>
    %87 = vector.broadcast %86 : vector<1x1x16xf32> to vector<1x16x16xf32>
    %88 = arith.cmpf oeq, %69, %87 : vector<1x16x16xf32>
    %c16_i32_25 = arith.constant 16 : i32
    %89 = vector.broadcast %c16_i32_25 : i32 to vector<1x16x16xi32>
    %90 = arith.select %88, %71, %89 : vector<1x16x16xi1>, vector<1x16x16xi32>
    %cst_26 = arith.constant dense<2147483647> : vector<1x16xi32>
    %91 = vector.multi_reduction <minsi>, %90, %cst_26 [1] : vector<1x16x16xi32> to vector<1x16xi32>
    %92 = vector.shape_cast %91 : vector<1x16xi32> to vector<1x1x16xi32>
    %93 = vector.broadcast %92 : vector<1x1x16xi32> to vector<1x16x16xi32>
    %94 = arith.cmpi eq, %71, %93 : vector<1x16x16xi32>
    %95 = arith.extui %94 : vector<1x16x16xi1> to vector<1x16x16xi32>
    %96 = arith.sitofp %95 : vector<1x16x16xi32> to vector<1x16x16xf32>
    %97 = arith.truncf %96 : vector<1x16x16xf32> to vector<1x16x16xbf16>
    "tpu.trace_start"() <{level = 10 : i32, message = "bcm,bmd->bcd"}> : () -> ()
    %cst_27 = arith.constant dense<0.000000e+00> : vector<1x16x64xf32>
    %98 = tpu.matmul %84, %25, %cst_27 {dimension_numbers = #tpu.dot_dimension_numbers<[2], [1], [1], [2], [0, 0, 0, 1, 1, 2], [0], [0]>} : vector<1x16x16xbf16>, vector<1x16x64xbf16>, vector<1x16x64xf32> -> vector<1x16x64xf32>
    "tpu.trace_stop"() : () -> ()
    %99 = arith.addf %98, %29 : vector<1x16x64xf32>
    %cst_28 = arith.constant 0.000000e+00 : f32
    %100 = vector.broadcast %cst_28 : f32 to vector<1x16x64xf32>
    %101 = arith.maximumf %99, %100 : vector<1x16x64xf32>
    %102 = arith.truncf %101 : vector<1x16x64xf32> to vector<1x16x64xbf16>
    "tpu.trace_start"() <{level = 10 : i32, message = "bmc,bcd->bmd"}> : () -> ()
    %cst_29 = arith.constant dense<0.000000e+00> : vector<1x16x64xf32>
    %103 = tpu.matmul %97, %102, %cst_29 {dimension_numbers = #tpu.dot_dimension_numbers<[2], [1], [1], [2], [0, 0, 0, 1, 1, 2], [0], [0]>} : vector<1x16x16xbf16>, vector<1x16x64xbf16>, vector<1x16x64xf32> -> vector<1x16x64xf32>
    "tpu.trace_stop"() : () -> ()
    %104 = arith.addf %65, %103 : vector<1x16x64xf32>
    %105 = vector.broadcast %cst_12 : f32 to vector<1x16x16xf32>
    %106 = arith.select %81, %105, %67 : vector<1x16x16xi1>, vector<1x16x16xf32>
    %107 = vector.broadcast %cst_12 : f32 to vector<1x16x16xf32>
    %108 = arith.select %94, %107, %69 : vector<1x16x16xi1>, vector<1x16x16xf32>
    %c2_i32 = arith.constant 2 : i32
    %109 = tpu.iota {dimensions = array<i32: 2>} : vector<1x16x16xi32>
    %110 = tpu.iota {dimensions = array<i32: 1>} : vector<1x16x16xi32>
    %cst_30 = arith.constant dense<0x7F800000> : vector<1x16xf32>
    %111 = vector.multi_reduction <minimumf>, %106, %cst_30 [2] : vector<1x16x16xf32> to vector<1x16xf32>
    %112 = vector.shape_cast %111 : vector<1x16xf32> to vector<1x16x1xf32>
    %113 = vector.broadcast %112 : vector<1x16x1xf32> to vector<1x16x16xf32>
    %114 = arith.cmpf oeq, %106, %113 : vector<1x16x16xf32>
    %c16_i32_31 = arith.constant 16 : i32
    %115 = vector.broadcast %c16_i32_31 : i32 to vector<1x16x16xi32>
    %116 = arith.select %114, %109, %115 : vector<1x16x16xi1>, vector<1x16x16xi32>
    %cst_32 = arith.constant dense<2147483647> : vector<1x16xi32>
    %117 = vector.multi_reduction <minsi>, %116, %cst_32 [2] : vector<1x16x16xi32> to vector<1x16xi32>
    %118 = vector.shape_cast %117 : vector<1x16xi32> to vector<1x16x1xi32>
    %119 = vector.broadcast %118 : vector<1x16x1xi32> to vector<1x16x16xi32>
    %120 = arith.cmpi eq, %109, %119 : vector<1x16x16xi32>
    %121 = arith.extui %120 : vector<1x16x16xi1> to vector<1x16x16xi32>
    %122 = arith.sitofp %121 : vector<1x16x16xi32> to vector<1x16x16xf32>
    %123 = arith.truncf %122 : vector<1x16x16xf32> to vector<1x16x16xbf16>
    %cst_33 = arith.constant dense<0x7F800000> : vector<1x16xf32>
    %124 = vector.multi_reduction <minimumf>, %108, %cst_33 [1] : vector<1x16x16xf32> to vector<1x16xf32>
    %125 = vector.shape_cast %124 : vector<1x16xf32> to vector<1x1x16xf32>
    %126 = vector.broadcast %125 : vector<1x1x16xf32> to vector<1x16x16xf32>
    %127 = arith.cmpf oeq, %108, %126 : vector<1x16x16xf32>
    %c16_i32_34 = arith.constant 16 : i32
    %128 = vector.broadcast %c16_i32_34 : i32 to vector<1x16x16xi32>
    %129 = arith.select %127, %110, %128 : vector<1x16x16xi1>, vector<1x16x16xi32>
    %cst_35 = arith.constant dense<2147483647> : vector<1x16xi32>
    %130 = vector.multi_reduction <minsi>, %129, %cst_35 [1] : vector<1x16x16xi32> to vector<1x16xi32>
    %131 = vector.shape_cast %130 : vector<1x16xi32> to vector<1x1x16xi32>
    %132 = vector.broadcast %131 : vector<1x1x16xi32> to vector<1x16x16xi32>
    %133 = arith.cmpi eq, %110, %132 : vector<1x16x16xi32>
    %134 = arith.extui %133 : vector<1x16x16xi1> to vector<1x16x16xi32>
    %135 = arith.sitofp %134 : vector<1x16x16xi32> to vector<1x16x16xf32>
    %136 = arith.truncf %135 : vector<1x16x16xf32> to vector<1x16x16xbf16>
    "tpu.trace_start"() <{level = 10 : i32, message = "bcm,bmd->bcd"}> : () -> ()
    %cst_36 = arith.constant dense<0.000000e+00> : vector<1x16x64xf32>
    %137 = tpu.matmul %123, %25, %cst_36 {dimension_numbers = #tpu.dot_dimension_numbers<[2], [1], [1], [2], [0, 0, 0, 1, 1, 2], [0], [0]>} : vector<1x16x16xbf16>, vector<1x16x64xbf16>, vector<1x16x64xf32> -> vector<1x16x64xf32>
    "tpu.trace_stop"() : () -> ()
    %138 = arith.addf %137, %29 : vector<1x16x64xf32>
    %cst_37 = arith.constant 0.000000e+00 : f32
    %139 = vector.broadcast %cst_37 : f32 to vector<1x16x64xf32>
    %140 = arith.maximumf %138, %139 : vector<1x16x64xf32>
    %141 = arith.truncf %140 : vector<1x16x64xf32> to vector<1x16x64xbf16>
    "tpu.trace_start"() <{level = 10 : i32, message = "bmc,bcd->bmd"}> : () -> ()
    %cst_38 = arith.constant dense<0.000000e+00> : vector<1x16x64xf32>
    %142 = tpu.matmul %136, %141, %cst_38 {dimension_numbers = #tpu.dot_dimension_numbers<[2], [1], [1], [2], [0, 0, 0, 1, 1, 2], [0], [0]>} : vector<1x16x16xbf16>, vector<1x16x64xbf16>, vector<1x16x64xf32> -> vector<1x16x64xf32>
    "tpu.trace_stop"() : () -> ()
    %143 = arith.addf %104, %142 : vector<1x16x64xf32>
    %144 = vector.broadcast %cst_12 : f32 to vector<1x16x16xf32>
    %145 = arith.select %120, %144, %106 : vector<1x16x16xi1>, vector<1x16x16xf32>
    %146 = vector.broadcast %cst_12 : f32 to vector<1x16x16xf32>
    %147 = arith.select %133, %146, %108 : vector<1x16x16xi1>, vector<1x16x16xf32>
    %c3_i32 = arith.constant 3 : i32
    %148 = tpu.iota {dimensions = array<i32: 2>} : vector<1x16x16xi32>
    %149 = tpu.iota {dimensions = array<i32: 1>} : vector<1x16x16xi32>
    %cst_39 = arith.constant dense<0x7F800000> : vector<1x16xf32>
    %150 = vector.multi_reduction <minimumf>, %145, %cst_39 [2] : vector<1x16x16xf32> to vector<1x16xf32>
    %151 = vector.shape_cast %150 : vector<1x16xf32> to vector<1x16x1xf32>
    %152 = vector.broadcast %151 : vector<1x16x1xf32> to vector<1x16x16xf32>
    %153 = arith.cmpf oeq, %145, %152 : vector<1x16x16xf32>
    %c16_i32_40 = arith.constant 16 : i32
    %154 = vector.broadcast %c16_i32_40 : i32 to vector<1x16x16xi32>
    %155 = arith.select %153, %148, %154 : vector<1x16x16xi1>, vector<1x16x16xi32>
    %cst_41 = arith.constant dense<2147483647> : vector<1x16xi32>
    %156 = vector.multi_reduction <minsi>, %155, %cst_41 [2] : vector<1x16x16xi32> to vector<1x16xi32>
    %157 = vector.shape_cast %156 : vector<1x16xi32> to vector<1x16x1xi32>
    %158 = vector.broadcast %157 : vector<1x16x1xi32> to vector<1x16x16xi32>
    %159 = arith.cmpi eq, %148, %158 : vector<1x16x16xi32>
    %160 = arith.extui %159 : vector<1x16x16xi1> to vector<1x16x16xi32>
    %161 = arith.sitofp %160 : vector<1x16x16xi32> to vector<1x16x16xf32>
    %162 = arith.truncf %161 : vector<1x16x16xf32> to vector<1x16x16xbf16>
    %cst_42 = arith.constant dense<0x7F800000> : vector<1x16xf32>
    %163 = vector.multi_reduction <minimumf>, %147, %cst_42 [1] : vector<1x16x16xf32> to vector<1x16xf32>
    %164 = vector.shape_cast %163 : vector<1x16xf32> to vector<1x1x16xf32>
    %165 = vector.broadcast %164 : vector<1x1x16xf32> to vector<1x16x16xf32>
    %166 = arith.cmpf oeq, %147, %165 : vector<1x16x16xf32>
    %c16_i32_43 = arith.constant 16 : i32
    %167 = vector.broadcast %c16_i32_43 : i32 to vector<1x16x16xi32>
    %168 = arith.select %166, %149, %167 : vector<1x16x16xi1>, vector<1x16x16xi32>
    %cst_44 = arith.constant dense<2147483647> : vector<1x16xi32>
    %169 = vector.multi_reduction <minsi>, %168, %cst_44 [1] : vector<1x16x16xi32> to vector<1x16xi32>
    %170 = vector.shape_cast %169 : vector<1x16xi32> to vector<1x1x16xi32>
    %171 = vector.broadcast %170 : vector<1x1x16xi32> to vector<1x16x16xi32>
    %172 = arith.cmpi eq, %149, %171 : vector<1x16x16xi32>
    %173 = arith.extui %172 : vector<1x16x16xi1> to vector<1x16x16xi32>
    %174 = arith.sitofp %173 : vector<1x16x16xi32> to vector<1x16x16xf32>
    %175 = arith.truncf %174 : vector<1x16x16xf32> to vector<1x16x16xbf16>
    "tpu.trace_start"() <{level = 10 : i32, message = "bcm,bmd->bcd"}> : () -> ()
    %cst_45 = arith.constant dense<0.000000e+00> : vector<1x16x64xf32>
    %176 = tpu.matmul %162, %25, %cst_45 {dimension_numbers = #tpu.dot_dimension_numbers<[2], [1], [1], [2], [0, 0, 0, 1, 1, 2], [0], [0]>} : vector<1x16x16xbf16>, vector<1x16x64xbf16>, vector<1x16x64xf32> -> vector<1x16x64xf32>
    "tpu.trace_stop"() : () -> ()
    %177 = arith.addf %176, %29 : vector<1x16x64xf32>
    %cst_46 = arith.constant 0.000000e+00 : f32
    %178 = vector.broadcast %cst_46 : f32 to vector<1x16x64xf32>
    %179 = arith.maximumf %177, %178 : vector<1x16x64xf32>
    %180 = arith.truncf %179 : vector<1x16x64xf32> to vector<1x16x64xbf16>
    "tpu.trace_start"() <{level = 10 : i32, message = "bmc,bcd->bmd"}> : () -> ()
    %cst_47 = arith.constant dense<0.000000e+00> : vector<1x16x64xf32>
    %181 = tpu.matmul %175, %180, %cst_47 {dimension_numbers = #tpu.dot_dimension_numbers<[2], [1], [1], [2], [0, 0, 0, 1, 1, 2], [0], [0]>} : vector<1x16x16xbf16>, vector<1x16x64xbf16>, vector<1x16x64xf32> -> vector<1x16x64xf32>
    "tpu.trace_stop"() : () -> ()
    %182 = arith.addf %143, %181 : vector<1x16x64xf32>
    %183 = vector.broadcast %cst_12 : f32 to vector<1x16x16xf32>
    %184 = arith.select %159, %183, %145 : vector<1x16x16xi1>, vector<1x16x16xf32>
    %185 = vector.broadcast %cst_12 : f32 to vector<1x16x16xf32>
    %186 = arith.select %172, %185, %147 : vector<1x16x16xi1>, vector<1x16x16xf32>
    %c0_48 = arith.constant 0 : index
    %c0_49 = arith.constant 0 : index
    %187 = vector.load %arg4[%c0_48, %c0_49] : memref<64x128xf32, #tpu.memory_space<vmem>>, vector<64x128xf32>
    %c0_50 = arith.constant 0 : index
    %c0_51 = arith.constant 0 : index
    %188 = vector.load %arg5[%c0_50, %c0_51] : memref<1x64xf32, #tpu.memory_space<vmem>>, vector<1x64xf32>
    "tpu.trace_start"() <{level = 10 : i32, message = "bnc,bmc->bnm"}> : () -> ()
    %cst_52 = arith.constant dense<0.000000e+00> : vector<1x16x16xf32>
    %189 = tpu.matmul %182, %182, %cst_52 {dimension_numbers = #tpu.dot_dimension_numbers<[2], [2], [1], [1], [0, 0, 0, 1, 1, 1], [0], [0]>} : vector<1x16x64xf32>, vector<1x16x64xf32>, vector<1x16x16xf32> -> vector<1x16x16xf32>
    "tpu.trace_stop"() : () -> ()
    %190 = arith.mulf %182, %182 : vector<1x16x64xf32>
    %cst_53 = arith.constant dense<0.000000e+00> : vector<1x16xf32>
    %191 = vector.multi_reduction <add>, %190, %cst_53 [2] : vector<1x16x64xf32> to vector<1x16xf32>
    %192 = vector.shape_cast %191 : vector<1x16xf32> to vector<1x16x1xf32>
    %193 = vector.shape_cast %191 : vector<1x16xf32> to vector<1x1x16xf32>
    %194 = vector.broadcast %192 : vector<1x16x1xf32> to vector<1x16x16xf32>
    %195 = vector.broadcast %193 : vector<1x1x16xf32> to vector<1x16x16xf32>
    %196 = arith.addf %194, %195 : vector<1x16x16xf32>
    %cst_54 = arith.constant 2.000000e+00 : f32
    %197 = vector.broadcast %cst_54 : f32 to vector<1x16x16xf32>
    %198 = arith.mulf %197, %189 : vector<1x16x16xf32>
    %199 = arith.subf %196, %198 : vector<1x16x16xf32>
    %cst_55 = arith.constant 0.000000e+00 : f32
    %200 = vector.broadcast %cst_55 : f32 to vector<1x16x16xf32>
    %201 = arith.maximumf %199, %200 : vector<1x16x16xf32>
    %202 = tpu.iota {dimensions = array<i32: 1>} : vector<1x16x16xi32>
    %203 = tpu.iota {dimensions = array<i32: 2>} : vector<1x16x16xi32>
    %204 = arith.cmpi eq, %202, %203 : vector<1x16x16xi32>
    %cst_56 = arith.constant 0x7F800000 : f32
    %205 = vector.broadcast %cst_56 : f32 to vector<1x16x16xf32>
    %206 = arith.select %204, %205, %201 : vector<1x16x16xi1>, vector<1x16x16xf32>
    %207 = vector.shape_cast %182 : vector<1x16x64xf32> to vector<16x64xf32>
    %cst_57 = arith.constant dense<0.000000e+00> : vector<16x128xf32>
    %208 = tpu.matmul %207, %187, %cst_57 {dimension_numbers = #tpu.dot_dimension_numbers<[1], [0], [0], [1], [0, 0, 1, 1], [], []>} : vector<16x64xf32>, vector<64x128xf32>, vector<16x128xf32> -> vector<16x128xf32>
    %209 = vector.shape_cast %208 : vector<16x128xf32> to vector<1x16x128xf32>
    %210 = vector.extract_strided_slice %209 {offsets = [0, 0, 0], sizes = [1, 16, 64], strides = [1, 1, 1]} : vector<1x16x128xf32> to vector<1x16x64xf32>
    %211 = arith.truncf %210 : vector<1x16x64xf32> to vector<1x16x64xbf16>
    %212 = vector.extract_strided_slice %209 {offsets = [0, 0, 64], sizes = [1, 16, 64], strides = [1, 1, 1]} : vector<1x16x128xf32> to vector<1x16x64xf32>
    %213 = vector.shape_cast %188 : vector<1x64xf32> to vector<1x1x64xf32>
    %214 = vector.broadcast %213 : vector<1x1x64xf32> to vector<1x16x64xf32>
    %215 = arith.addf %212, %214 : vector<1x16x64xf32>
    %cst_58 = arith.constant 0.000000e+00 : f32
    %216 = vector.broadcast %cst_58 : f32 to vector<1x16x64xf32>
    %cst_59 = arith.constant 0x7F800000 : f32
    %c0_i32_60 = arith.constant 0 : i32
    %217 = tpu.iota {dimensions = array<i32: 2>} : vector<1x16x16xi32>
    %218 = tpu.iota {dimensions = array<i32: 1>} : vector<1x16x16xi32>
    %cst_61 = arith.constant dense<0x7F800000> : vector<1x16xf32>
    %219 = vector.multi_reduction <minimumf>, %206, %cst_61 [2] : vector<1x16x16xf32> to vector<1x16xf32>
    %220 = vector.shape_cast %219 : vector<1x16xf32> to vector<1x16x1xf32>
    %221 = vector.broadcast %220 : vector<1x16x1xf32> to vector<1x16x16xf32>
    %222 = arith.cmpf oeq, %206, %221 : vector<1x16x16xf32>
    %c16_i32_62 = arith.constant 16 : i32
    %223 = vector.broadcast %c16_i32_62 : i32 to vector<1x16x16xi32>
    %224 = arith.select %222, %217, %223 : vector<1x16x16xi1>, vector<1x16x16xi32>
    %cst_63 = arith.constant dense<2147483647> : vector<1x16xi32>
    %225 = vector.multi_reduction <minsi>, %224, %cst_63 [2] : vector<1x16x16xi32> to vector<1x16xi32>
    %226 = vector.shape_cast %225 : vector<1x16xi32> to vector<1x16x1xi32>
    %227 = vector.broadcast %226 : vector<1x16x1xi32> to vector<1x16x16xi32>
    %228 = arith.cmpi eq, %217, %227 : vector<1x16x16xi32>
    %229 = arith.extui %228 : vector<1x16x16xi1> to vector<1x16x16xi32>
    %230 = arith.sitofp %229 : vector<1x16x16xi32> to vector<1x16x16xf32>
    %231 = arith.truncf %230 : vector<1x16x16xf32> to vector<1x16x16xbf16>
    %cst_64 = arith.constant dense<0x7F800000> : vector<1x16xf32>
    %232 = vector.multi_reduction <minimumf>, %206, %cst_64 [1] : vector<1x16x16xf32> to vector<1x16xf32>
    %233 = vector.shape_cast %232 : vector<1x16xf32> to vector<1x1x16xf32>
    %234 = vector.broadcast %233 : vector<1x1x16xf32> to vector<1x16x16xf32>
    %235 = arith.cmpf oeq, %206, %234 : vector<1x16x16xf32>
    %c16_i32_65 = arith.constant 16 : i32
    %236 = vector.broadcast %c16_i32_65 : i32 to vector<1x16x16xi32>
    %237 = arith.select %235, %218, %236 : vector<1x16x16xi1>, vector<1x16x16xi32>
    %cst_66 = arith.constant dense<2147483647> : vector<1x16xi32>
    %238 = vector.multi_reduction <minsi>, %237, %cst_66 [1] : vector<1x16x16xi32> to vector<1x16xi32>
    %239 = vector.shape_cast %238 : vector<1x16xi32> to vector<1x1x16xi32>
    %240 = vector.broadcast %239 : vector<1x1x16xi32> to vector<1x16x16xi32>
    %241 = arith.cmpi eq, %218, %240 : vector<1x16x16xi32>
    %242 = arith.extui %241 : vector<1x16x16xi1> to vector<1x16x16xi32>
    %243 = arith.sitofp %242 : vector<1x16x16xi32> to vector<1x16x16xf32>
    %244 = arith.truncf %243 : vector<1x16x16xf32> to vector<1x16x16xbf16>
    "tpu.trace_start"() <{level = 10 : i32, message = "bcm,bmd->bcd"}> : () -> ()
    %cst_67 = arith.constant dense<0.000000e+00> : vector<1x16x64xf32>
    %245 = tpu.matmul %231, %211, %cst_67 {dimension_numbers = #tpu.dot_dimension_numbers<[2], [1], [1], [2], [0, 0, 0, 1, 1, 2], [0], [0]>} : vector<1x16x16xbf16>, vector<1x16x64xbf16>, vector<1x16x64xf32> -> vector<1x16x64xf32>
    "tpu.trace_stop"() : () -> ()
    %246 = arith.addf %245, %215 : vector<1x16x64xf32>
    %cst_68 = arith.constant 0.000000e+00 : f32
    %247 = vector.broadcast %cst_68 : f32 to vector<1x16x64xf32>
    %248 = arith.maximumf %246, %247 : vector<1x16x64xf32>
    %249 = arith.truncf %248 : vector<1x16x64xf32> to vector<1x16x64xbf16>
    "tpu.trace_start"() <{level = 10 : i32, message = "bmc,bcd->bmd"}> : () -> ()
    %cst_69 = arith.constant dense<0.000000e+00> : vector<1x16x64xf32>
    %250 = tpu.matmul %244, %249, %cst_69 {dimension_numbers = #tpu.dot_dimension_numbers<[2], [1], [1], [2], [0, 0, 0, 1, 1, 2], [0], [0]>} : vector<1x16x16xbf16>, vector<1x16x64xbf16>, vector<1x16x64xf32> -> vector<1x16x64xf32>
    "tpu.trace_stop"() : () -> ()
    %251 = arith.addf %216, %250 : vector<1x16x64xf32>
    %252 = vector.broadcast %cst_59 : f32 to vector<1x16x16xf32>
    %253 = arith.select %228, %252, %206 : vector<1x16x16xi1>, vector<1x16x16xf32>
    %254 = vector.broadcast %cst_59 : f32 to vector<1x16x16xf32>
    %255 = arith.select %241, %254, %206 : vector<1x16x16xi1>, vector<1x16x16xf32>
    %c1_i32_70 = arith.constant 1 : i32
    %256 = tpu.iota {dimensions = array<i32: 2>} : vector<1x16x16xi32>
    %257 = tpu.iota {dimensions = array<i32: 1>} : vector<1x16x16xi32>
    %cst_71 = arith.constant dense<0x7F800000> : vector<1x16xf32>
    %258 = vector.multi_reduction <minimumf>, %253, %cst_71 [2] : vector<1x16x16xf32> to vector<1x16xf32>
    %259 = vector.shape_cast %258 : vector<1x16xf32> to vector<1x16x1xf32>
    %260 = vector.broadcast %259 : vector<1x16x1xf32> to vector<1x16x16xf32>
    %261 = arith.cmpf oeq, %253, %260 : vector<1x16x16xf32>
    %c16_i32_72 = arith.constant 16 : i32
    %262 = vector.broadcast %c16_i32_72 : i32 to vector<1x16x16xi32>
    %263 = arith.select %261, %256, %262 : vector<1x16x16xi1>, vector<1x16x16xi32>
    %cst_73 = arith.constant dense<2147483647> : vector<1x16xi32>
    %264 = vector.multi_reduction <minsi>, %263, %cst_73 [2] : vector<1x16x16xi32> to vector<1x16xi32>
    %265 = vector.shape_cast %264 : vector<1x16xi32> to vector<1x16x1xi32>
    %266 = vector.broadcast %265 : vector<1x16x1xi32> to vector<1x16x16xi32>
    %267 = arith.cmpi eq, %256, %266 : vector<1x16x16xi32>
    %268 = arith.extui %267 : vector<1x16x16xi1> to vector<1x16x16xi32>
    %269 = arith.sitofp %268 : vector<1x16x16xi32> to vector<1x16x16xf32>
    %270 = arith.truncf %269 : vector<1x16x16xf32> to vector<1x16x16xbf16>
    %cst_74 = arith.constant dense<0x7F800000> : vector<1x16xf32>
    %271 = vector.multi_reduction <minimumf>, %255, %cst_74 [1] : vector<1x16x16xf32> to vector<1x16xf32>
    %272 = vector.shape_cast %271 : vector<1x16xf32> to vector<1x1x16xf32>
    %273 = vector.broadcast %272 : vector<1x1x16xf32> to vector<1x16x16xf32>
    %274 = arith.cmpf oeq, %255, %273 : vector<1x16x16xf32>
    %c16_i32_75 = arith.constant 16 : i32
    %275 = vector.broadcast %c16_i32_75 : i32 to vector<1x16x16xi32>
    %276 = arith.select %274, %257, %275 : vector<1x16x16xi1>, vector<1x16x16xi32>
    %cst_76 = arith.constant dense<2147483647> : vector<1x16xi32>
    %277 = vector.multi_reduction <minsi>, %276, %cst_76 [1] : vector<1x16x16xi32> to vector<1x16xi32>
    %278 = vector.shape_cast %277 : vector<1x16xi32> to vector<1x1x16xi32>
    %279 = vector.broadcast %278 : vector<1x1x16xi32> to vector<1x16x16xi32>
    %280 = arith.cmpi eq, %257, %279 : vector<1x16x16xi32>
    %281 = arith.extui %280 : vector<1x16x16xi1> to vector<1x16x16xi32>
    %282 = arith.sitofp %281 : vector<1x16x16xi32> to vector<1x16x16xf32>
    %283 = arith.truncf %282 : vector<1x16x16xf32> to vector<1x16x16xbf16>
    "tpu.trace_start"() <{level = 10 : i32, message = "bcm,bmd->bcd"}> : () -> ()
    %cst_77 = arith.constant dense<0.000000e+00> : vector<1x16x64xf32>
    %284 = tpu.matmul %270, %211, %cst_77 {dimension_numbers = #tpu.dot_dimension_numbers<[2], [1], [1], [2], [0, 0, 0, 1, 1, 2], [0], [0]>} : vector<1x16x16xbf16>, vector<1x16x64xbf16>, vector<1x16x64xf32> -> vector<1x16x64xf32>
    "tpu.trace_stop"() : () -> ()
    %285 = arith.addf %284, %215 : vector<1x16x64xf32>
    %cst_78 = arith.constant 0.000000e+00 : f32
    %286 = vector.broadcast %cst_78 : f32 to vector<1x16x64xf32>
    %287 = arith.maximumf %285, %286 : vector<1x16x64xf32>
    %288 = arith.truncf %287 : vector<1x16x64xf32> to vector<1x16x64xbf16>
    "tpu.trace_start"() <{level = 10 : i32, message = "bmc,bcd->bmd"}> : () -> ()
    %cst_79 = arith.constant dense<0.000000e+00> : vector<1x16x64xf32>
    %289 = tpu.matmul %283, %288, %cst_79 {dimension_numbers = #tpu.dot_dimension_numbers<[2], [1], [1], [2], [0, 0, 0, 1, 1, 2], [0], [0]>} : vector<1x16x16xbf16>, vector<1x16x64xbf16>, vector<1x16x64xf32> -> vector<1x16x64xf32>
    "tpu.trace_stop"() : () -> ()
    %290 = arith.addf %251, %289 : vector<1x16x64xf32>
    %291 = vector.broadcast %cst_59 : f32 to vector<1x16x16xf32>
    %292 = arith.select %267, %291, %253 : vector<1x16x16xi1>, vector<1x16x16xf32>
    %293 = vector.broadcast %cst_59 : f32 to vector<1x16x16xf32>
    %294 = arith.select %280, %293, %255 : vector<1x16x16xi1>, vector<1x16x16xf32>
    %c2_i32_80 = arith.constant 2 : i32
    %295 = tpu.iota {dimensions = array<i32: 2>} : vector<1x16x16xi32>
    %296 = tpu.iota {dimensions = array<i32: 1>} : vector<1x16x16xi32>
    %cst_81 = arith.constant dense<0x7F800000> : vector<1x16xf32>
    %297 = vector.multi_reduction <minimumf>, %292, %cst_81 [2] : vector<1x16x16xf32> to vector<1x16xf32>
    %298 = vector.shape_cast %297 : vector<1x16xf32> to vector<1x16x1xf32>
    %299 = vector.broadcast %298 : vector<1x16x1xf32> to vector<1x16x16xf32>
    %300 = arith.cmpf oeq, %292, %299 : vector<1x16x16xf32>
    %c16_i32_82 = arith.constant 16 : i32
    %301 = vector.broadcast %c16_i32_82 : i32 to vector<1x16x16xi32>
    %302 = arith.select %300, %295, %301 : vector<1x16x16xi1>, vector<1x16x16xi32>
    %cst_83 = arith.constant dense<2147483647> : vector<1x16xi32>
    %303 = vector.multi_reduction <minsi>, %302, %cst_83 [2] : vector<1x16x16xi32> to vector<1x16xi32>
    %304 = vector.shape_cast %303 : vector<1x16xi32> to vector<1x16x1xi32>
    %305 = vector.broadcast %304 : vector<1x16x1xi32> to vector<1x16x16xi32>
    %306 = arith.cmpi eq, %295, %305 : vector<1x16x16xi32>
    %307 = arith.extui %306 : vector<1x16x16xi1> to vector<1x16x16xi32>
    %308 = arith.sitofp %307 : vector<1x16x16xi32> to vector<1x16x16xf32>
    %309 = arith.truncf %308 : vector<1x16x16xf32> to vector<1x16x16xbf16>
    %cst_84 = arith.constant dense<0x7F800000> : vector<1x16xf32>
    %310 = vector.multi_reduction <minimumf>, %294, %cst_84 [1] : vector<1x16x16xf32> to vector<1x16xf32>
    %311 = vector.shape_cast %310 : vector<1x16xf32> to vector<1x1x16xf32>
    %312 = vector.broadcast %311 : vector<1x1x16xf32> to vector<1x16x16xf32>
    %313 = arith.cmpf oeq, %294, %312 : vector<1x16x16xf32>
    %c16_i32_85 = arith.constant 16 : i32
    %314 = vector.broadcast %c16_i32_85 : i32 to vector<1x16x16xi32>
    %315 = arith.select %313, %296, %314 : vector<1x16x16xi1>, vector<1x16x16xi32>
    %cst_86 = arith.constant dense<2147483647> : vector<1x16xi32>
    %316 = vector.multi_reduction <minsi>, %315, %cst_86 [1] : vector<1x16x16xi32> to vector<1x16xi32>
    %317 = vector.shape_cast %316 : vector<1x16xi32> to vector<1x1x16xi32>
    %318 = vector.broadcast %317 : vector<1x1x16xi32> to vector<1x16x16xi32>
    %319 = arith.cmpi eq, %296, %318 : vector<1x16x16xi32>
    %320 = arith.extui %319 : vector<1x16x16xi1> to vector<1x16x16xi32>
    %321 = arith.sitofp %320 : vector<1x16x16xi32> to vector<1x16x16xf32>
    %322 = arith.truncf %321 : vector<1x16x16xf32> to vector<1x16x16xbf16>
    "tpu.trace_start"() <{level = 10 : i32, message = "bcm,bmd->bcd"}> : () -> ()
    %cst_87 = arith.constant dense<0.000000e+00> : vector<1x16x64xf32>
    %323 = tpu.matmul %309, %211, %cst_87 {dimension_numbers = #tpu.dot_dimension_numbers<[2], [1], [1], [2], [0, 0, 0, 1, 1, 2], [0], [0]>} : vector<1x16x16xbf16>, vector<1x16x64xbf16>, vector<1x16x64xf32> -> vector<1x16x64xf32>
    "tpu.trace_stop"() : () -> ()
    %324 = arith.addf %323, %215 : vector<1x16x64xf32>
    %cst_88 = arith.constant 0.000000e+00 : f32
    %325 = vector.broadcast %cst_88 : f32 to vector<1x16x64xf32>
    %326 = arith.maximumf %324, %325 : vector<1x16x64xf32>
    %327 = arith.truncf %326 : vector<1x16x64xf32> to vector<1x16x64xbf16>
    "tpu.trace_start"() <{level = 10 : i32, message = "bmc,bcd->bmd"}> : () -> ()
    %cst_89 = arith.constant dense<0.000000e+00> : vector<1x16x64xf32>
    %328 = tpu.matmul %322, %327, %cst_89 {dimension_numbers = #tpu.dot_dimension_numbers<[2], [1], [1], [2], [0, 0, 0, 1, 1, 2], [0], [0]>} : vector<1x16x16xbf16>, vector<1x16x64xbf16>, vector<1x16x64xf32> -> vector<1x16x64xf32>
    "tpu.trace_stop"() : () -> ()
    %329 = arith.addf %290, %328 : vector<1x16x64xf32>
    %330 = vector.broadcast %cst_59 : f32 to vector<1x16x16xf32>
    %331 = arith.select %306, %330, %292 : vector<1x16x16xi1>, vector<1x16x16xf32>
    %332 = vector.broadcast %cst_59 : f32 to vector<1x16x16xf32>
    %333 = arith.select %319, %332, %294 : vector<1x16x16xi1>, vector<1x16x16xf32>
    %c3_i32_90 = arith.constant 3 : i32
    %334 = tpu.iota {dimensions = array<i32: 2>} : vector<1x16x16xi32>
    %335 = tpu.iota {dimensions = array<i32: 1>} : vector<1x16x16xi32>
    %cst_91 = arith.constant dense<0x7F800000> : vector<1x16xf32>
    %336 = vector.multi_reduction <minimumf>, %331, %cst_91 [2] : vector<1x16x16xf32> to vector<1x16xf32>
    %337 = vector.shape_cast %336 : vector<1x16xf32> to vector<1x16x1xf32>
    %338 = vector.broadcast %337 : vector<1x16x1xf32> to vector<1x16x16xf32>
    %339 = arith.cmpf oeq, %331, %338 : vector<1x16x16xf32>
    %c16_i32_92 = arith.constant 16 : i32
    %340 = vector.broadcast %c16_i32_92 : i32 to vector<1x16x16xi32>
    %341 = arith.select %339, %334, %340 : vector<1x16x16xi1>, vector<1x16x16xi32>
    %cst_93 = arith.constant dense<2147483647> : vector<1x16xi32>
    %342 = vector.multi_reduction <minsi>, %341, %cst_93 [2] : vector<1x16x16xi32> to vector<1x16xi32>
    %343 = vector.shape_cast %342 : vector<1x16xi32> to vector<1x16x1xi32>
    %344 = vector.broadcast %343 : vector<1x16x1xi32> to vector<1x16x16xi32>
    %345 = arith.cmpi eq, %334, %344 : vector<1x16x16xi32>
    %346 = arith.extui %345 : vector<1x16x16xi1> to vector<1x16x16xi32>
    %347 = arith.sitofp %346 : vector<1x16x16xi32> to vector<1x16x16xf32>
    %348 = arith.truncf %347 : vector<1x16x16xf32> to vector<1x16x16xbf16>
    %cst_94 = arith.constant dense<0x7F800000> : vector<1x16xf32>
    %349 = vector.multi_reduction <minimumf>, %333, %cst_94 [1] : vector<1x16x16xf32> to vector<1x16xf32>
    %350 = vector.shape_cast %349 : vector<1x16xf32> to vector<1x1x16xf32>
    %351 = vector.broadcast %350 : vector<1x1x16xf32> to vector<1x16x16xf32>
    %352 = arith.cmpf oeq, %333, %351 : vector<1x16x16xf32>
    %c16_i32_95 = arith.constant 16 : i32
    %353 = vector.broadcast %c16_i32_95 : i32 to vector<1x16x16xi32>
    %354 = arith.select %352, %335, %353 : vector<1x16x16xi1>, vector<1x16x16xi32>
    %cst_96 = arith.constant dense<2147483647> : vector<1x16xi32>
    %355 = vector.multi_reduction <minsi>, %354, %cst_96 [1] : vector<1x16x16xi32> to vector<1x16xi32>
    %356 = vector.shape_cast %355 : vector<1x16xi32> to vector<1x1x16xi32>
    %357 = vector.broadcast %356 : vector<1x1x16xi32> to vector<1x16x16xi32>
    %358 = arith.cmpi eq, %335, %357 : vector<1x16x16xi32>
    %359 = arith.extui %358 : vector<1x16x16xi1> to vector<1x16x16xi32>
    %360 = arith.sitofp %359 : vector<1x16x16xi32> to vector<1x16x16xf32>
    %361 = arith.truncf %360 : vector<1x16x16xf32> to vector<1x16x16xbf16>
    "tpu.trace_start"() <{level = 10 : i32, message = "bcm,bmd->bcd"}> : () -> ()
    %cst_97 = arith.constant dense<0.000000e+00> : vector<1x16x64xf32>
    %362 = tpu.matmul %348, %211, %cst_97 {dimension_numbers = #tpu.dot_dimension_numbers<[2], [1], [1], [2], [0, 0, 0, 1, 1, 2], [0], [0]>} : vector<1x16x16xbf16>, vector<1x16x64xbf16>, vector<1x16x64xf32> -> vector<1x16x64xf32>
    "tpu.trace_stop"() : () -> ()
    %363 = arith.addf %362, %215 : vector<1x16x64xf32>
    %cst_98 = arith.constant 0.000000e+00 : f32
    %364 = vector.broadcast %cst_98 : f32 to vector<1x16x64xf32>
    %365 = arith.maximumf %363, %364 : vector<1x16x64xf32>
    %366 = arith.truncf %365 : vector<1x16x64xf32> to vector<1x16x64xbf16>
    "tpu.trace_start"() <{level = 10 : i32, message = "bmc,bcd->bmd"}> : () -> ()
    %cst_99 = arith.constant dense<0.000000e+00> : vector<1x16x64xf32>
    %367 = tpu.matmul %361, %366, %cst_99 {dimension_numbers = #tpu.dot_dimension_numbers<[2], [1], [1], [2], [0, 0, 0, 1, 1, 2], [0], [0]>} : vector<1x16x16xbf16>, vector<1x16x64xbf16>, vector<1x16x64xf32> -> vector<1x16x64xf32>
    "tpu.trace_stop"() : () -> ()
    %368 = arith.addf %329, %367 : vector<1x16x64xf32>
    %369 = vector.broadcast %cst_59 : f32 to vector<1x16x16xf32>
    %370 = arith.select %345, %369, %331 : vector<1x16x16xi1>, vector<1x16x16xf32>
    %371 = vector.broadcast %cst_59 : f32 to vector<1x16x16xf32>
    %372 = arith.select %358, %371, %333 : vector<1x16x16xi1>, vector<1x16x16xf32>
    %c0_100 = arith.constant 0 : index
    %c0_101 = arith.constant 0 : index
    %373 = vector.load %arg6[%c0_100, %c0_101] : memref<64x256xf32, #tpu.memory_space<vmem>>, vector<64x256xf32>
    %c0_102 = arith.constant 0 : index
    %c0_103 = arith.constant 0 : index
    %374 = vector.load %arg7[%c0_102, %c0_103] : memref<1x128xf32, #tpu.memory_space<vmem>>, vector<1x128xf32>
    "tpu.trace_start"() <{level = 10 : i32, message = "bnc,bmc->bnm"}> : () -> ()
    %cst_104 = arith.constant dense<0.000000e+00> : vector<1x16x16xf32>
    %375 = tpu.matmul %368, %368, %cst_104 {dimension_numbers = #tpu.dot_dimension_numbers<[2], [2], [1], [1], [0, 0, 0, 1, 1, 1], [0], [0]>} : vector<1x16x64xf32>, vector<1x16x64xf32>, vector<1x16x16xf32> -> vector<1x16x16xf32>
    "tpu.trace_stop"() : () -> ()
    %376 = arith.mulf %368, %368 : vector<1x16x64xf32>
    %cst_105 = arith.constant dense<0.000000e+00> : vector<1x16xf32>
    %377 = vector.multi_reduction <add>, %376, %cst_105 [2] : vector<1x16x64xf32> to vector<1x16xf32>
    %378 = vector.shape_cast %377 : vector<1x16xf32> to vector<1x16x1xf32>
    %379 = vector.shape_cast %377 : vector<1x16xf32> to vector<1x1x16xf32>
    %380 = vector.broadcast %378 : vector<1x16x1xf32> to vector<1x16x16xf32>
    %381 = vector.broadcast %379 : vector<1x1x16xf32> to vector<1x16x16xf32>
    %382 = arith.addf %380, %381 : vector<1x16x16xf32>
    %cst_106 = arith.constant 2.000000e+00 : f32
    %383 = vector.broadcast %cst_106 : f32 to vector<1x16x16xf32>
    %384 = arith.mulf %383, %375 : vector<1x16x16xf32>
    %385 = arith.subf %382, %384 : vector<1x16x16xf32>
    %cst_107 = arith.constant 0.000000e+00 : f32
    %386 = vector.broadcast %cst_107 : f32 to vector<1x16x16xf32>
    %387 = arith.maximumf %385, %386 : vector<1x16x16xf32>
    %388 = tpu.iota {dimensions = array<i32: 1>} : vector<1x16x16xi32>
    %389 = tpu.iota {dimensions = array<i32: 2>} : vector<1x16x16xi32>
    %390 = arith.cmpi eq, %388, %389 : vector<1x16x16xi32>
    %cst_108 = arith.constant 0x7F800000 : f32
    %391 = vector.broadcast %cst_108 : f32 to vector<1x16x16xf32>
    %392 = arith.select %390, %391, %387 : vector<1x16x16xi1>, vector<1x16x16xf32>
    %393 = vector.shape_cast %368 : vector<1x16x64xf32> to vector<16x64xf32>
    %cst_109 = arith.constant dense<0.000000e+00> : vector<16x256xf32>
    %394 = tpu.matmul %393, %373, %cst_109 {dimension_numbers = #tpu.dot_dimension_numbers<[1], [0], [0], [1], [0, 0, 1, 1], [], []>} : vector<16x64xf32>, vector<64x256xf32>, vector<16x256xf32> -> vector<16x256xf32>
    %395 = vector.shape_cast %394 : vector<16x256xf32> to vector<1x16x256xf32>
    %396 = vector.extract_strided_slice %395 {offsets = [0, 0, 0], sizes = [1, 16, 128], strides = [1, 1, 1]} : vector<1x16x256xf32> to vector<1x16x128xf32>
    %397 = arith.truncf %396 : vector<1x16x128xf32> to vector<1x16x128xbf16>
    %398 = vector.extract_strided_slice %395 {offsets = [0, 0, 128], sizes = [1, 16, 128], strides = [1, 1, 1]} : vector<1x16x256xf32> to vector<1x16x128xf32>
    %399 = vector.shape_cast %374 : vector<1x128xf32> to vector<1x1x128xf32>
    %400 = vector.broadcast %399 : vector<1x1x128xf32> to vector<1x16x128xf32>
    %401 = arith.addf %398, %400 : vector<1x16x128xf32>
    %cst_110 = arith.constant 0.000000e+00 : f32
    %402 = vector.broadcast %cst_110 : f32 to vector<1x16x128xf32>
    %cst_111 = arith.constant 0x7F800000 : f32
    %c0_i32_112 = arith.constant 0 : i32
    %403 = tpu.iota {dimensions = array<i32: 2>} : vector<1x16x16xi32>
    %404 = tpu.iota {dimensions = array<i32: 1>} : vector<1x16x16xi32>
    %cst_113 = arith.constant dense<0x7F800000> : vector<1x16xf32>
    %405 = vector.multi_reduction <minimumf>, %392, %cst_113 [2] : vector<1x16x16xf32> to vector<1x16xf32>
    %406 = vector.shape_cast %405 : vector<1x16xf32> to vector<1x16x1xf32>
    %407 = vector.broadcast %406 : vector<1x16x1xf32> to vector<1x16x16xf32>
    %408 = arith.cmpf oeq, %392, %407 : vector<1x16x16xf32>
    %c16_i32_114 = arith.constant 16 : i32
    %409 = vector.broadcast %c16_i32_114 : i32 to vector<1x16x16xi32>
    %410 = arith.select %408, %403, %409 : vector<1x16x16xi1>, vector<1x16x16xi32>
    %cst_115 = arith.constant dense<2147483647> : vector<1x16xi32>
    %411 = vector.multi_reduction <minsi>, %410, %cst_115 [2] : vector<1x16x16xi32> to vector<1x16xi32>
    %412 = vector.shape_cast %411 : vector<1x16xi32> to vector<1x16x1xi32>
    %413 = vector.broadcast %412 : vector<1x16x1xi32> to vector<1x16x16xi32>
    %414 = arith.cmpi eq, %403, %413 : vector<1x16x16xi32>
    %415 = arith.extui %414 : vector<1x16x16xi1> to vector<1x16x16xi32>
    %416 = arith.sitofp %415 : vector<1x16x16xi32> to vector<1x16x16xf32>
    %417 = arith.truncf %416 : vector<1x16x16xf32> to vector<1x16x16xbf16>
    %cst_116 = arith.constant dense<0x7F800000> : vector<1x16xf32>
    %418 = vector.multi_reduction <minimumf>, %392, %cst_116 [1] : vector<1x16x16xf32> to vector<1x16xf32>
    %419 = vector.shape_cast %418 : vector<1x16xf32> to vector<1x1x16xf32>
    %420 = vector.broadcast %419 : vector<1x1x16xf32> to vector<1x16x16xf32>
    %421 = arith.cmpf oeq, %392, %420 : vector<1x16x16xf32>
    %c16_i32_117 = arith.constant 16 : i32
    %422 = vector.broadcast %c16_i32_117 : i32 to vector<1x16x16xi32>
    %423 = arith.select %421, %404, %422 : vector<1x16x16xi1>, vector<1x16x16xi32>
    %cst_118 = arith.constant dense<2147483647> : vector<1x16xi32>
    %424 = vector.multi_reduction <minsi>, %423, %cst_118 [1] : vector<1x16x16xi32> to vector<1x16xi32>
    %425 = vector.shape_cast %424 : vector<1x16xi32> to vector<1x1x16xi32>
    %426 = vector.broadcast %425 : vector<1x1x16xi32> to vector<1x16x16xi32>
    %427 = arith.cmpi eq, %404, %426 : vector<1x16x16xi32>
    %428 = arith.extui %427 : vector<1x16x16xi1> to vector<1x16x16xi32>
    %429 = arith.sitofp %428 : vector<1x16x16xi32> to vector<1x16x16xf32>
    %430 = arith.truncf %429 : vector<1x16x16xf32> to vector<1x16x16xbf16>
    "tpu.trace_start"() <{level = 10 : i32, message = "bcm,bmd->bcd"}> : () -> ()
    %cst_119 = arith.constant dense<0.000000e+00> : vector<1x16x128xf32>
    %431 = tpu.matmul %417, %397, %cst_119 {dimension_numbers = #tpu.dot_dimension_numbers<[2], [1], [1], [2], [0, 0, 0, 1, 1, 2], [0], [0]>} : vector<1x16x16xbf16>, vector<1x16x128xbf16>, vector<1x16x128xf32> -> vector<1x16x128xf32>
    "tpu.trace_stop"() : () -> ()
    %432 = arith.addf %431, %401 : vector<1x16x128xf32>
    %cst_120 = arith.constant 0.000000e+00 : f32
    %433 = vector.broadcast %cst_120 : f32 to vector<1x16x128xf32>
    %434 = arith.maximumf %432, %433 : vector<1x16x128xf32>
    %435 = arith.truncf %434 : vector<1x16x128xf32> to vector<1x16x128xbf16>
    "tpu.trace_start"() <{level = 10 : i32, message = "bmc,bcd->bmd"}> : () -> ()
    %cst_121 = arith.constant dense<0.000000e+00> : vector<1x16x128xf32>
    %436 = tpu.matmul %430, %435, %cst_121 {dimension_numbers = #tpu.dot_dimension_numbers<[2], [1], [1], [2], [0, 0, 0, 1, 1, 2], [0], [0]>} : vector<1x16x16xbf16>, vector<1x16x128xbf16>, vector<1x16x128xf32> -> vector<1x16x128xf32>
    "tpu.trace_stop"() : () -> ()
    %437 = arith.addf %402, %436 : vector<1x16x128xf32>
    %438 = vector.broadcast %cst_111 : f32 to vector<1x16x16xf32>
    %439 = arith.select %414, %438, %392 : vector<1x16x16xi1>, vector<1x16x16xf32>
    %440 = vector.broadcast %cst_111 : f32 to vector<1x16x16xf32>
    %441 = arith.select %427, %440, %392 : vector<1x16x16xi1>, vector<1x16x16xf32>
    %c1_i32_122 = arith.constant 1 : i32
    %442 = tpu.iota {dimensions = array<i32: 2>} : vector<1x16x16xi32>
    %443 = tpu.iota {dimensions = array<i32: 1>} : vector<1x16x16xi32>
    %cst_123 = arith.constant dense<0x7F800000> : vector<1x16xf32>
    %444 = vector.multi_reduction <minimumf>, %439, %cst_123 [2] : vector<1x16x16xf32> to vector<1x16xf32>
    %445 = vector.shape_cast %444 : vector<1x16xf32> to vector<1x16x1xf32>
    %446 = vector.broadcast %445 : vector<1x16x1xf32> to vector<1x16x16xf32>
    %447 = arith.cmpf oeq, %439, %446 : vector<1x16x16xf32>
    %c16_i32_124 = arith.constant 16 : i32
    %448 = vector.broadcast %c16_i32_124 : i32 to vector<1x16x16xi32>
    %449 = arith.select %447, %442, %448 : vector<1x16x16xi1>, vector<1x16x16xi32>
    %cst_125 = arith.constant dense<2147483647> : vector<1x16xi32>
    %450 = vector.multi_reduction <minsi>, %449, %cst_125 [2] : vector<1x16x16xi32> to vector<1x16xi32>
    %451 = vector.shape_cast %450 : vector<1x16xi32> to vector<1x16x1xi32>
    %452 = vector.broadcast %451 : vector<1x16x1xi32> to vector<1x16x16xi32>
    %453 = arith.cmpi eq, %442, %452 : vector<1x16x16xi32>
    %454 = arith.extui %453 : vector<1x16x16xi1> to vector<1x16x16xi32>
    %455 = arith.sitofp %454 : vector<1x16x16xi32> to vector<1x16x16xf32>
    %456 = arith.truncf %455 : vector<1x16x16xf32> to vector<1x16x16xbf16>
    %cst_126 = arith.constant dense<0x7F800000> : vector<1x16xf32>
    %457 = vector.multi_reduction <minimumf>, %441, %cst_126 [1] : vector<1x16x16xf32> to vector<1x16xf32>
    %458 = vector.shape_cast %457 : vector<1x16xf32> to vector<1x1x16xf32>
    %459 = vector.broadcast %458 : vector<1x1x16xf32> to vector<1x16x16xf32>
    %460 = arith.cmpf oeq, %441, %459 : vector<1x16x16xf32>
    %c16_i32_127 = arith.constant 16 : i32
    %461 = vector.broadcast %c16_i32_127 : i32 to vector<1x16x16xi32>
    %462 = arith.select %460, %443, %461 : vector<1x16x16xi1>, vector<1x16x16xi32>
    %cst_128 = arith.constant dense<2147483647> : vector<1x16xi32>
    %463 = vector.multi_reduction <minsi>, %462, %cst_128 [1] : vector<1x16x16xi32> to vector<1x16xi32>
    %464 = vector.shape_cast %463 : vector<1x16xi32> to vector<1x1x16xi32>
    %465 = vector.broadcast %464 : vector<1x1x16xi32> to vector<1x16x16xi32>
    %466 = arith.cmpi eq, %443, %465 : vector<1x16x16xi32>
    %467 = arith.extui %466 : vector<1x16x16xi1> to vector<1x16x16xi32>
    %468 = arith.sitofp %467 : vector<1x16x16xi32> to vector<1x16x16xf32>
    %469 = arith.truncf %468 : vector<1x16x16xf32> to vector<1x16x16xbf16>
    "tpu.trace_start"() <{level = 10 : i32, message = "bcm,bmd->bcd"}> : () -> ()
    %cst_129 = arith.constant dense<0.000000e+00> : vector<1x16x128xf32>
    %470 = tpu.matmul %456, %397, %cst_129 {dimension_numbers = #tpu.dot_dimension_numbers<[2], [1], [1], [2], [0, 0, 0, 1, 1, 2], [0], [0]>} : vector<1x16x16xbf16>, vector<1x16x128xbf16>, vector<1x16x128xf32> -> vector<1x16x128xf32>
    "tpu.trace_stop"() : () -> ()
    %471 = arith.addf %470, %401 : vector<1x16x128xf32>
    %cst_130 = arith.constant 0.000000e+00 : f32
    %472 = vector.broadcast %cst_130 : f32 to vector<1x16x128xf32>
    %473 = arith.maximumf %471, %472 : vector<1x16x128xf32>
    %474 = arith.truncf %473 : vector<1x16x128xf32> to vector<1x16x128xbf16>
    "tpu.trace_start"() <{level = 10 : i32, message = "bmc,bcd->bmd"}> : () -> ()
    %cst_131 = arith.constant dense<0.000000e+00> : vector<1x16x128xf32>
    %475 = tpu.matmul %469, %474, %cst_131 {dimension_numbers = #tpu.dot_dimension_numbers<[2], [1], [1], [2], [0, 0, 0, 1, 1, 2], [0], [0]>} : vector<1x16x16xbf16>, vector<1x16x128xbf16>, vector<1x16x128xf32> -> vector<1x16x128xf32>
    "tpu.trace_stop"() : () -> ()
    %476 = arith.addf %437, %475 : vector<1x16x128xf32>
    %477 = vector.broadcast %cst_111 : f32 to vector<1x16x16xf32>
    %478 = arith.select %453, %477, %439 : vector<1x16x16xi1>, vector<1x16x16xf32>
    %479 = vector.broadcast %cst_111 : f32 to vector<1x16x16xf32>
    %480 = arith.select %466, %479, %441 : vector<1x16x16xi1>, vector<1x16x16xf32>
    %c2_i32_132 = arith.constant 2 : i32
    %481 = tpu.iota {dimensions = array<i32: 2>} : vector<1x16x16xi32>
    %482 = tpu.iota {dimensions = array<i32: 1>} : vector<1x16x16xi32>
    %cst_133 = arith.constant dense<0x7F800000> : vector<1x16xf32>
    %483 = vector.multi_reduction <minimumf>, %478, %cst_133 [2] : vector<1x16x16xf32> to vector<1x16xf32>
    %484 = vector.shape_cast %483 : vector<1x16xf32> to vector<1x16x1xf32>
    %485 = vector.broadcast %484 : vector<1x16x1xf32> to vector<1x16x16xf32>
    %486 = arith.cmpf oeq, %478, %485 : vector<1x16x16xf32>
    %c16_i32_134 = arith.constant 16 : i32
    %487 = vector.broadcast %c16_i32_134 : i32 to vector<1x16x16xi32>
    %488 = arith.select %486, %481, %487 : vector<1x16x16xi1>, vector<1x16x16xi32>
    %cst_135 = arith.constant dense<2147483647> : vector<1x16xi32>
    %489 = vector.multi_reduction <minsi>, %488, %cst_135 [2] : vector<1x16x16xi32> to vector<1x16xi32>
    %490 = vector.shape_cast %489 : vector<1x16xi32> to vector<1x16x1xi32>
    %491 = vector.broadcast %490 : vector<1x16x1xi32> to vector<1x16x16xi32>
    %492 = arith.cmpi eq, %481, %491 : vector<1x16x16xi32>
    %493 = arith.extui %492 : vector<1x16x16xi1> to vector<1x16x16xi32>
    %494 = arith.sitofp %493 : vector<1x16x16xi32> to vector<1x16x16xf32>
    %495 = arith.truncf %494 : vector<1x16x16xf32> to vector<1x16x16xbf16>
    %cst_136 = arith.constant dense<0x7F800000> : vector<1x16xf32>
    %496 = vector.multi_reduction <minimumf>, %480, %cst_136 [1] : vector<1x16x16xf32> to vector<1x16xf32>
    %497 = vector.shape_cast %496 : vector<1x16xf32> to vector<1x1x16xf32>
    %498 = vector.broadcast %497 : vector<1x1x16xf32> to vector<1x16x16xf32>
    %499 = arith.cmpf oeq, %480, %498 : vector<1x16x16xf32>
    %c16_i32_137 = arith.constant 16 : i32
    %500 = vector.broadcast %c16_i32_137 : i32 to vector<1x16x16xi32>
    %501 = arith.select %499, %482, %500 : vector<1x16x16xi1>, vector<1x16x16xi32>
    %cst_138 = arith.constant dense<2147483647> : vector<1x16xi32>
    %502 = vector.multi_reduction <minsi>, %501, %cst_138 [1] : vector<1x16x16xi32> to vector<1x16xi32>
    %503 = vector.shape_cast %502 : vector<1x16xi32> to vector<1x1x16xi32>
    %504 = vector.broadcast %503 : vector<1x1x16xi32> to vector<1x16x16xi32>
    %505 = arith.cmpi eq, %482, %504 : vector<1x16x16xi32>
    %506 = arith.extui %505 : vector<1x16x16xi1> to vector<1x16x16xi32>
    %507 = arith.sitofp %506 : vector<1x16x16xi32> to vector<1x16x16xf32>
    %508 = arith.truncf %507 : vector<1x16x16xf32> to vector<1x16x16xbf16>
    "tpu.trace_start"() <{level = 10 : i32, message = "bcm,bmd->bcd"}> : () -> ()
    %cst_139 = arith.constant dense<0.000000e+00> : vector<1x16x128xf32>
    %509 = tpu.matmul %495, %397, %cst_139 {dimension_numbers = #tpu.dot_dimension_numbers<[2], [1], [1], [2], [0, 0, 0, 1, 1, 2], [0], [0]>} : vector<1x16x16xbf16>, vector<1x16x128xbf16>, vector<1x16x128xf32> -> vector<1x16x128xf32>
    "tpu.trace_stop"() : () -> ()
    %510 = arith.addf %509, %401 : vector<1x16x128xf32>
    %cst_140 = arith.constant 0.000000e+00 : f32
    %511 = vector.broadcast %cst_140 : f32 to vector<1x16x128xf32>
    %512 = arith.maximumf %510, %511 : vector<1x16x128xf32>
    %513 = arith.truncf %512 : vector<1x16x128xf32> to vector<1x16x128xbf16>
    "tpu.trace_start"() <{level = 10 : i32, message = "bmc,bcd->bmd"}> : () -> ()
    %cst_141 = arith.constant dense<0.000000e+00> : vector<1x16x128xf32>
    %514 = tpu.matmul %508, %513, %cst_141 {dimension_numbers = #tpu.dot_dimension_numbers<[2], [1], [1], [2], [0, 0, 0, 1, 1, 2], [0], [0]>} : vector<1x16x16xbf16>, vector<1x16x128xbf16>, vector<1x16x128xf32> -> vector<1x16x128xf32>
    "tpu.trace_stop"() : () -> ()
    %515 = arith.addf %476, %514 : vector<1x16x128xf32>
    %516 = vector.broadcast %cst_111 : f32 to vector<1x16x16xf32>
    %517 = arith.select %492, %516, %478 : vector<1x16x16xi1>, vector<1x16x16xf32>
    %518 = vector.broadcast %cst_111 : f32 to vector<1x16x16xf32>
    %519 = arith.select %505, %518, %480 : vector<1x16x16xi1>, vector<1x16x16xf32>
    %c3_i32_142 = arith.constant 3 : i32
    %520 = tpu.iota {dimensions = array<i32: 2>} : vector<1x16x16xi32>
    %521 = tpu.iota {dimensions = array<i32: 1>} : vector<1x16x16xi32>
    %cst_143 = arith.constant dense<0x7F800000> : vector<1x16xf32>
    %522 = vector.multi_reduction <minimumf>, %517, %cst_143 [2] : vector<1x16x16xf32> to vector<1x16xf32>
    %523 = vector.shape_cast %522 : vector<1x16xf32> to vector<1x16x1xf32>
    %524 = vector.broadcast %523 : vector<1x16x1xf32> to vector<1x16x16xf32>
    %525 = arith.cmpf oeq, %517, %524 : vector<1x16x16xf32>
    %c16_i32_144 = arith.constant 16 : i32
    %526 = vector.broadcast %c16_i32_144 : i32 to vector<1x16x16xi32>
    %527 = arith.select %525, %520, %526 : vector<1x16x16xi1>, vector<1x16x16xi32>
    %cst_145 = arith.constant dense<2147483647> : vector<1x16xi32>
    %528 = vector.multi_reduction <minsi>, %527, %cst_145 [2] : vector<1x16x16xi32> to vector<1x16xi32>
    %529 = vector.shape_cast %528 : vector<1x16xi32> to vector<1x16x1xi32>
    %530 = vector.broadcast %529 : vector<1x16x1xi32> to vector<1x16x16xi32>
    %531 = arith.cmpi eq, %520, %530 : vector<1x16x16xi32>
    %532 = arith.extui %531 : vector<1x16x16xi1> to vector<1x16x16xi32>
    %533 = arith.sitofp %532 : vector<1x16x16xi32> to vector<1x16x16xf32>
    %534 = arith.truncf %533 : vector<1x16x16xf32> to vector<1x16x16xbf16>
    %cst_146 = arith.constant dense<0x7F800000> : vector<1x16xf32>
    %535 = vector.multi_reduction <minimumf>, %519, %cst_146 [1] : vector<1x16x16xf32> to vector<1x16xf32>
    %536 = vector.shape_cast %535 : vector<1x16xf32> to vector<1x1x16xf32>
    %537 = vector.broadcast %536 : vector<1x1x16xf32> to vector<1x16x16xf32>
    %538 = arith.cmpf oeq, %519, %537 : vector<1x16x16xf32>
    %c16_i32_147 = arith.constant 16 : i32
    %539 = vector.broadcast %c16_i32_147 : i32 to vector<1x16x16xi32>
    %540 = arith.select %538, %521, %539 : vector<1x16x16xi1>, vector<1x16x16xi32>
    %cst_148 = arith.constant dense<2147483647> : vector<1x16xi32>
    %541 = vector.multi_reduction <minsi>, %540, %cst_148 [1] : vector<1x16x16xi32> to vector<1x16xi32>
    %542 = vector.shape_cast %541 : vector<1x16xi32> to vector<1x1x16xi32>
    %543 = vector.broadcast %542 : vector<1x1x16xi32> to vector<1x16x16xi32>
    %544 = arith.cmpi eq, %521, %543 : vector<1x16x16xi32>
    %545 = arith.extui %544 : vector<1x16x16xi1> to vector<1x16x16xi32>
    %546 = arith.sitofp %545 : vector<1x16x16xi32> to vector<1x16x16xf32>
    %547 = arith.truncf %546 : vector<1x16x16xf32> to vector<1x16x16xbf16>
    "tpu.trace_start"() <{level = 10 : i32, message = "bcm,bmd->bcd"}> : () -> ()
    %cst_149 = arith.constant dense<0.000000e+00> : vector<1x16x128xf32>
    %548 = tpu.matmul %534, %397, %cst_149 {dimension_numbers = #tpu.dot_dimension_numbers<[2], [1], [1], [2], [0, 0, 0, 1, 1, 2], [0], [0]>} : vector<1x16x16xbf16>, vector<1x16x128xbf16>, vector<1x16x128xf32> -> vector<1x16x128xf32>
    "tpu.trace_stop"() : () -> ()
    %549 = arith.addf %548, %401 : vector<1x16x128xf32>
    %cst_150 = arith.constant 0.000000e+00 : f32
    %550 = vector.broadcast %cst_150 : f32 to vector<1x16x128xf32>
    %551 = arith.maximumf %549, %550 : vector<1x16x128xf32>
    %552 = arith.truncf %551 : vector<1x16x128xf32> to vector<1x16x128xbf16>
    "tpu.trace_start"() <{level = 10 : i32, message = "bmc,bcd->bmd"}> : () -> ()
    %cst_151 = arith.constant dense<0.000000e+00> : vector<1x16x128xf32>
    %553 = tpu.matmul %547, %552, %cst_151 {dimension_numbers = #tpu.dot_dimension_numbers<[2], [1], [1], [2], [0, 0, 0, 1, 1, 2], [0], [0]>} : vector<1x16x16xbf16>, vector<1x16x128xbf16>, vector<1x16x128xf32> -> vector<1x16x128xf32>
    "tpu.trace_stop"() : () -> ()
    %554 = arith.addf %515, %553 : vector<1x16x128xf32>
    %555 = vector.broadcast %cst_111 : f32 to vector<1x16x16xf32>
    %556 = arith.select %531, %555, %517 : vector<1x16x16xi1>, vector<1x16x16xf32>
    %557 = vector.broadcast %cst_111 : f32 to vector<1x16x16xf32>
    %558 = arith.select %544, %557, %519 : vector<1x16x16xi1>, vector<1x16x16xf32>
    %c0_152 = arith.constant 0 : index
    %c0_153 = arith.constant 0 : index
    %559 = vector.load %arg8[%c0_152, %c0_153] : memref<128x128xf32, #tpu.memory_space<vmem>>, vector<128x128xf32>
    %c0_154 = arith.constant 0 : index
    %c0_155 = arith.constant 0 : index
    %560 = vector.load %arg9[%c0_154, %c0_155] : memref<1x64xf32, #tpu.memory_space<vmem>>, vector<1x64xf32>
    "tpu.trace_start"() <{level = 10 : i32, message = "bnc,bmc->bnm"}> : () -> ()
    %cst_156 = arith.constant dense<0.000000e+00> : vector<1x16x16xf32>
    %561 = tpu.matmul %554, %554, %cst_156 {dimension_numbers = #tpu.dot_dimension_numbers<[2], [2], [1], [1], [0, 0, 0, 1, 1, 1], [0], [0]>} : vector<1x16x128xf32>, vector<1x16x128xf32>, vector<1x16x16xf32> -> vector<1x16x16xf32>
    "tpu.trace_stop"() : () -> ()
    %562 = arith.mulf %554, %554 : vector<1x16x128xf32>
    %cst_157 = arith.constant dense<0.000000e+00> : vector<1x16xf32>
    %563 = vector.multi_reduction <add>, %562, %cst_157 [2] : vector<1x16x128xf32> to vector<1x16xf32>
    %564 = vector.shape_cast %563 : vector<1x16xf32> to vector<1x16x1xf32>
    %565 = vector.shape_cast %563 : vector<1x16xf32> to vector<1x1x16xf32>
    %566 = vector.broadcast %564 : vector<1x16x1xf32> to vector<1x16x16xf32>
    %567 = vector.broadcast %565 : vector<1x1x16xf32> to vector<1x16x16xf32>
    %568 = arith.addf %566, %567 : vector<1x16x16xf32>
    %cst_158 = arith.constant 2.000000e+00 : f32
    %569 = vector.broadcast %cst_158 : f32 to vector<1x16x16xf32>
    %570 = arith.mulf %569, %561 : vector<1x16x16xf32>
    %571 = arith.subf %568, %570 : vector<1x16x16xf32>
    %cst_159 = arith.constant 0.000000e+00 : f32
    %572 = vector.broadcast %cst_159 : f32 to vector<1x16x16xf32>
    %573 = arith.maximumf %571, %572 : vector<1x16x16xf32>
    %574 = tpu.iota {dimensions = array<i32: 1>} : vector<1x16x16xi32>
    %575 = tpu.iota {dimensions = array<i32: 2>} : vector<1x16x16xi32>
    %576 = arith.cmpi eq, %574, %575 : vector<1x16x16xi32>
    %cst_160 = arith.constant 0x7F800000 : f32
    %577 = vector.broadcast %cst_160 : f32 to vector<1x16x16xf32>
    %578 = arith.select %576, %577, %573 : vector<1x16x16xi1>, vector<1x16x16xf32>
    %579 = vector.shape_cast %554 : vector<1x16x128xf32> to vector<16x128xf32>
    %cst_161 = arith.constant dense<0.000000e+00> : vector<16x128xf32>
    %580 = tpu.matmul %579, %559, %cst_161 {dimension_numbers = #tpu.dot_dimension_numbers<[1], [0], [0], [1], [0, 0, 1, 1], [], []>} : vector<16x128xf32>, vector<128x128xf32>, vector<16x128xf32> -> vector<16x128xf32>
    %581 = vector.shape_cast %580 : vector<16x128xf32> to vector<1x16x128xf32>
    %582 = vector.extract_strided_slice %581 {offsets = [0, 0, 0], sizes = [1, 16, 64], strides = [1, 1, 1]} : vector<1x16x128xf32> to vector<1x16x64xf32>
    %583 = arith.truncf %582 : vector<1x16x64xf32> to vector<1x16x64xbf16>
    %584 = vector.extract_strided_slice %581 {offsets = [0, 0, 64], sizes = [1, 16, 64], strides = [1, 1, 1]} : vector<1x16x128xf32> to vector<1x16x64xf32>
    %585 = vector.shape_cast %560 : vector<1x64xf32> to vector<1x1x64xf32>
    %586 = vector.broadcast %585 : vector<1x1x64xf32> to vector<1x16x64xf32>
    %587 = arith.addf %584, %586 : vector<1x16x64xf32>
    %cst_162 = arith.constant 0.000000e+00 : f32
    %588 = vector.broadcast %cst_162 : f32 to vector<1x16x64xf32>
    %cst_163 = arith.constant 0x7F800000 : f32
    %c0_i32_164 = arith.constant 0 : i32
    %589 = tpu.iota {dimensions = array<i32: 2>} : vector<1x16x16xi32>
    %590 = tpu.iota {dimensions = array<i32: 1>} : vector<1x16x16xi32>
    %cst_165 = arith.constant dense<0x7F800000> : vector<1x16xf32>
    %591 = vector.multi_reduction <minimumf>, %578, %cst_165 [2] : vector<1x16x16xf32> to vector<1x16xf32>
    %592 = vector.shape_cast %591 : vector<1x16xf32> to vector<1x16x1xf32>
    %593 = vector.broadcast %592 : vector<1x16x1xf32> to vector<1x16x16xf32>
    %594 = arith.cmpf oeq, %578, %593 : vector<1x16x16xf32>
    %c16_i32_166 = arith.constant 16 : i32
    %595 = vector.broadcast %c16_i32_166 : i32 to vector<1x16x16xi32>
    %596 = arith.select %594, %589, %595 : vector<1x16x16xi1>, vector<1x16x16xi32>
    %cst_167 = arith.constant dense<2147483647> : vector<1x16xi32>
    %597 = vector.multi_reduction <minsi>, %596, %cst_167 [2] : vector<1x16x16xi32> to vector<1x16xi32>
    %598 = vector.shape_cast %597 : vector<1x16xi32> to vector<1x16x1xi32>
    %599 = vector.broadcast %598 : vector<1x16x1xi32> to vector<1x16x16xi32>
    %600 = arith.cmpi eq, %589, %599 : vector<1x16x16xi32>
    %601 = arith.extui %600 : vector<1x16x16xi1> to vector<1x16x16xi32>
    %602 = arith.sitofp %601 : vector<1x16x16xi32> to vector<1x16x16xf32>
    %603 = arith.truncf %602 : vector<1x16x16xf32> to vector<1x16x16xbf16>
    %cst_168 = arith.constant dense<0x7F800000> : vector<1x16xf32>
    %604 = vector.multi_reduction <minimumf>, %578, %cst_168 [1] : vector<1x16x16xf32> to vector<1x16xf32>
    %605 = vector.shape_cast %604 : vector<1x16xf32> to vector<1x1x16xf32>
    %606 = vector.broadcast %605 : vector<1x1x16xf32> to vector<1x16x16xf32>
    %607 = arith.cmpf oeq, %578, %606 : vector<1x16x16xf32>
    %c16_i32_169 = arith.constant 16 : i32
    %608 = vector.broadcast %c16_i32_169 : i32 to vector<1x16x16xi32>
    %609 = arith.select %607, %590, %608 : vector<1x16x16xi1>, vector<1x16x16xi32>
    %cst_170 = arith.constant dense<2147483647> : vector<1x16xi32>
    %610 = vector.multi_reduction <minsi>, %609, %cst_170 [1] : vector<1x16x16xi32> to vector<1x16xi32>
    %611 = vector.shape_cast %610 : vector<1x16xi32> to vector<1x1x16xi32>
    %612 = vector.broadcast %611 : vector<1x1x16xi32> to vector<1x16x16xi32>
    %613 = arith.cmpi eq, %590, %612 : vector<1x16x16xi32>
    %614 = arith.extui %613 : vector<1x16x16xi1> to vector<1x16x16xi32>
    %615 = arith.sitofp %614 : vector<1x16x16xi32> to vector<1x16x16xf32>
    %616 = arith.truncf %615 : vector<1x16x16xf32> to vector<1x16x16xbf16>
    "tpu.trace_start"() <{level = 10 : i32, message = "bcm,bmd->bcd"}> : () -> ()
    %cst_171 = arith.constant dense<0.000000e+00> : vector<1x16x64xf32>
    %617 = tpu.matmul %603, %583, %cst_171 {dimension_numbers = #tpu.dot_dimension_numbers<[2], [1], [1], [2], [0, 0, 0, 1, 1, 2], [0], [0]>} : vector<1x16x16xbf16>, vector<1x16x64xbf16>, vector<1x16x64xf32> -> vector<1x16x64xf32>
    "tpu.trace_stop"() : () -> ()
    %618 = arith.addf %617, %587 : vector<1x16x64xf32>
    %cst_172 = arith.constant 0.000000e+00 : f32
    %619 = vector.broadcast %cst_172 : f32 to vector<1x16x64xf32>
    %620 = arith.maximumf %618, %619 : vector<1x16x64xf32>
    %621 = arith.truncf %620 : vector<1x16x64xf32> to vector<1x16x64xbf16>
    "tpu.trace_start"() <{level = 10 : i32, message = "bmc,bcd->bmd"}> : () -> ()
    %cst_173 = arith.constant dense<0.000000e+00> : vector<1x16x64xf32>
    %622 = tpu.matmul %616, %621, %cst_173 {dimension_numbers = #tpu.dot_dimension_numbers<[2], [1], [1], [2], [0, 0, 0, 1, 1, 2], [0], [0]>} : vector<1x16x16xbf16>, vector<1x16x64xbf16>, vector<1x16x64xf32> -> vector<1x16x64xf32>
    "tpu.trace_stop"() : () -> ()
    %623 = arith.addf %588, %622 : vector<1x16x64xf32>
    %624 = vector.broadcast %cst_163 : f32 to vector<1x16x16xf32>
    %625 = arith.select %600, %624, %578 : vector<1x16x16xi1>, vector<1x16x16xf32>
    %626 = vector.broadcast %cst_163 : f32 to vector<1x16x16xf32>
    %627 = arith.select %613, %626, %578 : vector<1x16x16xi1>, vector<1x16x16xf32>
    %c1_i32_174 = arith.constant 1 : i32
    %628 = tpu.iota {dimensions = array<i32: 2>} : vector<1x16x16xi32>
    %629 = tpu.iota {dimensions = array<i32: 1>} : vector<1x16x16xi32>
    %cst_175 = arith.constant dense<0x7F800000> : vector<1x16xf32>
    %630 = vector.multi_reduction <minimumf>, %625, %cst_175 [2] : vector<1x16x16xf32> to vector<1x16xf32>
    %631 = vector.shape_cast %630 : vector<1x16xf32> to vector<1x16x1xf32>
    %632 = vector.broadcast %631 : vector<1x16x1xf32> to vector<1x16x16xf32>
    %633 = arith.cmpf oeq, %625, %632 : vector<1x16x16xf32>
    %c16_i32_176 = arith.constant 16 : i32
    %634 = vector.broadcast %c16_i32_176 : i32 to vector<1x16x16xi32>
    %635 = arith.select %633, %628, %634 : vector<1x16x16xi1>, vector<1x16x16xi32>
    %cst_177 = arith.constant dense<2147483647> : vector<1x16xi32>
    %636 = vector.multi_reduction <minsi>, %635, %cst_177 [2] : vector<1x16x16xi32> to vector<1x16xi32>
    %637 = vector.shape_cast %636 : vector<1x16xi32> to vector<1x16x1xi32>
    %638 = vector.broadcast %637 : vector<1x16x1xi32> to vector<1x16x16xi32>
    %639 = arith.cmpi eq, %628, %638 : vector<1x16x16xi32>
    %640 = arith.extui %639 : vector<1x16x16xi1> to vector<1x16x16xi32>
    %641 = arith.sitofp %640 : vector<1x16x16xi32> to vector<1x16x16xf32>
    %642 = arith.truncf %641 : vector<1x16x16xf32> to vector<1x16x16xbf16>
    %cst_178 = arith.constant dense<0x7F800000> : vector<1x16xf32>
    %643 = vector.multi_reduction <minimumf>, %627, %cst_178 [1] : vector<1x16x16xf32> to vector<1x16xf32>
    %644 = vector.shape_cast %643 : vector<1x16xf32> to vector<1x1x16xf32>
    %645 = vector.broadcast %644 : vector<1x1x16xf32> to vector<1x16x16xf32>
    %646 = arith.cmpf oeq, %627, %645 : vector<1x16x16xf32>
    %c16_i32_179 = arith.constant 16 : i32
    %647 = vector.broadcast %c16_i32_179 : i32 to vector<1x16x16xi32>
    %648 = arith.select %646, %629, %647 : vector<1x16x16xi1>, vector<1x16x16xi32>
    %cst_180 = arith.constant dense<2147483647> : vector<1x16xi32>
    %649 = vector.multi_reduction <minsi>, %648, %cst_180 [1] : vector<1x16x16xi32> to vector<1x16xi32>
    %650 = vector.shape_cast %649 : vector<1x16xi32> to vector<1x1x16xi32>
    %651 = vector.broadcast %650 : vector<1x1x16xi32> to vector<1x16x16xi32>
    %652 = arith.cmpi eq, %629, %651 : vector<1x16x16xi32>
    %653 = arith.extui %652 : vector<1x16x16xi1> to vector<1x16x16xi32>
    %654 = arith.sitofp %653 : vector<1x16x16xi32> to vector<1x16x16xf32>
    %655 = arith.truncf %654 : vector<1x16x16xf32> to vector<1x16x16xbf16>
    "tpu.trace_start"() <{level = 10 : i32, message = "bcm,bmd->bcd"}> : () -> ()
    %cst_181 = arith.constant dense<0.000000e+00> : vector<1x16x64xf32>
    %656 = tpu.matmul %642, %583, %cst_181 {dimension_numbers = #tpu.dot_dimension_numbers<[2], [1], [1], [2], [0, 0, 0, 1, 1, 2], [0], [0]>} : vector<1x16x16xbf16>, vector<1x16x64xbf16>, vector<1x16x64xf32> -> vector<1x16x64xf32>
    "tpu.trace_stop"() : () -> ()
    %657 = arith.addf %656, %587 : vector<1x16x64xf32>
    %cst_182 = arith.constant 0.000000e+00 : f32
    %658 = vector.broadcast %cst_182 : f32 to vector<1x16x64xf32>
    %659 = arith.maximumf %657, %658 : vector<1x16x64xf32>
    %660 = arith.truncf %659 : vector<1x16x64xf32> to vector<1x16x64xbf16>
    "tpu.trace_start"() <{level = 10 : i32, message = "bmc,bcd->bmd"}> : () -> ()
    %cst_183 = arith.constant dense<0.000000e+00> : vector<1x16x64xf32>
    %661 = tpu.matmul %655, %660, %cst_183 {dimension_numbers = #tpu.dot_dimension_numbers<[2], [1], [1], [2], [0, 0, 0, 1, 1, 2], [0], [0]>} : vector<1x16x16xbf16>, vector<1x16x64xbf16>, vector<1x16x64xf32> -> vector<1x16x64xf32>
    "tpu.trace_stop"() : () -> ()
    %662 = arith.addf %623, %661 : vector<1x16x64xf32>
    %663 = vector.broadcast %cst_163 : f32 to vector<1x16x16xf32>
    %664 = arith.select %639, %663, %625 : vector<1x16x16xi1>, vector<1x16x16xf32>
    %665 = vector.broadcast %cst_163 : f32 to vector<1x16x16xf32>
    %666 = arith.select %652, %665, %627 : vector<1x16x16xi1>, vector<1x16x16xf32>
    %c2_i32_184 = arith.constant 2 : i32
    %667 = tpu.iota {dimensions = array<i32: 2>} : vector<1x16x16xi32>
    %668 = tpu.iota {dimensions = array<i32: 1>} : vector<1x16x16xi32>
    %cst_185 = arith.constant dense<0x7F800000> : vector<1x16xf32>
    %669 = vector.multi_reduction <minimumf>, %664, %cst_185 [2] : vector<1x16x16xf32> to vector<1x16xf32>
    %670 = vector.shape_cast %669 : vector<1x16xf32> to vector<1x16x1xf32>
    %671 = vector.broadcast %670 : vector<1x16x1xf32> to vector<1x16x16xf32>
    %672 = arith.cmpf oeq, %664, %671 : vector<1x16x16xf32>
    %c16_i32_186 = arith.constant 16 : i32
    %673 = vector.broadcast %c16_i32_186 : i32 to vector<1x16x16xi32>
    %674 = arith.select %672, %667, %673 : vector<1x16x16xi1>, vector<1x16x16xi32>
    %cst_187 = arith.constant dense<2147483647> : vector<1x16xi32>
    %675 = vector.multi_reduction <minsi>, %674, %cst_187 [2] : vector<1x16x16xi32> to vector<1x16xi32>
    %676 = vector.shape_cast %675 : vector<1x16xi32> to vector<1x16x1xi32>
    %677 = vector.broadcast %676 : vector<1x16x1xi32> to vector<1x16x16xi32>
    %678 = arith.cmpi eq, %667, %677 : vector<1x16x16xi32>
    %679 = arith.extui %678 : vector<1x16x16xi1> to vector<1x16x16xi32>
    %680 = arith.sitofp %679 : vector<1x16x16xi32> to vector<1x16x16xf32>
    %681 = arith.truncf %680 : vector<1x16x16xf32> to vector<1x16x16xbf16>
    %cst_188 = arith.constant dense<0x7F800000> : vector<1x16xf32>
    %682 = vector.multi_reduction <minimumf>, %666, %cst_188 [1] : vector<1x16x16xf32> to vector<1x16xf32>
    %683 = vector.shape_cast %682 : vector<1x16xf32> to vector<1x1x16xf32>
    %684 = vector.broadcast %683 : vector<1x1x16xf32> to vector<1x16x16xf32>
    %685 = arith.cmpf oeq, %666, %684 : vector<1x16x16xf32>
    %c16_i32_189 = arith.constant 16 : i32
    %686 = vector.broadcast %c16_i32_189 : i32 to vector<1x16x16xi32>
    %687 = arith.select %685, %668, %686 : vector<1x16x16xi1>, vector<1x16x16xi32>
    %cst_190 = arith.constant dense<2147483647> : vector<1x16xi32>
    %688 = vector.multi_reduction <minsi>, %687, %cst_190 [1] : vector<1x16x16xi32> to vector<1x16xi32>
    %689 = vector.shape_cast %688 : vector<1x16xi32> to vector<1x1x16xi32>
    %690 = vector.broadcast %689 : vector<1x1x16xi32> to vector<1x16x16xi32>
    %691 = arith.cmpi eq, %668, %690 : vector<1x16x16xi32>
    %692 = arith.extui %691 : vector<1x16x16xi1> to vector<1x16x16xi32>
    %693 = arith.sitofp %692 : vector<1x16x16xi32> to vector<1x16x16xf32>
    %694 = arith.truncf %693 : vector<1x16x16xf32> to vector<1x16x16xbf16>
    "tpu.trace_start"() <{level = 10 : i32, message = "bcm,bmd->bcd"}> : () -> ()
    %cst_191 = arith.constant dense<0.000000e+00> : vector<1x16x64xf32>
    %695 = tpu.matmul %681, %583, %cst_191 {dimension_numbers = #tpu.dot_dimension_numbers<[2], [1], [1], [2], [0, 0, 0, 1, 1, 2], [0], [0]>} : vector<1x16x16xbf16>, vector<1x16x64xbf16>, vector<1x16x64xf32> -> vector<1x16x64xf32>
    "tpu.trace_stop"() : () -> ()
    %696 = arith.addf %695, %587 : vector<1x16x64xf32>
    %cst_192 = arith.constant 0.000000e+00 : f32
    %697 = vector.broadcast %cst_192 : f32 to vector<1x16x64xf32>
    %698 = arith.maximumf %696, %697 : vector<1x16x64xf32>
    %699 = arith.truncf %698 : vector<1x16x64xf32> to vector<1x16x64xbf16>
    "tpu.trace_start"() <{level = 10 : i32, message = "bmc,bcd->bmd"}> : () -> ()
    %cst_193 = arith.constant dense<0.000000e+00> : vector<1x16x64xf32>
    %700 = tpu.matmul %694, %699, %cst_193 {dimension_numbers = #tpu.dot_dimension_numbers<[2], [1], [1], [2], [0, 0, 0, 1, 1, 2], [0], [0]>} : vector<1x16x16xbf16>, vector<1x16x64xbf16>, vector<1x16x64xf32> -> vector<1x16x64xf32>
    "tpu.trace_stop"() : () -> ()
    %701 = arith.addf %662, %700 : vector<1x16x64xf32>
    %702 = vector.broadcast %cst_163 : f32 to vector<1x16x16xf32>
    %703 = arith.select %678, %702, %664 : vector<1x16x16xi1>, vector<1x16x16xf32>
    %704 = vector.broadcast %cst_163 : f32 to vector<1x16x16xf32>
    %705 = arith.select %691, %704, %666 : vector<1x16x16xi1>, vector<1x16x16xf32>
    %c3_i32_194 = arith.constant 3 : i32
    %706 = tpu.iota {dimensions = array<i32: 2>} : vector<1x16x16xi32>
    %707 = tpu.iota {dimensions = array<i32: 1>} : vector<1x16x16xi32>
    %cst_195 = arith.constant dense<0x7F800000> : vector<1x16xf32>
    %708 = vector.multi_reduction <minimumf>, %703, %cst_195 [2] : vector<1x16x16xf32> to vector<1x16xf32>
    %709 = vector.shape_cast %708 : vector<1x16xf32> to vector<1x16x1xf32>
    %710 = vector.broadcast %709 : vector<1x16x1xf32> to vector<1x16x16xf32>
    %711 = arith.cmpf oeq, %703, %710 : vector<1x16x16xf32>
    %c16_i32_196 = arith.constant 16 : i32
    %712 = vector.broadcast %c16_i32_196 : i32 to vector<1x16x16xi32>
    %713 = arith.select %711, %706, %712 : vector<1x16x16xi1>, vector<1x16x16xi32>
    %cst_197 = arith.constant dense<2147483647> : vector<1x16xi32>
    %714 = vector.multi_reduction <minsi>, %713, %cst_197 [2] : vector<1x16x16xi32> to vector<1x16xi32>
    %715 = vector.shape_cast %714 : vector<1x16xi32> to vector<1x16x1xi32>
    %716 = vector.broadcast %715 : vector<1x16x1xi32> to vector<1x16x16xi32>
    %717 = arith.cmpi eq, %706, %716 : vector<1x16x16xi32>
    %718 = arith.extui %717 : vector<1x16x16xi1> to vector<1x16x16xi32>
    %719 = arith.sitofp %718 : vector<1x16x16xi32> to vector<1x16x16xf32>
    %720 = arith.truncf %719 : vector<1x16x16xf32> to vector<1x16x16xbf16>
    %cst_198 = arith.constant dense<0x7F800000> : vector<1x16xf32>
    %721 = vector.multi_reduction <minimumf>, %705, %cst_198 [1] : vector<1x16x16xf32> to vector<1x16xf32>
    %722 = vector.shape_cast %721 : vector<1x16xf32> to vector<1x1x16xf32>
    %723 = vector.broadcast %722 : vector<1x1x16xf32> to vector<1x16x16xf32>
    %724 = arith.cmpf oeq, %705, %723 : vector<1x16x16xf32>
    %c16_i32_199 = arith.constant 16 : i32
    %725 = vector.broadcast %c16_i32_199 : i32 to vector<1x16x16xi32>
    %726 = arith.select %724, %707, %725 : vector<1x16x16xi1>, vector<1x16x16xi32>
    %cst_200 = arith.constant dense<2147483647> : vector<1x16xi32>
    %727 = vector.multi_reduction <minsi>, %726, %cst_200 [1] : vector<1x16x16xi32> to vector<1x16xi32>
    %728 = vector.shape_cast %727 : vector<1x16xi32> to vector<1x1x16xi32>
    %729 = vector.broadcast %728 : vector<1x1x16xi32> to vector<1x16x16xi32>
    %730 = arith.cmpi eq, %707, %729 : vector<1x16x16xi32>
    %731 = arith.extui %730 : vector<1x16x16xi1> to vector<1x16x16xi32>
    %732 = arith.sitofp %731 : vector<1x16x16xi32> to vector<1x16x16xf32>
    %733 = arith.truncf %732 : vector<1x16x16xf32> to vector<1x16x16xbf16>
    "tpu.trace_start"() <{level = 10 : i32, message = "bcm,bmd->bcd"}> : () -> ()
    %cst_201 = arith.constant dense<0.000000e+00> : vector<1x16x64xf32>
    %734 = tpu.matmul %720, %583, %cst_201 {dimension_numbers = #tpu.dot_dimension_numbers<[2], [1], [1], [2], [0, 0, 0, 1, 1, 2], [0], [0]>} : vector<1x16x16xbf16>, vector<1x16x64xbf16>, vector<1x16x64xf32> -> vector<1x16x64xf32>
    "tpu.trace_stop"() : () -> ()
    %735 = arith.addf %734, %587 : vector<1x16x64xf32>
    %cst_202 = arith.constant 0.000000e+00 : f32
    %736 = vector.broadcast %cst_202 : f32 to vector<1x16x64xf32>
    %737 = arith.maximumf %735, %736 : vector<1x16x64xf32>
    %738 = arith.truncf %737 : vector<1x16x64xf32> to vector<1x16x64xbf16>
    "tpu.trace_start"() <{level = 10 : i32, message = "bmc,bcd->bmd"}> : () -> ()
    %cst_203 = arith.constant dense<0.000000e+00> : vector<1x16x64xf32>
    %739 = tpu.matmul %733, %738, %cst_203 {dimension_numbers = #tpu.dot_dimension_numbers<[2], [1], [1], [2], [0, 0, 0, 1, 1, 2], [0], [0]>} : vector<1x16x16xbf16>, vector<1x16x64xbf16>, vector<1x16x64xf32> -> vector<1x16x64xf32>
    "tpu.trace_stop"() : () -> ()
    %740 = arith.addf %701, %739 : vector<1x16x64xf32>
    %741 = vector.broadcast %cst_163 : f32 to vector<1x16x16xf32>
    %742 = arith.select %717, %741, %703 : vector<1x16x16xi1>, vector<1x16x16xf32>
    %743 = vector.broadcast %cst_163 : f32 to vector<1x16x16xf32>
    %744 = arith.select %730, %743, %705 : vector<1x16x16xi1>, vector<1x16x16xf32>
    %cst_204 = arith.constant dense<0xFF800000> : vector<1x64xf32>
    %745 = vector.multi_reduction <maximumf>, %740, %cst_204 [1] : vector<1x16x64xf32> to vector<1x64xf32>
    %746 = vector.shape_cast %745 : vector<1x64xf32> to vector<1x1x64xf32>
    %c0_205 = arith.constant 0 : index
    %c0_206 = arith.constant 0 : index
    %c0_207 = arith.constant 0 : index
    %747 = vector.load %arg10[%c0_205, %c0_206, %c0_207] : memref<1x1x64xf32, #tpu.memory_space<vmem>>, vector<1x1x64xf32>
    tpu.vector_store %arg10[%c0_205, %c0_206, %c0_207], %746 {strides = array<i32>} : memref<1x1x64xf32, #tpu.memory_space<vmem>>, vector<1x1x64xf32>,
    return
  }
  func.func @transform_0(%arg0: i32) -> (i32, i32, i32) {
    %c0_i32 = arith.constant 0 : i32
    %c0_i32_0 = arith.constant 0 : i32
    %c0_i32_1 = arith.constant 0 : i32
    return %arg0, %c0_i32, %c0_i32_0 : i32, i32, i32
  }
  func.func @transform_1(%arg0: i32) -> (i32, i32) {
    %c0_i32 = arith.constant 0 : i32
    %c0_i32_0 = arith.constant 0 : i32
    %c0_i32_1 = arith.constant 0 : i32
    return %c0_i32, %c0_i32_0 : i32, i32
  }
  func.func @transform_2(%arg0: i32) -> (i32, i32) {
    %c0_i32 = arith.constant 0 : i32
    %c0_i32_0 = arith.constant 0 : i32
    %c0_i32_1 = arith.constant 0 : i32
    return %c0_i32, %c0_i32_0 : i32, i32
  }
  func.func @transform_3(%arg0: i32) -> (i32, i32) {
    %c0_i32 = arith.constant 0 : i32
    %c0_i32_0 = arith.constant 0 : i32
    %c0_i32_1 = arith.constant 0 : i32
    return %c0_i32, %c0_i32_0 : i32, i32
  }
  func.func @transform_4(%arg0: i32) -> (i32, i32) {
    %c0_i32 = arith.constant 0 : i32
    %c0_i32_0 = arith.constant 0 : i32
    %c0_i32_1 = arith.constant 0 : i32
    return %c0_i32, %c0_i32_0 : i32, i32
  }
  func.func @transform_5(%arg0: i32) -> (i32, i32) {
    %c0_i32 = arith.constant 0 : i32
    %c0_i32_0 = arith.constant 0 : i32
    %c0_i32_1 = arith.constant 0 : i32
    return %c0_i32, %c0_i32_0 : i32, i32
  }
  func.func @transform_6(%arg0: i32) -> (i32, i32) {
    %c0_i32 = arith.constant 0 : i32
    %c0_i32_0 = arith.constant 0 : i32
    %c0_i32_1 = arith.constant 0 : i32
    return %c0_i32, %c0_i32_0 : i32, i32
  }
  func.func @transform_7(%arg0: i32) -> (i32, i32) {
    %c0_i32 = arith.constant 0 : i32
    %c0_i32_0 = arith.constant 0 : i32
    %c0_i32_1 = arith.constant 0 : i32
    return %c0_i32, %c0_i32_0 : i32, i32
  }
  func.func @transform_8(%arg0: i32) -> (i32, i32) {
    %c0_i32 = arith.constant 0 : i32
    %c0_i32_0 = arith.constant 0 : i32
    %c0_i32_1 = arith.constant 0 : i32
    return %c0_i32, %c0_i32_0 : i32, i32
  }
  func.func @transform_9(%arg0: i32) -> (i32, i32, i32) {
    %c0_i32 = arith.constant 0 : i32
    %c0_i32_0 = arith.constant 0 : i32
    %c0_i32_1 = arith.constant 0 : i32
    return %arg0, %c0_i32, %c0_i32_0 : i32, i32, i32
  }
}

</mosaic_0001>

<bundles_post_ra>
// kernel: tpu_custom_call.1
= control target key start
LH: loop header
LB: loop body
LE: loop exit
PB: predicated region body
PF: predicated region fallthrough
CT: control target
= control target key end

     0   :  { %14 = vsyncpa [#allocation3], 0  ;;  %s6137_s0 = inlined_call_operand.vmem [shape: f32[2,16,8], index: 0, kind: input, shape index: {}]   ;;  %s6138_s1 = inlined_call_operand.vmem [shape: f32[8,128], index: 1, kind: input, shape index: {}]   ;;  %s6139_s2 = inlined_call_operand.vmem [shape: f32[1,64], index: 2, kind: input, shape index: {}]   ;;  %s6140_s3 = inlined_call_operand.hbm [shape: f32[64,128], index: 3, kind: input, shape index: {}]   ;;  %s6141_s4 = inlined_call_operand.vmem [shape: f32[1,64], index: 4, kind: input, shape index: {}]   ;;  %s6142_s5 = inlined_call_operand.hbm [shape: f32[64,256], index: 5, kind: input, shape index: {}]   ;;  %s6143_s6 = inlined_call_operand.vmem [shape: f32[1,128], index: 6, kind: input, shape index: {}]   ;;  %s6144_s7 = inlined_call_operand.hbm [shape: f32[128,128], index: 7, kind: input, shape index: {}]   ;;  %s6145_s8 = inlined_call_operand.vmem [shape: f32[1,64], index: 8, kind: input, shape index: {}]   ;;  %s6146_s9 = inlined_call_operand.hbm [shape: f32[2,1,64], index: 9, kind: output, shape index: {}]  }
   0x1   :  { %15 = vsyncpa [#allocation6], 0 }
   0x2   :  { %16 = vsyncpa [#allocation4], 0 }
   0x3   :  { %18 = vsyncpa [#allocation4 + $0x1], 0  ;;  %s4980_s30 = smov 0   ;;  %s4982_s10 = smov 0  }
   0x4   :  { %s4984_s11 = smov 0   ;;  %s4986_s12 = smov 0  }
   0x5 LB: > { %s5001_s13 = sadd.s32 4294967295, %s4917_s12   ;;  %s4170_s14 = sadd.s32 4294967294, %s4917_s12   ;;  %s4917_s12 = sphi %s4986_s12, %s6165_s12   ;;  %s4913_s11 = sphi %s4984_s11, %s6164_s11   ;;  %s4909_s10 = sphi %s4982_s10, %s6163_s10   ;;  %s4905_s30 = sphi %s4980_s30, %s6162_s30  }
   0x6   : > { %s5005_s15 = sadd.s32 1, %s4917_s12   ;;  %s225_s16 = sadd.s32 1, %s4913_s11 }
   0x7   : > { %s222_s17 = ssub.s32 %s4917_s12, %s5005_s15  ;;  %p235_p0 = scmp.ne.s32.totalorder %s4913_s11, %s4909_s10 }
   0x8   : > { %p223_p1 = scmp.eq.s32.totalorder %s222_s17, 0  ;;  %p236_p2 = scmp.eq.s32.totalorder %s5001_s13, 1 }
   0x9   : > { %p241_p3 = scmp.ne.s32.totalorder %s4909_s10, %s4905_s30  ;;  %p242_p4 = scmp.eq.s32.totalorder %s4170_s14, 1 }
   0xa   : > { %s5016_s18 = scalar_select %p223_p1, %s4913_s11, %s225_s16  }
   0xb   : > { %p5018_p5 = por %p236_p2, %p235_p0  ;;  %p5022_p6 = por %p242_p4, %p241_p3 }
   0xc   : > { %6149 = sst [smem:[#allocation12_spill]] %s5016_s18  ;;  %p4171_p7 = scmp.ge.s32.totalorder %s4917_s12, 1 }
   0xd   : > { %s6151_s20 = scalar_select %p5022_p6, 1, 0 }
   0xe   : > { %p249_p8 = scmp.lt.s32.totalorder %s4917_s12, 3  ;;  %p6147_p9 = scmp.eq.s32.totalorder %s5001_s13, 0 }
   0xf   : > { %s4919_s22 = smov [#allocation5]   ;;  %s4920_s25 = smov [#allocation2]  }
  0x10   : > { %p5029_p10 = pnand %p4171_p7, %p249_p8  ;;  %s283_s23 = sshll.u32 %s4919_s22, 4  ;;  %s284_s23 = int_to_ptr.vmem [resolvable:$true] %s283_s23 }
  0x11   : > { %s267_s26 = sshll.u32 %s4920_s25, 4  ;;  %s4782_s27 = scalar_lea.vmem %s284_s23, 2048  ;;  %s268_s26 = int_to_ptr.vmem [resolvable:$true] %s267_s26 }
  0x12   : > { %p4708_p11 = pneg %p5029_p10  ;;  %p4783_p0 = scmp.ne.s32.totalorder %s284_s23, %s4782_s27 }
  0x13   : > { %p4790_p3 = scmp.lt.s32.totalorder %s284_s23, %s284_s23  ;;  %p4791_p4 = scmp.lt.s32.totalorder %s4782_s27, %s4782_s27 }
  0x14   : > { %p5037_p12 = pnand %p6147_p9, %p4708_p11 }
  0x15   : > { %p4792_p7 = por %p4791_p4, %p4790_p3 }
  0x16   : > { %p4773_p13 = pneg %p5037_p12 }
  0x18   : > { %p4785_p1 = pnand %p4783_p0, %p4773_p13 }
  0x1a   : > { %p4786_p2 = pneg %p4785_p1 }
  0x1c   : > { %p4793_p8 = pnand %p4792_p7, %p4786_p2 }
  0x1e   : > { %4796 = shalt.err (!%p4793_p8)
}
  0x1f   : > { %s4921_s28 = smov 256   ;;  %s4922_s29 = smov 16  }
  0x20   : > { %4714 = dma.hbm_to_vmem [thread:$0]  (!%p5037_p12), %s6142_s5, 2048, %s284_s23, [#allocation6], %s4921_s28, %s4921_s28, %s4922_s29  }
  0x21   : > { %s4808_s17 = scalar_lea.vmem %s268_s26, 1024  ;;  %p4816_p9 = scmp.lt.s32.totalorder %s268_s26, %s268_s26 }
  0x22   : > { %p4809_p11 = scmp.ne.s32.totalorder %s268_s26, %s4808_s17  ;;  %p4817_p6 = scmp.lt.s32.totalorder %s4808_s17, %s4808_s17 }
  0x24   : > { %p4811_p0 = pnand %p4809_p11, %p4773_p13  ;;  %p4818_p3 = por %p4817_p6, %p4816_p9 }
  0x26   : > { %p4812_p1 = pneg %p4811_p0 }
  0x28   : > { %p4819_p2 = pnand %p4818_p3, %p4812_p1 }
  0x2a   : > { %4822 = shalt.err (!%p4819_p2)
}
  0x2b   : > { %s4923_s22 = smov 128   ;;  %s4924_s25 = smov 8  }
  0x2c   : > { %4711 = dma.hbm_to_vmem [thread:$0]  (!%p5037_p12), %s6140_s3, 1024, %s268_s26, [#allocation3], %s4923_s22, %s4923_s22, %s4924_s25  }
  0x2d   : > { %s4925_s23 = smov [#allocation7]  }
  0x2e   : > { %s299_s28 = sshll.u32 %s4925_s23, 4  ;;  %s300_s28 = int_to_ptr.vmem [resolvable:$true] %s299_s28 }
  0x2f   : > { %s4834_s29 = scalar_lea.vmem %s300_s28, 2048  ;;  %p4842_p9 = scmp.lt.s32.totalorder %s300_s28, %s300_s28 }
  0x30   : > { %p4835_p4 = scmp.ne.s32.totalorder %s300_s28, %s4834_s29  ;;  %p4843_p8 = scmp.lt.s32.totalorder %s4834_s29, %s4834_s29 }
  0x32   : > { %p4837_p7 = pnand %p4835_p4, %p4773_p13  ;;  %p4844_p11 = por %p4843_p8, %p4842_p9 }
  0x34   : > { %p4838_p6 = pneg %p4837_p7 }
  0x36   : > { %p4845_p0 = pnand %p4844_p11, %p4838_p6 }
  0x38   : > { %4848 = shalt.err (!%p4845_p0)
}
  0x39   : > { %4717 = dma.hbm_to_vmem [thread:$0]  (!%p5037_p12), %s6144_s7, 2048, %s300_s28, [#allocation6], %s4923_s22, %s4923_s22, %s4924_s25  }
  0x3a   : > { %326 = sbr.rel (%p5029_p10) target bundleno = 9534 (0x253e), region = 56  ;;  %p6154_p1 = scmp.eq.s32.totalorder (!%p5029_p10), %s5001_s13, 0 }
  0x3f   : > { %4892 = dma.done.wait (%p6154_p1), [#allocation3], 1024   ;;  %p6155_p13 = pmov %p6154_p1 }
  0x40   : > { %p6156_p3 = pmov %p6154_p1 }
  0x41   : > { %4894 = vsyncadd (%p6155_p13), [#allocation3], 4294966272 }
  0x42   : > { %4896 = dma.done.wait (%p6156_p3), [#allocation6], 4096   ;;  %p6157_p2 = pmov %p6154_p1 }
  0x43   : > { %p369_p4 = scmp.lt.s32.totalorder %s5001_s13, 1  ;;  %vm379_vm0 = vcmask 64512   ;;  %v4926_v6 = vmov 0.0   ;;  %v471_v7 = vlaneseq  ;;  %vm482_vm1 = vcmask 130112   ;;  %v377_v46 = vld [vmem:[%s6138_s1] sm:$0xff]  ;;  %s4928_s28 = smov 64  }
  0x44   : > { %4898 = vsyncadd (%p6157_p2), [#allocation6], 4294963200  ;;  %4427 = vmatprep.subr.bf16.mxu1 %v4926_v6  ;;  %vm598_vm4 = vcmask 130048   ;;  %s367_s21 = sand.u32 1, %s4909_s10   ;;  %s4929_s16 = smov [#allocation8]  }
  0x45   : > { %s370_s18 = scalar_select %p369_p4, %s5001_s13, 1  ;;  %v5099_v8 = vand.u32 127, %v471_v7  ;;  %v5101_v10 = vshrl.u32 %v471_v7, 7 }
  0x46   : > { %s368_s22 = scalar_lea.vmem [#allocation8], %s367_s21  ;;  %s4072_s29 = scalar_lea.sflag [#allocation4], %s367_s21 }
  0x47   : > { %s4303_s24 = sshll.u32 %s370_s18, 4  ;;  %v477_v11 = vadd.s32 4294967288, %v5099_v8  ;;  %v5106_v12 = vsub.s32 %v5099_v8, %v5101_v10  ;;  %v5115_v19 = vadd.s32 8, %v5101_v10  ;;  %vm6148_vm3 = vcmp.eq.s32.totalorder %v5101_v10, %v5099_v8  ;;  %s4084_s25 = sshll.u32 %s368_s22, 4  ;;  %s4085_s25 = int_to_ptr.vmem [resolvable:$true] %s4084_s25 }
  0x48   : > { %s373_s17 = scalar_lea.vmem %s6137_s0, %s4303_s24  ;;  %s4849_s14 = scalar_lea.vmem %s4085_s25, 16 }
  0x49   : > { %v5082_v0 = vld [vmem:[%s373_s17 + $0x8] sm:$0xff]  ;;  %v375_v1 = vld [vmem:[%s373_s17] sm:$0xff]  ;;  %v5109_v13 = vsub.s32 %v477_v11, %v5101_v10  ;;  %vm509_vm2 = vcmp.eq.s32.totalorder %v5115_v19, %v5099_v8  ;;  %s4300_s17 = sshll.u32 %s5001_s13, 4  ;;  %p4850_p10 = scmp.ne.s32.totalorder %s4085_s25, %s4849_s14 }
  0x4a   : > { %4415 = vmatprep.subr.msk.mxu0 %vm379_vm0, %v5082_v0  ;;  %4419 = vmatprep.mubr.msk.f32.mxu0 %vm379_vm0, %v375_v1  ;;  %v461_v2 = vmul.f32 %v375_v1, %v375_v1  ;;  %v462_v3 = vmul.f32 %v5082_v0, %v5082_v0  ;;  %s4853_s18 = sshll.u32 %s4929_s16, 4  ;;  %s4854_s18 = int_to_ptr.vmem [resolvable:$false] %s4853_s18 }
  0x4b   : > { %4416 = vmatpush3.xpose.msk.msra.mxu0 %vm379_vm0, %v5082_v0  ;;  %p4851_p12 = pnand %p4850_p10, %p5018_p5  ;;  %s4855_s13 = scalar_lea.vmem %s4854_s18, 32 }
  0x4c   : > { %4417 = vmatprep.subr.msk.mxu0 %vm379_vm0, %v375_v1  ;;  %v463_v4 = vsel %vm379_vm0, %v461_v2, 0.0  ;;  %v466_v5 = vsel %vm379_vm0, %v462_v3, 0.0  ;;  %p4856_p6 = scmp.lt.s32.totalorder %s4085_s25, %s4854_s18  ;;  %p4857_p9 = scmp.lt.s32.totalorder %s4855_s13, %s4849_s14 }
  0x4d   : > { %464 = vadd.xlane.f32.xlu0 %v463_v4  ;;  %p4852_p7 = pneg %p4851_p12 }
  0x4e   : > { %p4858_p8 = por %p4857_p9, %p4856_p6 }
  0x4f   : > { %4418 = vmatpush3.xpose.msk.msra.mxu0 %vm379_vm0, %v375_v1 }
  0x50   : > { %4422 = vmatprep.subr.mxu0 %v377_v46  ;;  %p4859_p11 = pnand %p4858_p8, %p4852_p7 }
  0x51   : > { %467 = vadd.xlane.f32.xlu0 %v466_v5 }
  0x52   : > { %4420 = vmatmul.mubr.msk.f32.vlgmr.msra.gmra.mxu0 %vm379_vm0, %v5082_v0 }
  0x53   : > { %4424 = vmatprep.mubr.msk.f32.mxu0 %vm379_vm0, %v375_v1  ;;  %4423 = vmatpush3.msra.mxu0 %v377_v46 }
  0x54   : > { %4433 = vmatprep.subr.bf16.mxu0 %v4926_v6 }
  0x56   : > { %4425 = vmatmul.mubr.msk.f32.vlgmr.msra.gmra.mxu0 %vm379_vm0, %v5082_v0 }
  0xd6   : > { %v465_v9 = vpop.xlane.xlu0 %464 }
  0xd7   : > { %v476_v15 = vrot.slane %v465_v9, %v5106_v12 }
  0xda   : > { %v468_v14 = vpop.xlane.xlu0 %467 }
  0xdb   : > { %v481_v16 = vrot.slane %v468_v14, %v5109_v13 }
  0xdd   : > { %v483_v17 = vsel %vm482_vm1, %v481_v16, %v476_v15 }
  0xde   : > { %v498_v20 = vadd.f32 %v483_v17, %v468_v14  ;;  %v497_v24 = vadd.f32 %v483_v17, %v465_v9 }
 0x112   : > { %v4421_v18 = vpop.f32.mrf.mxu0 }
 0x113   : > { %v500_v21 = vmul.f32 2.0, %v4421_v18 }
 0x114   : > { %v452_v22 = vpop.f32.mrf.mxu0 }
 0x115   : > { %v502_v23 = vsub.f32 %v498_v20, %v500_v21  ;;  %v499_v25 = vmul.f32 2.0, %v452_v22 }
 0x117   : > { %v504_v26 = vmax.f32 %v502_v23, 0.0  ;;  %v501_v27 = vsub.f32 %v497_v24, %v499_v25 }
 0x119   : > { %v5124_v28 = vsel %vm509_vm2, inf, %v504_v26  ;;  %v503_v29 = vmax.f32 %v501_v27, 0.0 }
 0x11a   : > { %v602_v32 = vsel %vm598_vm4, %v5124_v28, inf }
 0x11b   : > { %v5129_v30 = vsel %vm6148_vm3, inf, %v503_v29 }
 0x11c   : > { %v599_v31 = vsel %vm598_vm4, %v5129_v30, inf }
 0x11d   : > { %600 = vmin.xlane.f32.xlu1 %v599_v31  ;;  %v646_v33 = vmin.f32 %v599_v31, %v602_v32 }
 0x11f   : > { %v647_v34 = vrot.slane %v646_v33, 4 }
 0x121   : > { %603 = vmin.xlane.f32.xlu1 %v602_v32  ;;  %v648_v35 = vmin.f32 %v646_v33, %v647_v34 }
 0x123   : > { %v649_v36 = vrot.slane %v648_v35, 2 }
 0x125   : > { %v650_v37 = vmin.f32 %v648_v35, %v649_v36 }
 0x127   : > { %v651_v38 = vrot.slane %v650_v37, 1 }
 0x129   : > { %v652_v39 = vmin.f32 %v650_v37, %v651_v38 }
 0x12b   : > { %vm653_vm5 = vcmp.eq.f32.partialorder %v5129_v30, %v652_v39  ;;  %vm654_vm6 = vcmp.eq.f32.partialorder %v5124_v28, %v652_v39 }
 0x12c   : > { %v655_v40 = vsel %vm653_vm5, %v5101_v10, 16  ;;  %v656_v41 = vsel %vm654_vm6, %v5115_v19, 16 }
 0x12d   : > { %v657_v42 = vsel %vm598_vm4, %v655_v40, 2147483647  ;;  %v658_v43 = vsel %vm598_vm4, %v656_v41, 2147483647 }
 0x12e   : > { %vm659_vm7 = vcmp.lt.s32.totalorder %v657_v42, %v658_v43 }
 0x12f   : > { %v660_v44 = vsel %vm659_vm7, %v657_v42, %v658_v43 }
 0x130   : > { %v661_v45 = vrot.slane %v660_v44, 4 }
 0x132   : > { %vm662_vm8 = vcmp.lt.s32.totalorder %v660_v44, %v661_v45 }
 0x133   : > { %v663_v47 = vsel %vm662_vm8, %v660_v44, %v661_v45 }
 0x134   : > { %v664_v48 = vrot.slane %v663_v47, 2 }
 0x136   : > { %vm665_vm9 = vcmp.lt.s32.totalorder %v663_v47, %v664_v48 }
 0x137   : > { %v666_v49 = vsel %vm665_vm9, %v663_v47, %v664_v48 }
 0x138   : > { %v667_v50 = vrot.slane %v666_v49, 1 }
 0x13a   : > { %vm668_vm10 = vcmp.lt.s32.totalorder %v666_v49, %v667_v50 }
 0x13b   : > { %v5147_v51 = vsel %vm668_vm10, %v666_v49, %v667_v50 }
 0x13c   : > { %vm670_vm11 = vcmp.eq.s32.totalorder %v5101_v10, %v5147_v51  ;;  %vm671_vm12 = vcmp.eq.s32.totalorder %v5115_v19, %v5147_v51 }
 0x13d   : > { %v734_v52 = vsel %vm670_vm11, inf, %v5129_v30  ;;  %v735_v53 = vsel %vm671_vm12, inf, %v5124_v28 }
 0x13e   : > { %v783_v54 = vsel %vm598_vm4, %v734_v52, inf  ;;  %v784_v55 = vsel %vm598_vm4, %v735_v53, inf }
 0x13f   : > { %v785_v56 = vmin.f32 %v783_v54, %v784_v55 }
 0x141   : > { %v786_v57 = vrot.slane %v785_v56, 4 }
 0x143   : > { %v787_v58 = vmin.f32 %v785_v56, %v786_v57 }
 0x145   : > { %v788_v59 = vrot.slane %v787_v58, 2 }
 0x147   : > { %v789_v60 = vmin.f32 %v787_v58, %v788_v59 }
 0x149   : > { %v790_v61 = vrot.slane %v789_v60, 1 }
 0x14b   : > { %v791_v62 = vmin.f32 %v789_v60, %v790_v61 }
 0x14d   : > { %vm792_vm13 = vcmp.eq.f32.partialorder %v734_v52, %v791_v62  ;;  %vm793_vm14 = vcmp.eq.f32.partialorder %v735_v53, %v791_v62 }
 0x14e   : > { %v794_v63 = vsel %vm792_vm13, %v5101_v10, 16  ;;  %v795_v0 = vsel %vm793_vm14, %v5115_v19, 16 }
 0x14f   : > { %v796_v1 = vsel %vm598_vm4, %v794_v63, 2147483647  ;;  %v797_v2 = vsel %vm598_vm4, %v795_v0, 2147483647 }
 0x150   : > { %vm798_vm15 = vcmp.lt.s32.totalorder %v796_v1, %v797_v2 }
 0x151   : > { %v799_v3 = vsel %vm798_vm15, %v796_v1, %v797_v2 }
 0x152   : > { %v800_v4 = vrot.slane %v799_v3, 4 }
 0x154   : > { %vm801_vm0 = vcmp.lt.s32.totalorder %v799_v3, %v800_v4 }
 0x155   : > { %v802_v5 = vsel %vm801_vm0, %v799_v3, %v800_v4 }
 0x156   : > { %v803_v7 = vrot.slane %v802_v5, 2 }
 0x158   : > { %vm804_vm5 = vcmp.lt.s32.totalorder %v802_v5, %v803_v7 }
 0x159   : > { %v805_v9 = vsel %vm804_vm5, %v802_v5, %v803_v7 }
 0x15a   : > { %v806_v11 = vrot.slane %v805_v9, 1 }
 0x15c   : > { %vm807_vm6 = vcmp.lt.s32.totalorder %v805_v9, %v806_v11 }
 0x15d   : > { %v5167_v14 = vsel %vm807_vm6, %v805_v9, %v806_v11 }
 0x15e   : > { %vm809_vm7 = vcmp.eq.s32.totalorder %v5101_v10, %v5167_v14  ;;  %vm810_vm8 = vcmp.eq.s32.totalorder %v5115_v19, %v5167_v14 }
 0x15f   : > { %v953_v15 = vsel %vm809_vm7, inf, %v734_v52  ;;  %v954_v16 = vsel %vm810_vm8, inf, %v735_v53 }
 0x160   : > { %v1002_v17 = vsel %vm598_vm4, %v953_v15, inf  ;;  %v1003_v18 = vsel %vm598_vm4, %v954_v16, inf }
 0x161   : > { %v1004_v20 = vmin.f32 %v1002_v17, %v1003_v18  ;;  %v5211_v17 = vpop.f32.mrf.mxu0 }
 0x163   : > { %v1005_v21 = vrot.slane %v1004_v20, 4  ;;  %v5213_v18 = vpop.f32.mrf.mxu0 }
 0x165   : > { %v1006_v22 = vmin.f32 %v1004_v20, %v1005_v21  ;;  %v5217_v20 = vpack.c.bf16 %v5211_v17, %v5213_v18 }
 0x167   : > { %v1007_v23 = vrot.slane %v1006_v22, 2  ;;  %4428 = vmatpush3.bf16.msra.mxu1 %v5217_v20  ;;  %4434 = vmatpush3.bf16.msra.mxu0 %v5217_v20 }
 0x168   : > { %4439 = vmatprep.subr.bf16.mxu1 %v4926_v6  ;;  %4445 = vmatprep.subr.bf16.mxu0 %v4926_v6 }
 0x169   : > { %v1008_v24 = vmin.f32 %v1006_v22, %v1007_v23 }
 0x16b   : > { %v1009_v25 = vrot.slane %v1008_v24, 1 }
 0x16d   : > { %v1010_v26 = vmin.f32 %v1008_v24, %v1009_v25 }
 0x16f   : > { %vm1012_vm9 = vcmp.eq.f32.partialorder %v954_v16, %v1010_v26  ;;  %vm1011_vm10 = vcmp.eq.f32.partialorder %v953_v15, %v1010_v26 }
 0x170   : > { %v1014_v27 = vsel %vm1012_vm9, %v5115_v19, 16  ;;  %v1013_v29 = vsel %vm1011_vm10, %v5101_v10, 16 }
 0x171   : > { %v1016_v31 = vsel %vm598_vm4, %v1014_v27, 2147483647  ;;  %v1015_v32 = vsel %vm598_vm4, %v1013_v29, 2147483647 }
 0x172   : > { %vm1017_vm13 = vcmp.lt.s32.totalorder %v1015_v32, %v1016_v31 }
 0x173   : > { %v1018_v33 = vsel %vm1017_vm13, %v1015_v32, %v1016_v31 }
 0x174   : > { %v1019_v34 = vrot.slane %v1018_v33, 4 }
 0x176   : > { %vm1020_vm14 = vcmp.lt.s32.totalorder %v1018_v33, %v1019_v34 }
 0x177   : > { %v1021_v35 = vsel %vm1020_vm14, %v1018_v33, %v1019_v34 }
 0x178   : > { %v1022_v36 = vrot.slane %v1021_v35, 2 }
 0x17a   : > { %vm1023_vm15 = vcmp.lt.s32.totalorder %v1021_v35, %v1022_v36 }
 0x17b   : > { %v1024_v37 = vsel %vm1023_vm15, %v1021_v35, %v1022_v36 }
 0x17c   : > { %v1025_v38 = vrot.slane %v1024_v37, 1 }
 0x17e   : > { %vm1026_vm0 = vcmp.lt.s32.totalorder %v1024_v37, %v1025_v38 }
 0x17f   : > { %v5185_v39 = vsel %vm1026_vm0, %v1024_v37, %v1025_v38 }
 0x180   : > { %vm1028_vm5 = vcmp.eq.s32.totalorder %v5101_v10, %v5185_v39  ;;  %vm1029_vm6 = vcmp.eq.s32.totalorder %v5115_v19, %v5185_v39 }
 0x181   : > { %v1130_v40 = vsel %vm1028_vm5, inf, %v953_v15  ;;  %v1131_v41 = vsel %vm1029_vm6, inf, %v954_v16 }
 0x182   : > { %v1179_v42 = vsel %vm598_vm4, %v1130_v40, inf  ;;  %v1180_v43 = vsel %vm598_vm4, %v1131_v41, inf }
 0x183   : > { %v1181_v44 = vmin.f32 %v1179_v42, %v1180_v43 }
 0x185   : > { %v1182_v45 = vrot.slane %v1181_v44, 4 }
 0x187   : > { %v1183_v46 = vmin.f32 %v1181_v44, %v1182_v45 }
 0x189   : > { %v1184_v47 = vrot.slane %v1183_v46, 2 }
 0x18b   : > { %v1185_v48 = vmin.f32 %v1183_v46, %v1184_v47 }
 0x18d   : > { %v1186_v49 = vrot.slane %v1185_v48, 1 }
 0x18f   : > { %v1187_v50 = vmin.f32 %v1185_v48, %v1186_v49 }
 0x191   : > { %vm1188_vm9 = vcmp.eq.f32.partialorder %v1130_v40, %v1187_v50  ;;  %vm1189_vm10 = vcmp.eq.f32.partialorder %v1131_v41, %v1187_v50 }
 0x192   : > { %v1190_v52 = vsel %vm1188_vm9, %v5101_v10, 16  ;;  %v1191_v53 = vsel %vm1189_vm10, %v5115_v19, 16  ;;  %vm4927_vm10 = vmmov 0  }
 0x193   : > { %v1192_v54 = vsel %vm598_vm4, %v1190_v52, 2147483647  ;;  %v1193_v55 = vsel %vm598_vm4, %v1191_v53, 2147483647  ;;  %4429 = vmatprep.mubr.msk.bf16.mxu1 %vm4927_vm10, %v4926_v6  ;;  %4435 = vmatprep.mubr.msk.bf16.mxu0 %vm4927_vm10, %v4926_v6 }
 0x194   : > { %vm1194_vm13 = vcmp.lt.s32.totalorder %v1192_v54, %v1193_v55 }
 0x195   : > { %v5203_v56 = vsel %vm1194_vm13, %v1192_v54, %v1193_v55 }
 0x1a6   : > { %v601_v57 = vpop.xlane.xlu1 %600 }
 0x1a7   : > { %vm605_vm14 = vcmp.eq.f32.partialorder %v5129_v30, %v601_v57 }
 0x1a8   : > { %v607_v58 = vsel %vm605_vm14, %v5099_v8, 16 }
 0x1a9   : > { %v609_v59 = vsel %vm598_vm4, %v607_v58, 2147483647 }
 0x1aa   : > { %v604_v60 = vpop.xlane.xlu1 %603  ;;  %v611_v61 = vshra.s32 %v609_v59, 16  ;;  %v610_v3 = vand.u32 65535, %v609_v59 }
 0x1ab   : > { %vm606_vm15 = vcmp.eq.f32.partialorder %v5124_v28, %v604_v60 }
 0x1ac   : > { %v608_v62 = vsel %vm606_vm15, %v5099_v8, 16  ;;  %v613_v63 = vcvt.s32.f32 %v611_v61  ;;  %v612_v5 = vcvt.s32.f32 %v610_v3 }
 0x1ad   : > { %v624_v0 = vsel %vm598_vm4, %v608_v62, 2147483647 }
 0x1ae   : > { %614 = vmin.xlane.f32.xlu0 %v613_v63  ;;  %v626_v1 = vshra.s32 %v624_v0, 16  ;;  %v625_v7 = vand.u32 65535, %v624_v0 }
 0x1b0   : > { %v628_v2 = vcvt.s32.f32 %v626_v1  ;;  %v627_v15 = vcvt.s32.f32 %v625_v7 }
 0x1b2   : > { %629 = vmin.xlane.f32.xlu1 %v628_v2 }
 0x237   : > { %v615_v4 = vpop.xlane.xlu0 %614 }
 0x238   : > { %vm616_vm0 = vcmp.eq.f32.partialorder %v613_v63, %v615_v4  ;;  %v621_v21 = vcvt.f32.s32 %v615_v4 }
 0x239   : > { %v617_v9 = vsel %vm616_vm0, %v612_v5, inf }
 0x23a   : > { %618 = vmin.xlane.f32.xlu0 %v617_v9  ;;  %v622_v23 = vshll.u32 %v621_v21, 16 }
 0x23b   : > { %v630_v11 = vpop.xlane.xlu1 %629 }
 0x23c   : > { %vm631_vm9 = vcmp.eq.f32.partialorder %v628_v2, %v630_v11  ;;  %v636_v24 = vcvt.f32.s32 %v630_v11 }
 0x23d   : > { %v632_v16 = vsel %vm631_vm9, %v627_v15, inf }
 0x23e   : > { %633 = vmin.xlane.f32.xlu1 %v632_v16  ;;  %v637_v29 = vshll.u32 %v636_v24, 16 }
 0x2c3   : > { %v619_v22 = vpop.xlane.xlu0 %618 }
 0x2c4   : > { %v620_v25 = vcvt.f32.s32 %v619_v22 }
 0x2c6   : > { %v623_v26 = vadd.s32 %v622_v23, %v620_v25 }
 0x2c7   : > { %v634_v27 = vpop.xlane.xlu1 %633 }
 0x2c8   : > { %v635_v31 = vcvt.f32.s32 %v634_v27  ;;  %vm639_vm13 = vcmp.eq.s32.totalorder %v5099_v8, %v623_v26 }
 0x2c9   : > { %v732_v32 = vsel %vm639_vm13, inf, %v5129_v30  ;;  %v4189_v35 = vsel %vm639_vm13, 1.0, %v4926_v6 }
 0x2ca   : > { %v638_v33 = vadd.s32 %v637_v29, %v635_v31  ;;  %v736_v34 = vsel %vm598_vm4, %v732_v32, inf }
 0x2cb   : > { %737 = vmin.xlane.f32.xlu0 %v736_v34 }
 0x2cc   : > { %vm640_vm14 = vcmp.eq.s32.totalorder %v5099_v8, %v638_v33 }
 0x2cd   : > { %v733_v36 = vsel %vm640_vm14, inf, %v5124_v28  ;;  %v4190_v37 = vsel %vm640_vm14, 1.0, %v4926_v6 }
 0x2ce   : > { %v739_v38 = vsel %vm598_vm4, %v733_v36, inf  ;;  %v645_v40 = vpack.c.bf16 %v4190_v37, %v4189_v35 }
 0x2cf   : > { %740 = vmin.xlane.f32.xlu1 %v739_v38 }
 0x2d0   : > { %4430 = vmatmul.mubr.msk.bf16.vlgmr.msra.gmra.mxu1 %vm598_vm4, %v645_v40 }
 0x2d1   : > { %4441 = vmatprep.mubr.msk.bf16.mxu1 %vm4927_vm10, %v4926_v6 }
 0x354   : > { %v738_v30 = vpop.xlane.xlu0 %737 }
 0x355   : > { %vm742_vm15 = vcmp.eq.f32.partialorder %v732_v32, %v738_v30 }
 0x356   : > { %v744_v41 = vsel %vm742_vm15, %v5099_v8, 16 }
 0x357   : > { %v746_v42 = vsel %vm598_vm4, %v744_v41, 2147483647 }
 0x358   : > { %v741_v43 = vpop.xlane.xlu1 %740  ;;  %v748_v44 = vshra.s32 %v746_v42, 16  ;;  %v747_v54 = vand.u32 65535, %v746_v42 }
 0x359   : > { %vm743_vm0 = vcmp.eq.f32.partialorder %v733_v36, %v741_v43 }
 0x35a   : > { %v745_v28 = vsel %vm743_vm0, %v5099_v8, 16  ;;  %v750_v45 = vcvt.s32.f32 %v748_v44  ;;  %v749_v57 = vcvt.s32.f32 %v747_v54 }
 0x35b   : > { %v761_v46 = vsel %vm598_vm4, %v745_v28, 2147483647 }
 0x35c   : > { %751 = vmin.xlane.f32.xlu0 %v750_v45  ;;  %v763_v47 = vshra.s32 %v761_v46, 16  ;;  %v762_v58 = vand.u32 65535, %v761_v46 }
 0x35e   : > { %v765_v48 = vcvt.s32.f32 %v763_v47  ;;  %v764_v61 = vcvt.s32.f32 %v762_v58 }
 0x360   : > { %766 = vmin.xlane.f32.xlu1 %v765_v48 }
 0x390   : > { %v5242_v49 = vpop.f32.mrf.mxu1 }
 0x392   : > { %v4431_v50 = vpop.f32.mrf.mxu1 }
 0x394   : > { %v5244_v52 = vpop.f32.mrf.mxu1 }
 0x396   : > { %v4432_v53 = vpop.f32.mrf.mxu1 }
 0x3e5   : > { %v752_v55 = vpop.xlane.xlu0 %751 }
 0x3e6   : > { %vm753_vm9 = vcmp.eq.f32.partialorder %v750_v45, %v752_v55  ;;  %v758_v63 = vcvt.f32.s32 %v752_v55 }
 0x3e7   : > { %v754_v59 = vsel %vm753_vm9, %v749_v57, inf }
 0x3e8   : > { %755 = vmin.xlane.f32.xlu0 %v754_v59  ;;  %v759_v1 = vshll.u32 %v758_v63, 16 }
 0x3e9   : > { %v767_v60 = vpop.xlane.xlu1 %766 }
 0x3ea   : > { %vm768_vm13 = vcmp.eq.f32.partialorder %v765_v48, %v767_v60  ;;  %v773_v2 = vcvt.f32.s32 %v767_v60 }
 0x3eb   : > { %v769_v62 = vsel %vm768_vm13, %v764_v61, inf }
 0x3ec   : > { %770 = vmin.xlane.f32.xlu1 %v769_v62  ;;  %v774_v7 = vshll.u32 %v773_v2, 16 }
 0x471   : > { %v756_v0 = vpop.xlane.xlu0 %755 }
 0x472   : > { %v757_v3 = vcvt.f32.s32 %v756_v0 }
 0x474   : > { %v760_v4 = vadd.s32 %v759_v1, %v757_v3 }
 0x475   : > { %v771_v5 = vpop.xlane.xlu1 %770 }
 0x476   : > { %v772_v9 = vcvt.f32.s32 %v771_v5  ;;  %vm776_vm14 = vcmp.eq.s32.totalorder %v5099_v8, %v760_v4 }
 0x477   : > { %v951_v11 = vsel %vm776_vm14, inf, %v732_v32  ;;  %v4194_v21 = vsel %vm776_vm14, 1.0, %v4926_v6 }
 0x478   : > { %v775_v15 = vadd.s32 %v774_v7, %v772_v9  ;;  %v955_v16 = vsel %vm598_vm4, %v951_v11, inf }
 0x479   : > { %956 = vmin.xlane.f32.xlu0 %v955_v16 }
 0x47a   : > { %vm777_vm15 = vcmp.eq.s32.totalorder %v5099_v8, %v775_v15 }
 0x47b   : > { %v952_v22 = vsel %vm777_vm15, inf, %v733_v36  ;;  %v4195_v23 = vsel %vm777_vm15, 1.0, %v4926_v6 }
 0x47c   : > { %v958_v24 = vsel %vm598_vm4, %v952_v22, inf  ;;  %v782_v25 = vpack.c.bf16 %v4195_v23, %v4194_v21 }
 0x47d   : > { %959 = vmin.xlane.f32.xlu1 %v958_v24 }
 0x47e   : > { %4436 = vmatmul.mubr.msk.bf16.vlgmr.msra.gmra.mxu0 %vm598_vm4, %v782_v25 }
 0x47f   : > { %4447 = vmatprep.mubr.msk.bf16.mxu0 %vm4927_vm10, %v4926_v6 }
 0x502   : > { %v957_v26 = vpop.xlane.xlu0 %956 }
 0x503   : > { %vm961_vm0 = vcmp.eq.f32.partialorder %v951_v11, %v957_v26  ;;  %v4188_v26 = vld [vmem:[%s6139_s2] ss:$0 sm:$0xff] }
 0x504   : > { %v963_v27 = vsel %vm961_vm0, %v5099_v8, 16 }
 0x505   : > { %v965_v29 = vsel %vm598_vm4, %v963_v27, 2147483647 }
 0x506   : > { %v960_v31 = vpop.xlane.xlu1 %959  ;;  %v967_v32 = vshra.s32 %v965_v29, 16  ;;  %v966_v42 = vand.u32 65535, %v965_v29 }
 0x507   : > { %vm962_vm9 = vcmp.eq.f32.partialorder %v952_v22, %v960_v31 }
 0x508   : > { %v964_v33 = vsel %vm962_vm9, %v5099_v8, 16  ;;  %v969_v34 = vcvt.s32.f32 %v967_v32  ;;  %v968_v44 = vcvt.s32.f32 %v966_v42 }
 0x509   : > { %v980_v35 = vsel %vm598_vm4, %v964_v33, 2147483647 }
 0x50a   : > { %970 = vmin.xlane.f32.xlu0 %v969_v34  ;;  %v982_v36 = vshra.s32 %v980_v35, 16  ;;  %v981_v28 = vand.u32 65535, %v980_v35 }
 0x50c   : > { %v984_v37 = vcvt.s32.f32 %v982_v36  ;;  %v983_v47 = vcvt.s32.f32 %v981_v28 }
 0x50e   : > { %985 = vmin.xlane.f32.xlu1 %v984_v37 }
 0x53e   : > { %v5259_v38 = vpop.f32.mrf.mxu0 }
 0x540   : > { %v4437_v40 = vpop.f32.mrf.mxu0 }
 0x542   : > { %v5261_v30 = vpop.f32.mrf.mxu0 }
 0x544   : > { %v4438_v41 = vpop.f32.mrf.mxu0 }
 0x593   : > { %v971_v43 = vpop.xlane.xlu0 %970 }
 0x594   : > { %vm972_vm13 = vcmp.eq.f32.partialorder %v969_v34, %v971_v43  ;;  %v977_v50 = vcvt.f32.s32 %v971_v43 }
 0x595   : > { %v973_v45 = vsel %vm972_vm13, %v968_v44, inf }
 0x596   : > { %974 = vmin.xlane.f32.xlu0 %v973_v45  ;;  %v978_v54 = vshll.u32 %v977_v50, 16 }
 0x597   : > { %v986_v46 = vpop.xlane.xlu1 %985 }
 0x598   : > { %vm987_vm14 = vcmp.eq.f32.partialorder %v984_v37, %v986_v46  ;;  %v992_v55 = vcvt.f32.s32 %v986_v46 }
 0x599   : > { %v988_v48 = vsel %vm987_vm14, %v983_v47, inf }
 0x59a   : > { %989 = vmin.xlane.f32.xlu1 %v988_v48  ;;  %v993_v60 = vshll.u32 %v992_v55, 16 }
 0x61f   : > { %v975_v53 = vpop.xlane.xlu0 %974 }
 0x620   : > { %v976_v57 = vcvt.f32.s32 %v975_v53 }
 0x622   : > { %v979_v58 = vadd.s32 %v978_v54, %v976_v57 }
 0x623   : > { %v990_v59 = vpop.xlane.xlu1 %989 }
 0x624   : > { %v991_v61 = vcvt.f32.s32 %v990_v59  ;;  %vm995_vm15 = vcmp.eq.s32.totalorder %v5099_v8, %v979_v58 }
 0x625   : > { %v1128_v62 = vsel %vm995_vm15, inf, %v951_v11  ;;  %v5267_v1 = vsel %vm995_vm15, 1.0, %v4926_v6 }
 0x626   : > { %v994_v63 = vadd.s32 %v993_v60, %v991_v61  ;;  %v1132_v0 = vsel %vm598_vm4, %v1128_v62, inf }
 0x627   : > { %1133 = vmin.xlane.f32.xlu0 %v1132_v0 }
 0x628   : > { %vm996_vm0 = vcmp.eq.s32.totalorder %v5099_v8, %v994_v63 }
 0x629   : > { %v1129_v2 = vsel %vm996_vm0, inf, %v952_v22  ;;  %v5270_v3 = vsel %vm996_vm0, 1.0, %v4926_v6 }
 0x62a   : > { %v1135_v4 = vsel %vm598_vm4, %v1129_v2, inf  ;;  %v1001_v5 = vpack.c.bf16 %v5270_v3, %v5267_v1 }
 0x62b   : > { %1136 = vmin.xlane.f32.xlu1 %v1135_v4 }
 0x6b0   : > { %v1134_v7 = vpop.xlane.xlu0 %1133 }
 0x6b1   : > { %vm1138_vm9 = vcmp.eq.f32.partialorder %v1128_v62, %v1134_v7 }
 0x6b2   : > { %v1140_v9 = vsel %vm1138_vm9, %v5099_v8, 16  ;;  %vm1314_vm9 = vcmask 523264  }
 0x6b3   : > { %v1142_v11 = vsel %vm598_vm4, %v1140_v9, 2147483647 }
 0x6b4   : > { %v1137_v15 = vpop.xlane.xlu1 %1136  ;;  %v1144_v16 = vshra.s32 %v1142_v11, 16  ;;  %v1143_v37 = vand.u32 65535, %v1142_v11 }
 0x6b5   : > { %vm1139_vm13 = vcmp.eq.f32.partialorder %v1129_v2, %v1137_v15 }
 0x6b6   : > { %v1141_v21 = vsel %vm1139_vm13, %v5099_v8, 16  ;;  %v1146_v22 = vcvt.s32.f32 %v1144_v16  ;;  %v1145_v40 = vcvt.s32.f32 %v1143_v37  ;;  %v1196_v37 = vrot.slane %v5203_v56, 4 }
 0x6b7   : > { %v1157_v23 = vsel %vm598_vm4, %v1141_v21, 2147483647 }
 0x6b8   : > { %1147 = vmin.xlane.f32.xlu0 %v1146_v22  ;;  %v1159_v24 = vshra.s32 %v1157_v23, 16  ;;  %v1158_v29 = vand.u32 65535, %v1157_v23 }
 0x6ba   : > { %v1161_v25 = vcvt.s32.f32 %v1159_v24  ;;  %v1160_v33 = vcvt.s32.f32 %v1158_v29 }
 0x6bc   : > { %1162 = vmin.xlane.f32.xlu1 %v1161_v25 }
 0x6ce   : > { %593 = vrot.lane.b32.xlu0 %v4188_v26, %s4928_s28 }
 0x741   : > { %v1148_v27 = vpop.xlane.xlu0 %1147 }
 0x742   : > { %vm1149_vm15 = vcmp.eq.f32.partialorder %v1146_v22, %v1148_v27  ;;  %v1154_v58 = vcvt.f32.s32 %v1148_v27 }
 0x743   : > { %v1150_v41 = vsel %vm1149_vm15, %v1145_v40, inf }
 0x744   : > { %v1155_v62 = vshll.u32 %v1154_v58, 16 }
 0x745   : > { %v594_v31 = vpop.permute.xlu0 %593  ;;  %v1163_v32 = vpop.xlane.xlu1 %1162 }
 0x746   : > { %v596_v34 = vadd.f32 %v594_v31, %v5213_v18  ;;  %vm1164_vm14 = vcmp.eq.f32.partialorder %v1161_v25, %v1163_v32  ;;  %v597_v36 = vadd.f32 %v5211_v17, %v594_v31  ;;  %v1169_v14 = vcvt.f32.s32 %v1163_v32 }
 0x747   : > { %v1165_v35 = vsel %vm1164_vm14, %v1160_v33, inf }
 0x748   : > { %679 = vrot.lane.b32.xlu1 %v596_v34, %s4928_s28  ;;  %1166 = vmin.xlane.f32.xlu0 %v1165_v35  ;;  %v1170_v59 = vshll.u32 %v1169_v14, 16  ;;  %v4203_v34 = vsel %vm1028_vm5, 1.0, %v4926_v6  ;;  %v4204_v35 = vsel %vm1029_vm6, 1.0, %v4926_v6  ;;  %v1306_v14 = vld [vmem:[#allocation2 + $0x8] sm:$0xff] }
 0x74c   : > { %681 = vrot.lane.b32.xlu1 %v597_v36, %s4928_s28  ;;  %v1034_v36 = vpack.c.bf16 %v4204_v35, %v4203_v34 }
 0x770   : > { %1151 = vmin.xlane.f32.xlu1 %v1150_v41 }
 0x7ba   : > { %v5287_v42 = vpop.permute.xlu1 %679 }
 0x7bb   : > { %v723_v43 = vadd.f32 %v5242_v49, %v5287_v42  ;;  %v854_v18 = vadd.f32 %v5259_v38, %v5287_v42  ;;  %v4191_v49 = vsel %vm670_vm11, 1.0, %v4926_v6  ;;  %v4192_v38 = vsel %vm671_vm12, 1.0, %v4926_v6 }
 0x7bc   : > { %v676_v55 = vpack.c.bf16 %v4192_v38, %v4191_v49 }
 0x7bd   : > { %v729_v45 = vmax.f32 %v723_v43, 0.0  ;;  %v860_v46 = vmax.f32 %v854_v18, 0.0 }
 0x7be   : > { %v5293_v44 = vpop.permute.xlu1 %681 }
 0x7bf   : > { %v726_v17 = vadd.f32 %v5244_v52, %v5293_v44  ;;  %v857_v28 = vadd.f32 %v5261_v30, %v5293_v44  ;;  %v4196_v52 = vsel %vm809_vm7, 1.0, %v4926_v6  ;;  %v4197_v30 = vsel %vm810_vm8, 1.0, %v4926_v6 }
 0x7c0   : > { %v815_v54 = vpack.c.bf16 %v4197_v30, %v4196_v52  ;;  %vm1197_vm7 = vcmp.lt.s32.totalorder %v5203_v56, %v1196_v37  ;;  %v1311_v30 = vld [vmem:[#allocation2 + $0x30] sm:$0xff] }
 0x7c1   : > { %v730_v47 = vmax.f32 %v726_v17, 0.0  ;;  %v861_v48 = vmax.f32 %v857_v28, 0.0  ;;  %v1198_v40 = vsel %vm1197_vm7, %v5203_v56, %v1196_v37 }
 0x7c2   : > { %v1199_v41 = vrot.slane %v1198_v40, 2 }
 0x7c3   : > { %v862_v50 = vpack.c.bf16 %v861_v48, %v860_v46  ;;  %v731_v53 = vpack.c.bf16 %v730_v47, %v729_v45 }
 0x7c4   : > { %vm1200_vm8 = vcmp.lt.s32.totalorder %v1198_v40, %v1199_v41 }
 0x7c5   : > { %4440 = vmatpush3.bf16.msra.mxu1 %v862_v50  ;;  %4446 = vmatpush3.bf16.msra.mxu0 %v731_v53  ;;  %v1201_v43 = vsel %vm1200_vm8, %v1198_v40, %v1199_v41 }
 0x7c6   : > { %4451 = vmatprep.subr.bf16.mxu1 %v4926_v6  ;;  %4457 = vmatprep.subr.bf16.mxu0 %v4926_v6  ;;  %v1202_v39 = vrot.slane %v1201_v43, 1 }
 0x7c8   : > { %4442 = vmatmul.mubr.msk.bf16.vlgmr.msra.gmra.mxu1 %vm598_vm4, %v815_v54  ;;  %4448 = vmatmul.mubr.msk.bf16.vlgmr.msra.gmra.mxu0 %vm598_vm4, %v676_v55  ;;  %vm1203_vm5 = vcmp.lt.s32.totalorder %v1201_v43, %v1202_v39  ;;  %v1309_v54 = vld [vmem:[#allocation2 + $0x20] sm:$0xff]  ;;  %v1308_v55 = vld [vmem:[#allocation2 + $0x18] sm:$0xff] }
 0x7c9   : > { %4452 = vmatpush3.bf16.msra.mxu1 %v5217_v20  ;;  %4453 = vmatprep.mubr.msk.bf16.mxu1 %vm4927_vm10, %v4926_v6  ;;  %v1204_v45 = vsel %vm1203_vm5, %v1201_v43, %v1202_v39 }
 0x7ca   : > { %4463 = vmatprep.subr.bf16.mxu1 %v4926_v6  ;;  %4459 = vmatprep.mubr.msk.bf16.mxu0 %vm4927_vm10, %v4926_v6  ;;  %vm1205_vm6 = vcmp.eq.s32.totalorder %v5101_v10, %v1204_v45  ;;  %vm1206_vm0 = vcmp.eq.s32.totalorder %v5115_v19, %v1204_v45 }
 0x7cb   : > { %v4209_v50 = vsel %vm1205_vm6, 1.0, %v4926_v6  ;;  %v4210_v53 = vsel %vm1206_vm0, 1.0, %v4926_v6 }
 0x7cc   : > { %v1211_v52 = vpack.c.bf16 %v4210_v53, %v4209_v50 }
 0x7d0   : > { %4454 = vmatmul.mubr.msk.bf16.vlgmr.msra.gmra.mxu1 %vm598_vm4, %v1001_v5 }
 0x7d1   : > { %4464 = vmatpush3.bf16.msra.mxu1 %v5217_v20  ;;  %4465 = vmatprep.mubr.msk.bf16.mxu1 %vm4927_vm10, %v4926_v6  ;;  %v1167_v51 = vpop.xlane.xlu0 %1166 }
 0x7d2   : > { %v1168_v57 = vcvt.f32.s32 %v1167_v51  ;;  %v1307_v51 = vld [vmem:[#allocation2 + $0x10] sm:$0xff] }
 0x7d4   : > { %v1171_v60 = vadd.s32 %v1170_v59, %v1168_v57  ;;  %v1305_v57 = vld [vmem:[#allocation2] sm:$0xff] }
 0x7d6   : > { %vm1173_vm11 = vcmp.eq.s32.totalorder %v5099_v8, %v1171_v60 }
 0x7d7   : > { %v4208_v1 = vsel %vm1173_vm11, 1.0, %v4926_v6 }
 0x7f9   : > { %v1152_v61 = vpop.xlane.xlu1 %1151 }
 0x7fa   : > { %v1153_v63 = vcvt.f32.s32 %v1152_v61 }
 0x7fc   : > { %v1156_v0 = vadd.s32 %v1155_v62, %v1153_v63 }
 0x7fe   : > { %vm1172_vm12 = vcmp.eq.s32.totalorder %v5099_v8, %v1156_v0 }
 0x7ff   : > { %v4207_v20 = vsel %vm1172_vm12, 1.0, %v4926_v6 }
 0x800   : > { %v1178_v2 = vpack.c.bf16 %v4208_v1, %v4207_v20 }
 0x802   : > { %4466 = vmatmul.mubr.msk.bf16.vlgmr.msra.gmra.mxu1 %vm598_vm4, %v1178_v2 }
 0x888   : > { %v900_v3 = vpop.f32.mrf.mxu1  ;;  %v944_v4 = vpop.f32.mrf.mxu0 }
 0x889   : > { %v5337_v5 = vadd.f32 %v944_v4, %v900_v3 }
 0x88a   : > { %v4443_v7 = vpop.f32.mrf.mxu1  ;;  %v4449_v9 = vpop.f32.mrf.mxu0 }
 0x88c   : > { %v903_v11 = vpop.f32.mrf.mxu1  ;;  %v947_v15 = vpop.f32.mrf.mxu0 }
 0x88d   : > { %v5339_v16 = vadd.f32 %v947_v15, %v903_v11 }
 0x88e   : > { %v4444_v21 = vpop.f32.mrf.mxu1  ;;  %v4450_v22 = vpop.f32.mrf.mxu0 }
 0x890   : > { %v1072_v23 = vpop.f32.mrf.mxu1 }
 0x891   : > { %v1073_v25 = vadd.f32 %v1072_v23, %v5287_v42 }
 0x892   : > { %v4455_v24 = vpop.f32.mrf.mxu1 }
 0x893   : > { %v1079_v31 = vmax.f32 %v1073_v25, 0.0 }
 0x894   : > { %v1075_v26 = vpop.f32.mrf.mxu1 }
 0x895   : > { %v1076_v27 = vadd.f32 %v1075_v26, %v5293_v44 }
 0x896   : > { %v4456_v29 = vpop.f32.mrf.mxu1 }
 0x897   : > { %v1080_v32 = vmax.f32 %v1076_v27, 0.0 }
 0x899   : > { %v1081_v33 = vpack.c.bf16 %v1080_v32, %v1079_v31 }
 0x89b   : > { %4458 = vmatpush3.bf16.msra.mxu0 %v1081_v33 }
 0x89c   : > { %4469 = vmatprep.subr.bf16.mxu0 %v4926_v6 }
 0x89e   : > { %4460 = vmatmul.mubr.msk.bf16.vlgmr.msra.gmra.mxu0 %vm598_vm4, %v1034_v36 }
 0x89f   : > { %4471 = vmatprep.mubr.msk.bf16.mxu0 %vm4927_vm10, %v4926_v6 }
 0x8c2   : > { %v1249_v18 = vpop.f32.mrf.mxu1 }
 0x8c3   : > { %v1250_v28 = vadd.f32 %v1249_v18, %v5287_v42  ;;  %v1312_v42 = vld [vmem:[#allocation2 + $0x38] sm:$0xff] }
 0x8c4   : > { %v4467_v17 = vpop.f32.mrf.mxu1 }
 0x8c5   : > { %v1256_v49 = vmax.f32 %v1250_v28, 0.0 }
 0x8c6   : > { %v1252_v46 = vpop.f32.mrf.mxu1 }
 0x8c7   : > { %v1253_v47 = vadd.f32 %v1252_v46, %v5293_v44  ;;  %v1310_v44 = vld [vmem:[#allocation2 + $0x28] sm:$0xff] }
 0x8c8   : > { %v4468_v48 = vpop.f32.mrf.mxu1 }
 0x8c9   : > { %v1257_v56 = vmax.f32 %v1253_v47, 0.0 }
 0x8cb   : > { %v1258_v38 = vpack.c.bf16 %v1257_v56, %v1256_v49 }
 0x8cd   : > { %4470 = vmatpush3.bf16.msra.mxu0 %v1258_v38 }
 0x8ce   : > { %4482 = vmatprep.subr.mxu0 %v1312_v42 }
 0x8d0   : > { %4472 = vmatmul.mubr.msk.bf16.vlgmr.msra.gmra.mxu0 %vm598_vm4, %v1211_v52 }
 0x8d1   : > { %4483 = vmatpush3.msra.mxu0 %v1312_v42 }
 0x8d2   : > { %4484 = vmatprep.subr.mxu0 %v1311_v30 }
 0x8d3   : > { %4485 = vmatpush3.msra.mxu0 %v1311_v30 }
 0x8d4   : > { %4486 = vmatprep.subr.mxu0 %v1310_v44 }
 0x8d5   : > { %4487 = vmatpush3.msra.mxu0 %v1310_v44 }
 0x8d6   : > { %4488 = vmatprep.subr.mxu0 %v1309_v54 }
 0x8d7   : > { %4489 = vmatpush3.msra.mxu0 %v1309_v54 }
 0x8d8   : > { %4490 = vmatprep.subr.mxu0 %v1308_v55 }
 0x8d9   : > { %4491 = vmatpush3.msra.mxu0 %v1308_v55 }
 0x8da   : > { %4492 = vmatprep.subr.mxu0 %v1307_v51 }
 0x8db   : > { %4493 = vmatpush3.msra.mxu0 %v1307_v51 }
 0x8dc   : > { %4494 = vmatprep.subr.mxu0 %v1306_v14 }
 0x8dd   : > { %4495 = vmatpush3.msra.mxu0 %v1306_v14 }
 0x8de   : > { %4496 = vmatprep.subr.mxu0 %v1305_v57 }
 0x8df   : > { %4497 = vmatpush3.msra.mxu0 %v1305_v57 }
 0x8e0   : > { %4513 = vmatprep.subr.bf16.mxu0 %v4926_v6 }
 0x95e   : > { %v1119_v58 = vpop.f32.mrf.mxu0 }
 0x95f   : > { %v1126_v62 = vadd.f32 %v1119_v58, %v5337_v5 }
 0x960   : > { %v4461_v59 = vpop.f32.mrf.mxu0 }
 0x962   : > { %v1122_v60 = vpop.f32.mrf.mxu0 }
 0x963   : > { %v1127_v20 = vadd.f32 %v1122_v60, %v5339_v16 }
 0x964   : > { %v4462_v61 = vpop.f32.mrf.mxu0 }
 0x990   : > { %v1296_v63 = vpop.f32.mrf.mxu0 }
 0x991   : > { %v1303_v0 = vadd.f32 %v1296_v63, %v1126_v62 }
 0x992   : > { %v4473_v1 = vpop.f32.mrf.mxu0 }
 0x993   : > { %4479 = vmatprep.mubr.msk.f32.mxu1 %vm1314_vm9, %v1303_v0  ;;  %4498 = vmatprep.mubr.msk.f32.mxu0 %vm1314_vm9, %v1303_v0  ;;  %v1396_v2 = vmul.f32 %v1303_v0, %v1303_v0 }
 0x994   : > { %v1299_v3 = vpop.f32.mrf.mxu0 }
 0x995   : > { %v1304_v4 = vadd.f32 %v1299_v3, %v1127_v20  ;;  %v1398_v7 = vsel %vm1314_vm9, %v1396_v2, 0.0 }
 0x996   : > { %1399 = vadd.xlane.f32.xlu0 %v1398_v7  ;;  %v4474_v9 = vpop.f32.mrf.mxu0 }
 0x997   : > { %4475 = vmatprep.subr.msk.mxu1 %vm1314_vm9, %v1304_v4  ;;  %4499 = vmatmul.mubr.msk.f32.vlgmr.msra.gmra.mxu0 %vm1314_vm9, %v1304_v4  ;;  %v1397_v5 = vmul.f32 %v1304_v4, %v1304_v4 }
 0x998   : > { %4476 = vmatpush3.xpose.msk.msra.mxu1 %vm1314_vm9, %v1304_v4  ;;  %4515 = vmatprep.mubr.msk.bf16.mxu0 %vm4927_vm10, %v4926_v6 }
 0x999   : > { %4477 = vmatprep.subr.msk.mxu1 %vm1314_vm9, %v1303_v0  ;;  %v1401_v11 = vsel %vm1314_vm9, %v1397_v5, 0.0 }
 0x99a   : > { %1402 = vadd.xlane.f32.xlu0 %v1401_v11 }
 0x99c   : > { %4478 = vmatpush3.xpose.msk.msra.mxu1 %vm1314_vm9, %v1303_v0 }
 0x99d   : > { %4501 = vmatprep.subr.bf16.mxu1 %v4926_v6 }
 0x99f   : > { %4480 = vmatmul.mubr.msk.f32.vlgmr.msra.gmra.mxu1 %vm1314_vm9, %v1304_v4 }
 0x9a0   : > { %4503 = vmatprep.mubr.msk.bf16.mxu1 %vm4927_vm10, %v4926_v6 }
 0xa1f   : > { %v1400_v15 = vpop.xlane.xlu0 %1399 }
 0xa20   : > { %v1409_v25 = vrot.slane %v1400_v15, %v5106_v12 }
 0xa23   : > { %v1403_v16 = vpop.xlane.xlu0 %1402 }
 0xa24   : > { %v1413_v22 = vrot.slane %v1403_v16, %v5109_v13 }
 0xa26   : > { %v1414_v26 = vsel %vm482_vm1, %v1413_v22, %v1409_v25 }
 0xa27   : > { %v1423_v29 = vadd.f32 %v1414_v26, %v1403_v16  ;;  %v1422_v33 = vadd.f32 %v1414_v26, %v1400_v15 }
 0xa57   : > { %v5383_v21 = vpop.f32.mrf.mxu0 }
 0xa59   : > { %v5386_v23 = vpop.f32.mrf.mxu0 }
 0xa5a   : > { %v5390_v24 = vpack.c.bf16 %v5383_v21, %v5386_v23 }
 0xa5c   : > { %4502 = vmatpush3.bf16.msra.mxu1 %v5390_v24 }
 0xa5d   : > { %4507 = vmatprep.subr.bf16.mxu1 %v4926_v6 }
 0xa5f   : > { %v4481_v27 = vpop.f32.mrf.mxu1 }
 0xa60   : > { %v1425_v31 = vmul.f32 2.0, %v4481_v27 }
 0xa61   : > { %v1387_v32 = vpop.f32.mrf.mxu1 }
 0xa62   : > { %v1427_v34 = vsub.f32 %v1423_v29, %v1425_v31  ;;  %v1424_v35 = vmul.f32 2.0, %v1387_v32 }
 0xa64   : > { %v1429_v36 = vmax.f32 %v1427_v34, 0.0  ;;  %v1426_v37 = vsub.f32 %v1422_v33, %v1424_v35 }
 0xa66   : > { %v5399_v40 = vsel %vm509_vm2, inf, %v1429_v36  ;;  %v1428_v41 = vmax.f32 %v1426_v37, 0.0 }
 0xa67   : > { %v1521_v43 = vsel %vm598_vm4, %v5399_v40, inf }
 0xa68   : > { %v5406_v39 = vsel %vm6148_vm3, inf, %v1428_v41  ;;  %1522 = vmin.xlane.f32.xlu0 %v1521_v43 }
 0xa69   : > { %v1518_v18 = vsel %vm598_vm4, %v5406_v39, inf }
 0xa6a   : > { %1519 = vmin.xlane.f32.xlu1 %v1518_v18  ;;  %v1565_v17 = vmin.f32 %v1518_v18, %v1521_v43 }
 0xa6c   : > { %v1566_v28 = vrot.slane %v1565_v17, 4 }
 0xa6e   : > { %v1567_v45 = vmin.f32 %v1565_v17, %v1566_v28 }
 0xa70   : > { %v1568_v46 = vrot.slane %v1567_v45, 2 }
 0xa72   : > { %v1569_v47 = vmin.f32 %v1567_v45, %v1568_v46 }
 0xa74   : > { %v1570_v48 = vrot.slane %v1569_v47, 1 }
 0xa76   : > { %v1571_v49 = vmin.f32 %v1569_v47, %v1570_v48 }
 0xa78   : > { %vm1572_vm13 = vcmp.eq.f32.partialorder %v5406_v39, %v1571_v49  ;;  %vm1573_vm14 = vcmp.eq.f32.partialorder %v5399_v40, %v1571_v49 }
 0xa79   : > { %v1574_v56 = vsel %vm1572_vm13, %v5101_v10, 16  ;;  %v1575_v38 = vsel %vm1573_vm14, %v5115_v19, 16 }
 0xa7a   : > { %v1576_v50 = vsel %vm598_vm4, %v1574_v56, 2147483647  ;;  %v1577_v53 = vsel %vm598_vm4, %v1575_v38, 2147483647 }
 0xa7b   : > { %vm1578_vm15 = vcmp.lt.s32.totalorder %v1576_v50, %v1577_v53 }
 0xa7c   : > { %v1579_v52 = vsel %vm1578_vm15, %v1576_v50, %v1577_v53 }
 0xa7d   : > { %v1580_v42 = vrot.slane %v1579_v52, 4 }
 0xa7f   : > { %vm1581_vm11 = vcmp.lt.s32.totalorder %v1579_v52, %v1580_v42 }
 0xa80   : > { %v1582_v30 = vsel %vm1581_vm11, %v1579_v52, %v1580_v42 }
 0xa81   : > { %v1583_v44 = vrot.slane %v1582_v30, 2 }
 0xa83   : > { %vm1584_vm12 = vcmp.lt.s32.totalorder %v1582_v30, %v1583_v44 }
 0xa84   : > { %v1585_v54 = vsel %vm1584_vm12, %v1582_v30, %v1583_v44 }
 0xa85   : > { %v1586_v55 = vrot.slane %v1585_v54, 1 }
 0xa87   : > { %vm1587_vm7 = vcmp.lt.s32.totalorder %v1585_v54, %v1586_v55 }
 0xa88   : > { %v5416_v51 = vsel %vm1587_vm7, %v1585_v54, %v1586_v55 }
 0xa89   : > { %vm1589_vm8 = vcmp.eq.s32.totalorder %v5101_v10, %v5416_v51  ;;  %vm1590_vm5 = vcmp.eq.s32.totalorder %v5115_v19, %v5416_v51 }
 0xa8a   : > { %v1653_v14 = vsel %vm1589_vm8, inf, %v5406_v39  ;;  %v1654_v57 = vsel %vm1590_vm5, inf, %v5399_v40 }
 0xa8b   : > { %v1702_v58 = vsel %vm598_vm4, %v1653_v14, inf  ;;  %v1703_v59 = vsel %vm598_vm4, %v1654_v57, inf }
 0xa8c   : > { %v1704_v60 = vmin.f32 %v1702_v58, %v1703_v59 }
 0xa8e   : > { %v1705_v61 = vrot.slane %v1704_v60, 4 }
 0xa90   : > { %v1706_v62 = vmin.f32 %v1704_v60, %v1705_v61 }
 0xa92   : > { %v1707_v63 = vrot.slane %v1706_v62, 2 }
 0xa94   : > { %v1708_v0 = vmin.f32 %v1706_v62, %v1707_v63 }
 0xa96   : > { %v1709_v1 = vrot.slane %v1708_v0, 1 }
 0xa98   : > { %v1710_v20 = vmin.f32 %v1708_v0, %v1709_v1 }
 0xa9a   : > { %vm1711_vm6 = vcmp.eq.f32.partialorder %v1653_v14, %v1710_v20  ;;  %vm1712_vm0 = vcmp.eq.f32.partialorder %v1654_v57, %v1710_v20 }
 0xa9b   : > { %v1713_v2 = vsel %vm1711_vm6, %v5101_v10, 16  ;;  %v1714_v3 = vsel %vm1712_vm0, %v5115_v19, 16 }
 0xa9c   : > { %v1715_v4 = vsel %vm598_vm4, %v1713_v2, 2147483647  ;;  %v1716_v7 = vsel %vm598_vm4, %v1714_v3, 2147483647 }
 0xa9d   : > { %vm1717_vm13 = vcmp.lt.s32.totalorder %v1715_v4, %v1716_v7 }
 0xa9e   : > { %v1718_v9 = vsel %vm1717_vm13, %v1715_v4, %v1716_v7 }
 0xa9f   : > { %v1719_v5 = vrot.slane %v1718_v9, 4 }
 0xaa1   : > { %vm1720_vm14 = vcmp.lt.s32.totalorder %v1718_v9, %v1719_v5 }
 0xaa2   : > { %v1721_v11 = vsel %vm1720_vm14, %v1718_v9, %v1719_v5 }
 0xaa3   : > { %v1722_v15 = vrot.slane %v1721_v11, 2 }
 0xaa5   : > { %vm1723_vm15 = vcmp.lt.s32.totalorder %v1721_v11, %v1722_v15 }
 0xaa6   : > { %v1724_v16 = vsel %vm1723_vm15, %v1721_v11, %v1722_v15 }
 0xaa7   : > { %v1725_v22 = vrot.slane %v1724_v16, 1 }
 0xaa9   : > { %vm1726_vm11 = vcmp.lt.s32.totalorder %v1724_v16, %v1725_v22 }
 0xaaa   : > { %v5436_v25 = vsel %vm1726_vm11, %v1724_v16, %v1725_v22 }
 0xaab   : > { %vm1728_vm12 = vcmp.eq.s32.totalorder %v5101_v10, %v5436_v25  ;;  %vm1729_vm7 = vcmp.eq.s32.totalorder %v5115_v19, %v5436_v25 }
 0xaac   : > { %v1872_v26 = vsel %vm1728_vm12, inf, %v1653_v14  ;;  %v1873_v27 = vsel %vm1729_vm7, inf, %v1654_v57 }
 0xaad   : > { %v1921_v29 = vsel %vm598_vm4, %v1872_v26, inf  ;;  %v1922_v31 = vsel %vm598_vm4, %v1873_v27, inf }
 0xaae   : > { %v1923_v32 = vmin.f32 %v1921_v29, %v1922_v31 }
 0xab0   : > { %v1924_v33 = vrot.slane %v1923_v32, 4 }
 0xab2   : > { %v1925_v34 = vmin.f32 %v1923_v32, %v1924_v33 }
 0xab4   : > { %v1926_v35 = vrot.slane %v1925_v34, 2 }
 0xab6   : > { %v1927_v36 = vmin.f32 %v1925_v34, %v1926_v35 }
 0xab8   : > { %v1928_v37 = vrot.slane %v1927_v36, 1 }
 0xaba   : > { %v1929_v41 = vmin.f32 %v1927_v36, %v1928_v37 }
 0xabc   : > { %vm1931_vm6 = vcmp.eq.f32.partialorder %v1873_v27, %v1929_v41  ;;  %vm1930_vm0 = vcmp.eq.f32.partialorder %v1872_v26, %v1929_v41 }
 0xabd   : > { %v1933_v43 = vsel %vm1931_vm6, %v5115_v19, 16  ;;  %v1932_v18 = vsel %vm1930_vm0, %v5101_v10, 16 }
 0xabe   : > { %v1935_v17 = vsel %vm598_vm4, %v1933_v43, 2147483647  ;;  %v1934_v28 = vsel %vm598_vm4, %v1932_v18, 2147483647 }
 0xabf   : > { %vm1936_vm13 = vcmp.lt.s32.totalorder %v1934_v28, %v1935_v17 }
 0xac0   : > { %v1937_v45 = vsel %vm1936_vm13, %v1934_v28, %v1935_v17 }
 0xac1   : > { %v1938_v46 = vrot.slane %v1937_v45, 4 }
 0xac3   : > { %vm1939_vm14 = vcmp.lt.s32.totalorder %v1937_v45, %v1938_v46 }
 0xac4   : > { %v1940_v47 = vsel %vm1939_vm14, %v1937_v45, %v1938_v46 }
 0xac5   : > { %v1941_v48 = vrot.slane %v1940_v47, 2 }
 0xac7   : > { %vm1942_vm15 = vcmp.lt.s32.totalorder %v1940_v47, %v1941_v48 }
 0xac8   : > { %v1943_v49 = vsel %vm1942_vm15, %v1940_v47, %v1941_v48 }
 0xac9   : > { %v1944_v56 = vrot.slane %v1943_v49, 1 }
 0xacb   : > { %vm1945_vm11 = vcmp.lt.s32.totalorder %v1943_v49, %v1944_v56 }
 0xacc   : > { %v5454_v38 = vsel %vm1945_vm11, %v1943_v49, %v1944_v56 }
 0xacd   : > { %vm1947_vm6 = vcmp.eq.s32.totalorder %v5101_v10, %v5454_v38  ;;  %vm1948_vm0 = vcmp.eq.s32.totalorder %v5115_v19, %v5454_v38 }
 0xace   : > { %v2049_v50 = vsel %vm1947_vm6, inf, %v1872_v26  ;;  %v2050_v53 = vsel %vm1948_vm0, inf, %v1873_v27 }
 0xacf   : > { %v2098_v52 = vsel %vm598_vm4, %v2049_v50, inf  ;;  %v2099_v42 = vsel %vm598_vm4, %v2050_v53, inf }
 0xad0   : > { %v2100_v30 = vmin.f32 %v2098_v52, %v2099_v42 }
 0xad2   : > { %v2101_v44 = vrot.slane %v2100_v30, 4 }
 0xad4   : > { %v2102_v54 = vmin.f32 %v2100_v30, %v2101_v44 }
 0xad6   : > { %v2103_v55 = vrot.slane %v2102_v54, 2 }
 0xad8   : > { %v2104_v14 = vmin.f32 %v2102_v54, %v2103_v55 }
 0xada   : > { %v2105_v57 = vrot.slane %v2104_v14, 1 }
 0xadc   : > { %v2106_v58 = vmin.f32 %v2104_v14, %v2105_v57 }
 0xade   : > { %vm2107_vm13 = vcmp.eq.f32.partialorder %v2049_v50, %v2106_v58  ;;  %vm2108_vm14 = vcmp.eq.f32.partialorder %v2050_v53, %v2106_v58 }
 0xadf   : > { %v2109_v59 = vsel %vm2107_vm13, %v5101_v10, 16  ;;  %v2110_v60 = vsel %vm2108_vm14, %v5115_v19, 16 }
 0xae0   : > { %v2111_v61 = vsel %vm598_vm4, %v2109_v59, 2147483647  ;;  %v2112_v62 = vsel %vm598_vm4, %v2110_v60, 2147483647 }
 0xae1   : > { %vm2113_vm15 = vcmp.lt.s32.totalorder %v2111_v61, %v2112_v62 }
 0xae2   : > { %v5472_v63 = vsel %vm2113_vm15, %v2111_v61, %v2112_v62 }
 0xaf1   : > { %v1523_v0 = vpop.xlane.xlu0 %1522 }
 0xaf2   : > { %vm1525_vm11 = vcmp.eq.f32.partialorder %v5399_v40, %v1523_v0 }
 0xaf3   : > { %v1527_v1 = vsel %vm1525_vm11, %v5099_v8, 16  ;;  %v1520_v20 = vpop.xlane.xlu1 %1519 }
 0xaf4   : > { %v1543_v2 = vsel %vm598_vm4, %v1527_v1, 2147483647  ;;  %vm1524_vm3 = vcmp.eq.f32.partialorder %v5406_v39, %v1520_v20 }
 0xaf5   : > { %v1526_v3 = vsel %vm1524_vm3, %v5099_v8, 16  ;;  %v1545_v4 = vshra.s32 %v1543_v2, 16  ;;  %v1544_v15 = vand.u32 65535, %v1543_v2 }
 0xaf6   : > { %v1528_v7 = vsel %vm598_vm4, %v1526_v3, 2147483647 }
 0xaf7   : > { %v1547_v9 = vcvt.s32.f32 %v1545_v4  ;;  %v1530_v5 = vshra.s32 %v1528_v7, 16  ;;  %v1529_v16 = vand.u32 65535, %v1528_v7  ;;  %v1546_v26 = vcvt.s32.f32 %v1544_v15 }
 0xaf9   : > { %1548 = vmin.xlane.f32.xlu0 %v1547_v9  ;;  %v1532_v11 = vcvt.s32.f32 %v1530_v5  ;;  %v1531_v31 = vcvt.s32.f32 %v1529_v16 }
 0xafb   : > { %1533 = vmin.xlane.f32.xlu1 %v1532_v11 }
 0xb82   : > { %v1549_v22 = vpop.xlane.xlu0 %1548 }
 0xb83   : > { %vm1550_vm13 = vcmp.eq.f32.partialorder %v1547_v9, %v1549_v22  ;;  %v1555_v33 = vcvt.f32.s32 %v1549_v22 }
 0xb84   : > { %v1534_v27 = vpop.xlane.xlu1 %1533  ;;  %v1551_v29 = vsel %vm1550_vm13, %v1546_v26, inf }
 0xb85   : > { %1552 = vmin.xlane.f32.xlu0 %v1551_v29  ;;  %vm1535_vm14 = vcmp.eq.f32.partialorder %v1532_v11, %v1534_v27  ;;  %v1540_v34 = vcvt.f32.s32 %v1534_v27  ;;  %v1556_v36 = vshll.u32 %v1555_v33, 16 }
 0xb86   : > { %v1536_v32 = vsel %vm1535_vm14, %v1531_v31, inf }
 0xb87   : > { %1537 = vmin.xlane.f32.xlu1 %v1536_v32  ;;  %v1541_v43 = vshll.u32 %v1540_v34, 16 }
 0xc0e   : > { %v1553_v35 = vpop.xlane.xlu0 %1552 }
 0xc0f   : > { %v1554_v37 = vcvt.f32.s32 %v1553_v35 }
 0xc10   : > { %v1538_v41 = vpop.xlane.xlu1 %1537 }
 0xc11   : > { %v1557_v18 = vadd.s32 %v1556_v36, %v1554_v37  ;;  %v1539_v17 = vcvt.f32.s32 %v1538_v41 }
 0xc13   : > { %v1542_v28 = vadd.s32 %v1541_v43, %v1539_v17  ;;  %vm1559_vm3 = vcmp.eq.s32.totalorder %v5099_v8, %v1557_v18 }
 0xc14   : > { %v1652_v45 = vsel %vm1559_vm3, inf, %v5399_v40  ;;  %v4221_v47 = vsel %vm1559_vm3, 1.0, %v4926_v6 }
 0xc15   : > { %v1658_v46 = vsel %vm598_vm4, %v1652_v45, inf  ;;  %vm1558_vm15 = vcmp.eq.s32.totalorder %v5099_v8, %v1542_v28 }
 0xc16   : > { %1659 = vmin.xlane.f32.xlu0 %v1658_v46  ;;  %v1651_v48 = vsel %vm1558_vm15, inf, %v5406_v39  ;;  %v4220_v49 = vsel %vm1558_vm15, 1.0, %v4926_v6 }
 0xc17   : > { %v1655_v56 = vsel %vm598_vm4, %v1651_v48, inf  ;;  %v1564_v50 = vpack.c.bf16 %v4221_v47, %v4220_v49 }
 0xc18   : > { %1656 = vmin.xlane.f32.xlu1 %v1655_v56 }
 0xc19   : > { %4504 = vmatmul.mubr.msk.bf16.vlgmr.msra.gmra.mxu1 %vm598_vm4, %v1564_v50 }
 0xc1a   : > { %4508 = vmatpush3.bf16.msra.mxu1 %v5390_v24  ;;  %4509 = vmatprep.mubr.msk.bf16.mxu1 %vm4927_vm10, %v4926_v6 }
 0xc1b   : > { %4519 = vmatprep.subr.bf16.mxu1 %v4926_v6 }
 0xc9f   : > { %v1660_v40 = vpop.xlane.xlu0 %1659 }
 0xca0   : > { %vm1662_vm11 = vcmp.eq.f32.partialorder %v1652_v45, %v1660_v40 }
 0xca1   : > { %v1664_v53 = vsel %vm1662_vm11, %v5099_v8, 16  ;;  %v1657_v39 = vpop.xlane.xlu1 %1656 }
 0xca2   : > { %v1680_v52 = vsel %vm598_vm4, %v1664_v53, 2147483647  ;;  %vm1661_vm13 = vcmp.eq.f32.partialorder %v1651_v48, %v1657_v39 }
 0xca3   : > { %v1663_v42 = vsel %vm1661_vm13, %v5099_v8, 16  ;;  %v1682_v30 = vshra.s32 %v1680_v52, 16  ;;  %v1681_v61 = vand.u32 65535, %v1680_v52 }
 0xca4   : > { %v1665_v44 = vsel %vm598_vm4, %v1663_v42, 2147483647 }
 0xca5   : > { %v1684_v54 = vcvt.s32.f32 %v1682_v30  ;;  %v1667_v55 = vshra.s32 %v1665_v44, 16  ;;  %v1666_v62 = vand.u32 65535, %v1665_v44  ;;  %v1683_v1 = vcvt.s32.f32 %v1681_v61 }
 0xca7   : > { %1685 = vmin.xlane.f32.xlu0 %v1684_v54  ;;  %v1669_v14 = vcvt.s32.f32 %v1667_v55  ;;  %v1668_v3 = vcvt.s32.f32 %v1666_v62 }
 0xca9   : > { %1670 = vmin.xlane.f32.xlu1 %v1669_v14 }
 0xcd9   : > { %v5497_v57 = vpop.f32.mrf.mxu1 }
 0xcdb   : > { %v4505_v58 = vpop.f32.mrf.mxu1 }
 0xcdd   : > { %v5499_v59 = vpop.f32.mrf.mxu1 }
 0xcdf   : > { %v4506_v60 = vpop.f32.mrf.mxu1 }
 0xd30   : > { %v1686_v0 = vpop.xlane.xlu0 %1685 }
 0xd31   : > { %vm1687_vm14 = vcmp.eq.f32.partialorder %v1684_v54, %v1686_v0  ;;  %v1692_v7 = vcvt.f32.s32 %v1686_v0 }
 0xd32   : > { %v1671_v20 = vpop.xlane.xlu1 %1670  ;;  %v1688_v2 = vsel %vm1687_vm14, %v1683_v1, inf }
 0xd33   : > { %1689 = vmin.xlane.f32.xlu0 %v1688_v2  ;;  %vm1672_vm3 = vcmp.eq.f32.partialorder %v1669_v14, %v1671_v20  ;;  %v1677_v9 = vcvt.f32.s32 %v1671_v20  ;;  %v1693_v11 = vshll.u32 %v1692_v7, 16 }
 0xd34   : > { %v1673_v4 = vsel %vm1672_vm3, %v1668_v3, inf }
 0xd35   : > { %1674 = vmin.xlane.f32.xlu1 %v1673_v4  ;;  %v1678_v22 = vshll.u32 %v1677_v9, 16 }
 0xdbc   : > { %v1690_v5 = vpop.xlane.xlu0 %1689 }
 0xdbd   : > { %v1691_v15 = vcvt.f32.s32 %v1690_v5 }
 0xdbe   : > { %v1675_v16 = vpop.xlane.xlu1 %1674 }
 0xdbf   : > { %v1694_v26 = vadd.s32 %v1693_v11, %v1691_v15  ;;  %v1676_v27 = vcvt.f32.s32 %v1675_v16 }
 0xdc1   : > { %v1679_v29 = vadd.s32 %v1678_v22, %v1676_v27  ;;  %vm1696_vm15 = vcmp.eq.s32.totalorder %v5099_v8, %v1694_v26 }
 0xdc2   : > { %v1871_v31 = vsel %vm1696_vm15, inf, %v1652_v45  ;;  %v4226_v33 = vsel %vm1696_vm15, 1.0, %v4926_v6 }
 0xdc3   : > { %v1877_v32 = vsel %vm598_vm4, %v1871_v31, inf  ;;  %vm1695_vm11 = vcmp.eq.s32.totalorder %v5099_v8, %v1679_v29 }
 0xdc4   : > { %1878 = vmin.xlane.f32.xlu0 %v1877_v32  ;;  %v1870_v34 = vsel %vm1695_vm11, inf, %v1651_v48  ;;  %v4225_v35 = vsel %vm1695_vm11, 1.0, %v4926_v6 }
 0xdc5   : > { %v1874_v36 = vsel %vm598_vm4, %v1870_v34, inf  ;;  %v1701_v37 = vpack.c.bf16 %v4226_v33, %v4225_v35 }
 0xdc6   : > { %1875 = vmin.xlane.f32.xlu1 %v1874_v36 }
 0xdc7   : > { %4510 = vmatmul.mubr.msk.bf16.vlgmr.msra.gmra.mxu1 %vm598_vm4, %v1701_v37 }
 0xdc8   : > { %4521 = vmatprep.mubr.msk.bf16.mxu1 %vm4927_vm10, %v4926_v6 }
 0xe4d   : > { %v1879_v41 = vpop.xlane.xlu0 %1878 }
 0xe4e   : > { %vm1881_vm13 = vcmp.eq.f32.partialorder %v1871_v31, %v1879_v41  ;;  %v4219_v41 = vld [vmem:[%s6141_s4] ss:$0 sm:$0xff] }
 0xe4f   : > { %v1883_v43 = vsel %vm1881_vm13, %v5099_v8, 16  ;;  %v1876_v18 = vpop.xlane.xlu1 %1875 }
 0xe50   : > { %v1899_v17 = vsel %vm598_vm4, %v1883_v43, 2147483647  ;;  %vm1880_vm14 = vcmp.eq.f32.partialorder %v1870_v34, %v1876_v18 }
 0xe51   : > { %v1882_v28 = vsel %vm1880_vm14, %v5099_v8, 16  ;;  %v1901_v45 = vshra.s32 %v1899_v17, 16  ;;  %v1900_v39 = vand.u32 65535, %v1899_v17 }
 0xe52   : > { %v1884_v46 = vsel %vm598_vm4, %v1882_v28, 2147483647 }
 0xe53   : > { %v1903_v47 = vcvt.s32.f32 %v1901_v45  ;;  %v1886_v48 = vshra.s32 %v1884_v46, 16  ;;  %v1885_v52 = vand.u32 65535, %v1884_v46  ;;  %v1902_v30 = vcvt.s32.f32 %v1900_v39 }
 0xe55   : > { %1904 = vmin.xlane.f32.xlu0 %v1903_v47  ;;  %v1888_v49 = vcvt.s32.f32 %v1886_v48  ;;  %v1887_v55 = vcvt.s32.f32 %v1885_v52 }
 0xe57   : > { %1889 = vmin.xlane.f32.xlu1 %v1888_v49 }
 0xe87   : > { %v5514_v56 = vpop.f32.mrf.mxu1 }
 0xe89   : > { %v4511_v50 = vpop.f32.mrf.mxu1 }
 0xe8b   : > { %v5516_v40 = vpop.f32.mrf.mxu1 }
 0xe8d   : > { %v4512_v53 = vpop.f32.mrf.mxu1 }
 0xede   : > { %v1905_v42 = vpop.xlane.xlu0 %1904 }
 0xedf   : > { %vm1906_vm3 = vcmp.eq.f32.partialorder %v1903_v47, %v1905_v42  ;;  %v1911_v58 = vcvt.f32.s32 %v1905_v42 }
 0xee0   : > { %v1890_v44 = vpop.xlane.xlu1 %1889  ;;  %v1907_v54 = vsel %vm1906_vm3, %v1902_v30, inf }
 0xee1   : > { %1908 = vmin.xlane.f32.xlu0 %v1907_v54  ;;  %vm1891_vm15 = vcmp.eq.f32.partialorder %v1888_v49, %v1890_v44  ;;  %v1896_v60 = vcvt.f32.s32 %v1890_v44  ;;  %v1912_v62 = vshll.u32 %v1911_v58, 16  ;;  %v4222_v58 = vsel %vm1589_vm8, 1.0, %v4926_v6 }
 0xee2   : > { %v1892_v14 = vsel %vm1891_vm15, %v1887_v55, inf }
 0xee3   : > { %1893 = vmin.xlane.f32.xlu1 %v1892_v14  ;;  %v1897_v20 = vshll.u32 %v1896_v60, 16 }
 0xf6a   : > { %v1909_v61 = vpop.xlane.xlu0 %1908 }
 0xf6b   : > { %v1910_v0 = vcvt.f32.s32 %v1909_v61 }
 0xf6c   : > { %v1894_v1 = vpop.xlane.xlu1 %1893 }
 0xf6d   : > { %v1913_v2 = vadd.s32 %v1912_v62, %v1910_v0  ;;  %v1895_v3 = vcvt.f32.s32 %v1894_v1 }
 0xf6f   : > { %v1898_v4 = vadd.s32 %v1897_v20, %v1895_v3  ;;  %vm1915_vm11 = vcmp.eq.s32.totalorder %v5099_v8, %v1913_v2 }
 0xf70   : > { %v2048_v7 = vsel %vm1915_vm11, inf, %v1871_v31  ;;  %v5522_v5 = vsel %vm1915_vm11, 1.0, %v4926_v6 }
 0xf71   : > { %v2054_v9 = vsel %vm598_vm4, %v2048_v7, inf  ;;  %vm1914_vm13 = vcmp.eq.s32.totalorder %v5099_v8, %v1898_v4 }
 0xf72   : > { %2055 = vmin.xlane.f32.xlu0 %v2054_v9  ;;  %v2047_v11 = vsel %vm1914_vm13, inf, %v1870_v34  ;;  %v5525_v15 = vsel %vm1914_vm13, 1.0, %v4926_v6 }
 0xf73   : > { %v2051_v16 = vsel %vm598_vm4, %v2047_v11, inf  ;;  %v1920_v22 = vpack.c.bf16 %v5522_v5, %v5525_v15 }
 0xf74   : > { %2052 = vmin.xlane.f32.xlu1 %v2051_v16 }
 0xffb   : > { %v2056_v26 = vpop.xlane.xlu0 %2055 }
 0xffc   : > { %vm2058_vm14 = vcmp.eq.f32.partialorder %v2048_v7, %v2056_v26 }
 0xffd   : > { %v2060_v27 = vsel %vm2058_vm14, %v5099_v8, 16  ;;  %v2053_v29 = vpop.xlane.xlu1 %2052  ;;  %vm6158_vm14 = vcmp.eq.s32.totalorder %v5101_v10, %v5099_v8 }
 0xffe   : > { %v2076_v31 = vsel %vm598_vm4, %v2060_v27, 2147483647  ;;  %vm2057_vm3 = vcmp.eq.f32.partialorder %v2047_v11, %v2053_v29 }
 0xfff   : > { %v2059_v32 = vsel %vm2057_vm3, %v5099_v8, 16  ;;  %v2078_v33 = vshra.s32 %v2076_v31, 16  ;;  %v2077_v46 = vand.u32 65535, %v2076_v31 }
0x1000   : > { %v2061_v34 = vsel %vm598_vm4, %v2059_v32, 2147483647 }
0x1001   : > { %v2080_v35 = vcvt.s32.f32 %v2078_v33  ;;  %v2063_v36 = vshra.s32 %v2061_v34, 16  ;;  %v2079_v47 = vcvt.s32.f32 %v2077_v46  ;;  %v2062_v48 = vand.u32 65535, %v2061_v34 }
0x1002   : > { %v4234_v46 = vsel %vm1947_vm6, 1.0, %v4926_v6 }
0x1003   : > { %2081 = vmin.xlane.f32.xlu0 %v2080_v35  ;;  %v2065_v37 = vcvt.s32.f32 %v2063_v36  ;;  %v2064_v50 = vcvt.s32.f32 %v2062_v48 }
0x1005   : > { %2066 = vmin.xlane.f32.xlu1 %v2065_v37 }
0x1016   : > { %1513 = vrot.lane.b32.xlu1 %v4219_v41, %s4928_s28 }
0x108c   : > { %v2082_v45 = vpop.xlane.xlu0 %2081 }
0x108d   : > { %vm2083_vm15 = vcmp.eq.f32.partialorder %v2080_v35, %v2082_v45  ;;  %v2088_v51 = vcvt.f32.s32 %v2082_v45 }
0x108e   : > { %v2067_v43 = vpop.xlane.xlu1 %2066  ;;  %v2084_v49 = vsel %vm2083_vm15, %v2079_v47, inf  ;;  %v4235_v47 = vsel %vm1948_vm0, 1.0, %v4926_v6 }
0x108f   : > { %vm2068_vm11 = vcmp.eq.f32.partialorder %v2065_v37, %v2067_v43  ;;  %v2089_v1 = vshll.u32 %v2088_v51, 16  ;;  %v2073_v20 = vcvt.f32.s32 %v2067_v43  ;;  %v1953_v48 = vpack.c.bf16 %v4235_v47, %v4234_v46  ;;  %v2234_v51 = vld [vmem:[#allocation5 + $0x50] sm:$0xff] }
0x1090   : > { %v2069_v53 = vsel %vm2068_vm11, %v2064_v50, inf }
0x1091   : > { %v2074_v4 = vshll.u32 %v2073_v20, 16  ;;  %v2230_v20 = vld [vmem:[#allocation5 + $0x30] sm:$0xff] }
0x1092   : > { %v1514_v18 = vpop.permute.xlu1 %1513 }
0x1093   : > { %v1516_v17 = vadd.f32 %v1514_v18, %v5386_v23  ;;  %v1517_v28 = vadd.f32 %v5383_v21, %v1514_v18 }
0x1095   : > { %1600 = vrot.lane.b32.xlu1 %v1517_v28, %s4928_s28  ;;  %1598 = vrot.lane.b32.xlu0 %v1516_v17, %s4928_s28 }
0x10b4   : > { %2085 = vmin.xlane.f32.xlu0 %v2084_v49  ;;  %v2115_v49 = vrot.slane %v5472_v63, 4 }
0x10b9   : > { %2070 = vmin.xlane.f32.xlu1 %v2069_v53 }
0x1107   : > { %v5542_v39 = vpop.permute.xlu1 %1600  ;;  %v5544_v23 = vpop.permute.xlu0 %1598 }
0x1108   : > { %v1645_v21 = vadd.f32 %v5499_v59, %v5542_v39  ;;  %v1776_v52 = vadd.f32 %v5516_v40, %v5542_v39  ;;  %v1642_v42 = vadd.f32 %v5497_v57, %v5544_v23  ;;  %v1773_v30 = vadd.f32 %v5514_v56, %v5544_v23 }
0x1109   : > { %v4223_v59 = vsel %vm1590_vm5, 1.0, %v4926_v6  ;;  %v4227_v57 = vsel %vm1728_vm12, 1.0, %v4926_v6  ;;  %v4228_v56 = vsel %vm1729_vm7, 1.0, %v4926_v6  ;;  %vm2116_vm12 = vcmp.lt.s32.totalorder %v5472_v63, %v2115_v49 }
0x110a   : > { %v1649_v44 = vmax.f32 %v1645_v21, 0.0  ;;  %v1780_v54 = vmax.f32 %v1776_v52, 0.0  ;;  %v1648_v55 = vmax.f32 %v1642_v42, 0.0  ;;  %v1779_v14 = vmax.f32 %v1773_v30, 0.0 }
0x110b   : > { %v1734_v61 = vpack.c.bf16 %v4228_v56, %v4227_v57  ;;  %v1595_v62 = vpack.c.bf16 %v4223_v59, %v4222_v58  ;;  %v2117_v50 = vsel %vm2116_vm12, %v5472_v63, %v2115_v49  ;;  %v2237_v56 = vld [vmem:[#allocation5 + $0x68] sm:$0xff] }
0x110c   : > { %v1781_v40 = vpack.c.bf16 %v1780_v54, %v1779_v14  ;;  %v1650_v60 = vpack.c.bf16 %v1649_v44, %v1648_v55  ;;  %v2118_v53 = vrot.slane %v2117_v50, 2 }
0x110e   : > { %4514 = vmatpush3.bf16.msra.mxu0 %v1781_v40  ;;  %4520 = vmatpush3.bf16.msra.mxu1 %v1650_v60  ;;  %vm2119_vm7 = vcmp.lt.s32.totalorder %v2117_v50, %v2118_v53 }
0x110f   : > { %4525 = vmatprep.subr.bf16.mxu0 %v4926_v6  ;;  %4531 = vmatprep.subr.bf16.mxu1 %v4926_v6  ;;  %v2120_v21 = vsel %vm2119_vm7, %v2117_v50, %v2118_v53 }
0x1110   : > { %v2121_v38 = vrot.slane %v2120_v21, 1 }
0x1111   : > { %4516 = vmatmul.mubr.msk.bf16.vlgmr.msra.gmra.mxu0 %vm598_vm4, %v1734_v61  ;;  %4522 = vmatmul.mubr.msk.bf16.vlgmr.msra.gmra.mxu1 %vm598_vm4, %v1595_v62  ;;  %v2236_v61 = vld [vmem:[#allocation5 + $0x60] sm:$0xff]  ;;  %v2235_v62 = vld [vmem:[#allocation5 + $0x58] sm:$0xff] }
0x1112   : > { %4526 = vmatpush3.bf16.msra.mxu0 %v5390_v24  ;;  %4527 = vmatprep.mubr.msk.bf16.mxu0 %vm4927_vm10, %v4926_v6  ;;  %vm2122_vm6 = vcmp.lt.s32.totalorder %v2120_v21, %v2121_v38 }
0x1113   : > { %4537 = vmatprep.subr.bf16.mxu0 %v4926_v6  ;;  %4533 = vmatprep.mubr.msk.bf16.mxu1 %vm4927_vm10, %v4926_v6  ;;  %v2123_v44 = vsel %vm2122_vm6, %v2120_v21, %v2121_v38 }
0x1114   : > { %vm2124_vm0 = vcmp.eq.s32.totalorder %v5101_v10, %v2123_v44  ;;  %vm2125_vm13 = vcmp.eq.s32.totalorder %v5115_v19, %v2123_v44 }
0x1115   : > { %v4240_v40 = vsel %vm2124_vm0, 1.0, %v4926_v6  ;;  %v4241_v60 = vsel %vm2125_vm13, 1.0, %v4926_v6 }
0x1116   : > { %v2130_v57 = vpack.c.bf16 %v4241_v60, %v4240_v40 }
0x1119   : > { %4528 = vmatmul.mubr.msk.bf16.vlgmr.msra.gmra.mxu0 %vm598_vm4, %v1920_v22 }
0x111a   : > { %4538 = vmatpush3.bf16.msra.mxu0 %v5390_v24  ;;  %4539 = vmatprep.mubr.msk.bf16.mxu0 %vm4927_vm10, %v4926_v6 }
0x113d   : > { %v2086_v25 = vpop.xlane.xlu0 %2085 }
0x113e   : > { %v2087_v0 = vcvt.f32.s32 %v2086_v25  ;;  %v2233_v25 = vld [vmem:[#allocation5 + $0x48] sm:$0xff] }
0x1140   : > { %v2090_v2 = vadd.s32 %v2089_v1, %v2087_v0  ;;  %v2232_v0 = vld [vmem:[#allocation5 + $0x40] sm:$0xff]  ;;  %v2231_v1 = vld [vmem:[#allocation5 + $0x38] sm:$0xff] }
0x1142   : > { %v2071_v3 = vpop.xlane.xlu1 %2070  ;;  %vm2092_vm8 = vcmp.eq.s32.totalorder %v5099_v8, %v2090_v2  ;;  %v2229_v2 = vld [vmem:[#allocation5 + $0x28] sm:$0xff] }
0x1143   : > { %v2072_v7 = vcvt.f32.s32 %v2071_v3  ;;  %v4239_v5 = vsel %vm2092_vm8, 1.0, %v4926_v6  ;;  %v2228_v3 = vld [vmem:[#allocation5 + $0x20] sm:$0xff] }
0x1145   : > { %v2075_v9 = vadd.s32 %v2074_v4, %v2072_v7  ;;  %v2227_v4 = vld [vmem:[#allocation5 + $0x18] sm:$0xff]  ;;  %v2226_v7 = vld [vmem:[#allocation5 + $0x10] sm:$0xff] }
0x1147   : > { %vm2091_vm5 = vcmp.eq.s32.totalorder %v5099_v8, %v2075_v9  ;;  %v2225_v9 = vld [vmem:[#allocation5 + $0x8] sm:$0xff] }
0x1148   : > { %v4238_v24 = vsel %vm2091_vm5, 1.0, %v4926_v6 }
0x1149   : > { %v2097_v11 = vpack.c.bf16 %v4239_v5, %v4238_v24  ;;  %v2224_v5 = vld [vmem:[#allocation5] sm:$0xff] }
0x114b   : > { %4540 = vmatmul.mubr.msk.bf16.vlgmr.msra.gmra.mxu0 %vm598_vm4, %v2097_v11 }
0x11d1   : > { %v1819_v15 = vpop.f32.mrf.mxu0  ;;  %v1863_v16 = vpop.f32.mrf.mxu1 }
0x11d2   : > { %v5592_v22 = vadd.f32 %v1863_v16, %v1819_v15 }
0x11d3   : > { %v4517_v26 = vpop.f32.mrf.mxu0  ;;  %v4523_v27 = vpop.f32.mrf.mxu1 }
0x11d5   : > { %v1822_v29 = vpop.f32.mrf.mxu0  ;;  %v1866_v31 = vpop.f32.mrf.mxu1 }
0x11d6   : > { %v5594_v32 = vadd.f32 %v1866_v31, %v1822_v29 }
0x11d7   : > { %v4518_v33 = vpop.f32.mrf.mxu0  ;;  %v4524_v34 = vpop.f32.mrf.mxu1 }
0x11d9   : > { %v1991_v35 = vpop.f32.mrf.mxu0 }
0x11da   : > { %v1992_v37 = vadd.f32 %v1991_v35, %v5544_v23 }
0x11db   : > { %v4529_v36 = vpop.f32.mrf.mxu0 }
0x11dc   : > { %v1998_v17 = vmax.f32 %v1992_v37, 0.0 }
0x11dd   : > { %v1994_v41 = vpop.f32.mrf.mxu0 }
0x11de   : > { %v1995_v43 = vadd.f32 %v1994_v41, %v5542_v39 }
0x11df   : > { %v4530_v18 = vpop.f32.mrf.mxu0 }
0x11e0   : > { %v1999_v28 = vmax.f32 %v1995_v43, 0.0 }
0x11e2   : > { %v2000_v45 = vpack.c.bf16 %v1999_v28, %v1998_v17 }
0x11e4   : > { %4532 = vmatpush3.bf16.msra.mxu1 %v2000_v45 }
0x11e5   : > { %4543 = vmatprep.subr.bf16.mxu1 %v4926_v6 }
0x11e7   : > { %4534 = vmatmul.mubr.msk.bf16.vlgmr.msra.gmra.mxu1 %vm598_vm4, %v1953_v48 }
0x11e8   : > { %4545 = vmatprep.mubr.msk.bf16.mxu1 %vm4927_vm10, %v4926_v6 }
0x120b   : > { %v2168_v52 = vpop.f32.mrf.mxu0 }
0x120c   : > { %v2169_v30 = vadd.f32 %v2168_v52, %v5544_v23  ;;  %v2239_v23 = vld [vmem:[#allocation5 + $0x78] sm:$0xff] }
0x120d   : > { %v4541_v42 = vpop.f32.mrf.mxu0 }
0x120e   : > { %v2175_v58 = vmax.f32 %v2169_v30, 0.0 }
0x120f   : > { %v2171_v54 = vpop.f32.mrf.mxu0 }
0x1210   : > { %v2172_v55 = vadd.f32 %v2171_v54, %v5542_v39  ;;  %v2238_v39 = vld [vmem:[#allocation5 + $0x70] sm:$0xff] }
0x1211   : > { %v4542_v14 = vpop.f32.mrf.mxu0 }
0x1212   : > { %v2176_v63 = vmax.f32 %v2172_v55, 0.0 }
0x1214   : > { %v2177_v59 = vpack.c.bf16 %v2176_v63, %v2175_v58 }
0x1216   : > { %4544 = vmatpush3.bf16.msra.mxu1 %v2177_v59 }
0x1217   : > { %2374 = vmatprep.subr.mxu1 %v2239_v23 }
0x1219   : > { %4546 = vmatmul.mubr.msk.bf16.vlgmr.msra.gmra.mxu1 %vm598_vm4, %v2130_v57 }
0x121a   : > { %2422 = vmatprep.mubr.f32.mxu1 %v4926_v6  ;;  %2375 = vmatpush1.msra.mxu1 %v2238_v39 }
0x121b   : > { %2376 = vmatprep.subr.mxu1 %v2237_v56 }
0x121c   : > { %2377 = vmatpush1.msra.mxu1 %v2236_v61 }
0x121d   : > { %2378 = vmatprep.subr.mxu1 %v2235_v62 }
0x121e   : > { %2379 = vmatpush1.msra.mxu1 %v2234_v51 }
0x121f   : > { %2380 = vmatprep.subr.mxu1 %v2233_v25 }
0x1220   : > { %2381 = vmatpush1.msra.mxu1 %v2232_v0 }
0x1221   : > { %2382 = vmatprep.subr.mxu1 %v2231_v1 }
0x1222   : > { %2383 = vmatpush1.msra.mxu1 %v2230_v20 }
0x1223   : > { %2384 = vmatprep.subr.mxu1 %v2229_v2 }
0x1224   : > { %2385 = vmatpush1.msra.mxu1 %v2228_v3 }
0x1225   : > { %2386 = vmatprep.subr.mxu1 %v2227_v4 }
0x1226   : > { %2387 = vmatpush1.msra.mxu1 %v2226_v7 }
0x1227   : > { %2388 = vmatprep.subr.mxu1 %v2225_v9 }
0x1228   : > { %2389 = vmatpush1.msra.mxu1 %v2224_v5 }
0x1229   : > { %4568 = vmatprep.subr.bf16.mxu1 %v4926_v6 }
0x12a7   : > { %v2038_v24 = vpop.f32.mrf.mxu1 }
0x12a8   : > { %v2045_v26 = vadd.f32 %v2038_v24, %v5592_v22 }
0x12a9   : > { %v4535_v11 = vpop.f32.mrf.mxu1 }
0x12ab   : > { %v2041_v15 = vpop.f32.mrf.mxu1 }
0x12ac   : > { %v2046_v33 = vadd.f32 %v2041_v15, %v5594_v32 }
0x12ad   : > { %v4536_v16 = vpop.f32.mrf.mxu1 }
0x12d9   : > { %v2215_v27 = vpop.f32.mrf.mxu1 }
0x12da   : > { %v2222_v29 = vadd.f32 %v2215_v27, %v2045_v26 }
0x12db   : > { %v4547_v31 = vpop.f32.mrf.mxu1 }
0x12dc   : > { %4553 = vmatprep.mubr.msk.f32.mxu0 %vm1314_vm9, %v2222_v29  ;;  %4248 = vmatmul.mubr.msk.f32.vlgmr.msra.gmra.mxu1 %vm1314_vm9, %v2222_v29  ;;  %v2322_v34 = vmul.f32 %v2222_v29, %v2222_v29 }
0x12dd   : > { %v2218_v35 = vpop.f32.mrf.mxu1  ;;  %2428 = vmatprep.mubr.f32.mxu1 %v4926_v6 }
0x12de   : > { %v2223_v36 = vadd.f32 %v2218_v35, %v2046_v33  ;;  %v2324_v37 = vsel %vm1314_vm9, %v2322_v34, 0.0 }
0x12df   : > { %2325 = vadd.xlane.f32.xlu0 %v2324_v37  ;;  %v4548_v41 = vpop.f32.mrf.mxu1 }
0x12e0   : > { %4549 = vmatprep.subr.msk.mxu0 %vm1314_vm9, %v2223_v36  ;;  %4249 = vmatmul.mubr.msk.f32.gmra.mxu1 %vm1314_vm9, %v2223_v36  ;;  %v2323_v22 = vmul.f32 %v2223_v36, %v2223_v36 }
0x12e1   : > { %4550 = vmatpush3.xpose.msk.msra.mxu0 %vm1314_vm9, %v2223_v36  ;;  %4570 = vmatprep.mubr.msk.bf16.mxu1 %vm4927_vm10, %v4926_v6 }
0x12e2   : > { %4551 = vmatprep.subr.msk.mxu0 %vm1314_vm9, %v2222_v29  ;;  %v2327_v32 = vsel %vm1314_vm9, %v2323_v22, 0.0 }
0x12e3   : > { %2328 = vadd.xlane.f32.xlu1 %v2327_v32 }
0x12e5   : > { %4552 = vmatpush3.xpose.msk.msra.mxu0 %vm1314_vm9, %v2222_v29 }
0x12e6   : > { %4556 = vmatprep.subr.bf16.mxu0 %v4926_v6 }
0x12e8   : > { %4554 = vmatmul.mubr.msk.f32.vlgmr.msra.gmra.mxu0 %vm1314_vm9, %v2223_v36 }
0x12e9   : > { %4558 = vmatprep.mubr.msk.bf16.mxu0 %vm4927_vm10, %v4926_v6 }
0x1368   : > { %v2326_v45 = vpop.xlane.xlu0 %2325 }
0x1369   : > { %v2335_v48 = vrot.slane %v2326_v45, %v5106_v12 }
0x136c   : > { %v2329_v17 = vpop.xlane.xlu1 %2328 }
0x136d   : > { %v2339_v47 = vrot.slane %v2329_v17, %v5109_v13 }
0x136f   : > { %v2340_v49 = vsel %vm482_vm1, %v2339_v47, %v2335_v48 }
0x1370   : > { %v2349_v53 = vadd.f32 %v2340_v49, %v2329_v17  ;;  %v2348_v52 = vadd.f32 %v2340_v49, %v2326_v45 }
0x139c   : > { %v2424_v43 = vpop.f32.mrf.mxu1 }
0x139e   : > { %v5640_v18 = vpop.f32.mrf.mxu1 }
0x13a0   : > { %v2430_v28 = vpop.f32.mrf.mxu1 }
0x13a1   : > { %v5642_v46 = vpack.c.bf16 %v2430_v28, %v2424_v43 }
0x13a3   : > { %4557 = vmatpush3.bf16.msra.mxu0 %v5642_v46 }
0x13a4   : > { %4562 = vmatprep.subr.bf16.mxu0 %v4926_v6 }
0x13a8   : > { %v4555_v50 = vpop.f32.mrf.mxu0 }
0x13a9   : > { %v2351_v21 = vmul.f32 2.0, %v4555_v50 }
0x13aa   : > { %v2313_v38 = vpop.f32.mrf.mxu0 }
0x13ab   : > { %v2353_v42 = vsub.f32 %v2349_v53, %v2351_v21  ;;  %v2350_v30 = vmul.f32 2.0, %v2313_v38 }
0x13ad   : > { %v2355_v44 = vmax.f32 %v2353_v42, 0.0  ;;  %v2352_v54 = vsub.f32 %v2348_v52, %v2350_v30 }
0x13af   : > { %v5652_v55 = vsel %vm509_vm2, inf, %v2355_v44  ;;  %v2354_v14 = vmax.f32 %v2352_v54, 0.0 }
0x13b0   : > { %v2447_v58 = vsel %vm598_vm4, %v5652_v55, inf }
0x13b1   : > { %v5659_v63 = vsel %vm6158_vm14, inf, %v2354_v14  ;;  %2448 = vmin.xlane.f32.xlu1 %v2447_v58 }
0x13b2   : > { %v2444_v59 = vsel %vm598_vm4, %v5659_v63, inf }
0x13b3   : > { %2445 = vmin.xlane.f32.xlu0 %v2444_v59  ;;  %v2491_v40 = vmin.f32 %v2444_v59, %v2447_v58 }
0x13b5   : > { %v2492_v60 = vrot.slane %v2491_v40, 4 }
0x13b7   : > { %v2493_v57 = vmin.f32 %v2491_v40, %v2492_v60 }
0x13b9   : > { %v2494_v23 = vrot.slane %v2493_v57, 2 }
0x13bb   : > { %v2495_v39 = vmin.f32 %v2493_v57, %v2494_v23 }
0x13bd   : > { %v2496_v56 = vrot.slane %v2495_v39, 1 }
0x13bf   : > { %v2497_v61 = vmin.f32 %v2495_v39, %v2496_v56 }
0x13c1   : > { %vm2498_vm3 = vcmp.eq.f32.partialorder %v5659_v63, %v2497_v61  ;;  %vm2499_vm15 = vcmp.eq.f32.partialorder %v5652_v55, %v2497_v61 }
0x13c2   : > { %v2500_v62 = vsel %vm2498_vm3, %v5101_v10, 16  ;;  %v2501_v51 = vsel %vm2499_vm15, %v5115_v19, 16 }
0x13c3   : > { %v2502_v25 = vsel %vm598_vm4, %v2500_v62, 2147483647  ;;  %v2503_v0 = vsel %vm598_vm4, %v2501_v51, 2147483647 }
0x13c4   : > { %vm2504_vm11 = vcmp.lt.s32.totalorder %v2502_v25, %v2503_v0 }
0x13c5   : > { %v2505_v1 = vsel %vm2504_vm11, %v2502_v25, %v2503_v0 }
0x13c6   : > { %v2506_v20 = vrot.slane %v2505_v1, 4 }
0x13c8   : > { %vm2507_vm8 = vcmp.lt.s32.totalorder %v2505_v1, %v2506_v20 }
0x13c9   : > { %v2508_v2 = vsel %vm2507_vm8, %v2505_v1, %v2506_v20 }
0x13ca   : > { %v2509_v3 = vrot.slane %v2508_v2, 2 }
0x13cc   : > { %vm2510_vm5 = vcmp.lt.s32.totalorder %v2508_v2, %v2509_v3 }
0x13cd   : > { %v2511_v4 = vsel %vm2510_vm5, %v2508_v2, %v2509_v3 }
0x13ce   : > { %v2512_v7 = vrot.slane %v2511_v4, 1 }
0x13d0   : > { %vm2513_vm12 = vcmp.lt.s32.totalorder %v2511_v4, %v2512_v7 }
0x13d1   : > { %v5669_v9 = vsel %vm2513_vm12, %v2511_v4, %v2512_v7 }
0x13d2   : > { %vm2515_vm7 = vcmp.eq.s32.totalorder %v5101_v10, %v5669_v9  ;;  %vm2516_vm6 = vcmp.eq.s32.totalorder %v5115_v19, %v5669_v9 }
0x13d3   : > { %v2571_v5 = vsel %vm2515_vm7, inf, %v5659_v63  ;;  %v2572_v24 = vsel %vm2516_vm6, inf, %v5652_v55 }
0x13d4   : > { %v2620_v11 = vsel %vm598_vm4, %v2571_v5, inf  ;;  %v2621_v15 = vsel %vm598_vm4, %v2572_v24, inf }
0x13d5   : > { %v2622_v16 = vmin.f32 %v2620_v11, %v2621_v15 }
0x13d7   : > { %v2623_v26 = vrot.slane %v2622_v16, 4 }
0x13d9   : > { %v2624_v27 = vmin.f32 %v2622_v16, %v2623_v26 }
0x13db   : > { %v2625_v29 = vrot.slane %v2624_v27, 2 }
0x13dd   : > { %v2626_v31 = vmin.f32 %v2624_v27, %v2625_v29 }
0x13df   : > { %v2627_v33 = vrot.slane %v2626_v31, 1 }
0x13e1   : > { %v2628_v34 = vmin.f32 %v2626_v31, %v2627_v33 }
0x13e3   : > { %vm2629_vm0 = vcmp.eq.f32.partialorder %v2571_v5, %v2628_v34  ;;  %vm2630_vm13 = vcmp.eq.f32.partialorder %v2572_v24, %v2628_v34 }
0x13e4   : > { %v2631_v35 = vsel %vm2629_vm0, %v5101_v10, 16  ;;  %v2632_v36 = vsel %vm2630_vm13, %v5115_v19, 16 }
0x13e5   : > { %v2633_v37 = vsel %vm598_vm4, %v2631_v35, 2147483647  ;;  %v2634_v41 = vsel %vm598_vm4, %v2632_v36, 2147483647 }
0x13e6   : > { %vm2635_vm14 = vcmp.lt.s32.totalorder %v2633_v37, %v2634_v41 }
0x13e7   : > { %v2636_v22 = vsel %vm2635_vm14, %v2633_v37, %v2634_v41 }
0x13e8   : > { %v2637_v32 = vrot.slane %v2636_v22, 4 }
0x13ea   : > { %vm2638_vm3 = vcmp.lt.s32.totalorder %v2636_v22, %v2637_v32 }
0x13eb   : > { %v2639_v43 = vsel %vm2638_vm3, %v2636_v22, %v2637_v32 }
0x13ec   : > { %v2640_v17 = vrot.slane %v2639_v43, 2 }
0x13ee   : > { %vm2641_vm15 = vcmp.lt.s32.totalorder %v2639_v43, %v2640_v17 }
0x13ef   : > { %v2642_v28 = vsel %vm2641_vm15, %v2639_v43, %v2640_v17 }
0x13f0   : > { %v2643_v45 = vrot.slane %v2642_v28, 1 }
0x13f2   : > { %vm2644_vm11 = vcmp.lt.s32.totalorder %v2642_v28, %v2643_v45 }
0x13f3   : > { %v5689_v47 = vsel %vm2644_vm11, %v2642_v28, %v2643_v45 }
0x13f4   : > { %vm2646_vm8 = vcmp.eq.s32.totalorder %v5101_v10, %v5689_v47  ;;  %vm2647_vm5 = vcmp.eq.s32.totalorder %v5115_v19, %v5689_v47 }
0x13f5   : > { %v2790_v48 = vsel %vm2646_vm8, inf, %v2571_v5  ;;  %v2791_v49 = vsel %vm2647_vm5, inf, %v2572_v24 }
0x13f6   : > { %v2839_v50 = vsel %vm598_vm4, %v2790_v48, inf  ;;  %v2840_v53 = vsel %vm598_vm4, %v2791_v49, inf }
0x13f7   : > { %v2841_v21 = vmin.f32 %v2839_v50, %v2840_v53 }
0x13f9   : > { %v2842_v38 = vrot.slane %v2841_v21, 4 }
0x13fb   : > { %v2843_v52 = vmin.f32 %v2841_v21, %v2842_v38 }
0x13fd   : > { %v2844_v42 = vrot.slane %v2843_v52, 2 }
0x13ff   : > { %v2845_v30 = vmin.f32 %v2843_v52, %v2844_v42 }
0x1401   : > { %v2846_v44 = vrot.slane %v2845_v30, 1 }
0x1403   : > { %v2847_v54 = vmin.f32 %v2845_v30, %v2846_v44 }
0x1405   : > { %vm2848_vm12 = vcmp.eq.f32.partialorder %v2790_v48, %v2847_v54  ;;  %vm2849_vm0 = vcmp.eq.f32.partialorder %v2791_v49, %v2847_v54 }
0x1406   : > { %v2850_v14 = vsel %vm2848_vm12, %v5101_v10, 16  ;;  %v2851_v58 = vsel %vm2849_vm0, %v5115_v19, 16 }
0x1407   : > { %v2852_v59 = vsel %vm598_vm4, %v2850_v14, 2147483647  ;;  %v2853_v40 = vsel %vm598_vm4, %v2851_v58, 2147483647 }
0x1408   : > { %vm2854_vm13 = vcmp.lt.s32.totalorder %v2852_v59, %v2853_v40 }
0x1409   : > { %v2855_v60 = vsel %vm2854_vm13, %v2852_v59, %v2853_v40 }
0x140a   : > { %v2856_v57 = vrot.slane %v2855_v60, 4 }
0x140c   : > { %vm2857_vm14 = vcmp.lt.s32.totalorder %v2855_v60, %v2856_v57 }
0x140d   : > { %v2858_v23 = vsel %vm2857_vm14, %v2855_v60, %v2856_v57 }
0x140e   : > { %v2859_v39 = vrot.slane %v2858_v23, 2 }
0x1410   : > { %vm2860_vm3 = vcmp.lt.s32.totalorder %v2858_v23, %v2859_v39 }
0x1411   : > { %v2861_v56 = vsel %vm2860_vm3, %v2858_v23, %v2859_v39 }
0x1412   : > { %v2862_v61 = vrot.slane %v2861_v56, 1 }
0x1414   : > { %vm2863_vm15 = vcmp.lt.s32.totalorder %v2861_v56, %v2862_v61 }
0x1415   : > { %v5707_v62 = vsel %vm2863_vm15, %v2861_v56, %v2862_v61 }
0x1416   : > { %vm2865_vm11 = vcmp.eq.s32.totalorder %v5101_v10, %v5707_v62  ;;  %vm2866_vm12 = vcmp.eq.s32.totalorder %v5115_v19, %v5707_v62 }
0x1417   : > { %v2967_v51 = vsel %vm2865_vm11, inf, %v2790_v48  ;;  %v2968_v25 = vsel %vm2866_vm12, inf, %v2791_v49 }
0x1418   : > { %v3016_v0 = vsel %vm598_vm4, %v2967_v51, inf  ;;  %v3017_v1 = vsel %vm598_vm4, %v2968_v25, inf }
0x1419   : > { %v3018_v20 = vmin.f32 %v3016_v0, %v3017_v1 }
0x141b   : > { %v3019_v2 = vrot.slane %v3018_v20, 4 }
0x141d   : > { %v3020_v3 = vmin.f32 %v3018_v20, %v3019_v2 }
0x141f   : > { %v3021_v4 = vrot.slane %v3020_v3, 2 }
0x1421   : > { %v3022_v7 = vmin.f32 %v3020_v3, %v3021_v4 }
0x1423   : > { %v3023_v5 = vrot.slane %v3022_v7, 1 }
0x1425   : > { %v3024_v24 = vmin.f32 %v3022_v7, %v3023_v5  ;;  %v4250_v7 = vld [vmem:[%s6143_s6] ss:$0 sm:$0xff]  ;;  %v2432_v5 = vpop.f32.mrf.mxu1 }
0x1427   : > { %vm3025_vm0 = vcmp.eq.f32.partialorder %v2967_v51, %v3024_v24  ;;  %vm3026_vm13 = vcmp.eq.f32.partialorder %v2968_v25, %v3024_v24 }
0x1428   : > { %v3027_v11 = vsel %vm3025_vm0, %v5101_v10, 16  ;;  %v3028_v15 = vsel %vm3026_vm13, %v5115_v19, 16 }
0x1429   : > { %v3029_v16 = vsel %vm598_vm4, %v3027_v11, 2147483647  ;;  %v3030_v26 = vsel %vm598_vm4, %v3028_v15, 2147483647  ;;  %v5762_v11 = vadd.f32 %v4250_v7, %v5640_v18 }
0x142a   : > { %vm3031_vm14 = vcmp.lt.s32.totalorder %v3029_v16, %v3030_v26 }
0x142b   : > { %v5725_v27 = vsel %vm3031_vm14, %v3029_v16, %v3030_v26  ;;  %v5764_v16 = vadd.f32 %v4250_v7, %v2432_v5 }
0x143a   : > { %v2449_v29 = vpop.xlane.xlu1 %2448 }
0x143b   : > { %vm2451_vm3 = vcmp.eq.f32.partialorder %v5652_v55, %v2449_v29 }
0x143c   : > { %v2453_v31 = vsel %vm2451_vm3, %v5099_v8, 16  ;;  %v2446_v33 = vpop.xlane.xlu0 %2445 }
0x143d   : > { %v2469_v34 = vsel %vm598_vm4, %v2453_v31, 2147483647  ;;  %vm2450_vm15 = vcmp.eq.f32.partialorder %v5659_v63, %v2446_v33 }
0x143e   : > { %v2452_v35 = vsel %vm2450_vm15, %v5099_v8, 16  ;;  %v2471_v36 = vshra.s32 %v2469_v34, 16  ;;  %v2470_v43 = vand.u32 65535, %v2469_v34 }
0x143f   : > { %v2454_v37 = vsel %vm598_vm4, %v2452_v35, 2147483647 }
0x1440   : > { %v2473_v41 = vcvt.s32.f32 %v2471_v36  ;;  %v2456_v22 = vshra.s32 %v2454_v37, 16  ;;  %v2455_v17 = vand.u32 65535, %v2454_v37  ;;  %v2472_v45 = vcvt.s32.f32 %v2470_v43 }
0x1442   : > { %2474 = vmin.xlane.f32.xlu1 %v2473_v41  ;;  %v2458_v32 = vcvt.s32.f32 %v2456_v22  ;;  %v2457_v50 = vcvt.s32.f32 %v2455_v17 }
0x1444   : > { %2459 = vmin.xlane.f32.xlu0 %v2458_v32 }
0x14cb   : > { %v2475_v28 = vpop.xlane.xlu1 %2474 }
0x14cc   : > { %vm2476_vm0 = vcmp.eq.f32.partialorder %v2473_v41, %v2475_v28  ;;  %v2481_v21 = vcvt.f32.s32 %v2475_v28 }
0x14cd   : > { %v2460_v48 = vpop.xlane.xlu0 %2459  ;;  %v2477_v49 = vsel %vm2476_vm0, %v2472_v45, inf }
0x14ce   : > { %2478 = vmin.xlane.f32.xlu1 %v2477_v49  ;;  %vm2461_vm13 = vcmp.eq.f32.partialorder %v2458_v32, %v2460_v48  ;;  %v2466_v38 = vcvt.f32.s32 %v2460_v48  ;;  %v2482_v42 = vshll.u32 %v2481_v21, 16 }
0x14cf   : > { %v2462_v53 = vsel %vm2461_vm13, %v2457_v50, inf }
0x14d0   : > { %2463 = vmin.xlane.f32.xlu0 %v2462_v53  ;;  %v2467_v54 = vshll.u32 %v2466_v38, 16 }
0x1557   : > { %v2479_v52 = vpop.xlane.xlu1 %2478 }
0x1558   : > { %v2480_v30 = vcvt.f32.s32 %v2479_v52 }
0x1559   : > { %v2464_v44 = vpop.xlane.xlu0 %2463 }
0x155a   : > { %v2483_v14 = vadd.s32 %v2482_v42, %v2480_v30  ;;  %v2465_v58 = vcvt.f32.s32 %v2464_v44 }
0x155c   : > { %v2468_v59 = vadd.s32 %v2467_v54, %v2465_v58  ;;  %vm2485_vm14 = vcmp.eq.s32.totalorder %v5099_v8, %v2483_v14 }
0x155d   : > { %v5735_v40 = vsel %vm2485_vm14, inf, %v5652_v55  ;;  %v4252_v57 = vsel %vm2485_vm14, 1.0, %v4926_v6 }
0x155e   : > { %v2576_v60 = vsel %vm598_vm4, %v5735_v40, inf  ;;  %vm2484_vm3 = vcmp.eq.s32.totalorder %v5099_v8, %v2468_v59 }
0x155f   : > { %2577 = vmin.xlane.f32.xlu1 %v2576_v60  ;;  %v5742_v23 = vsel %vm2484_vm3, inf, %v5659_v63  ;;  %v4251_v39 = vsel %vm2484_vm3, 1.0, %v4926_v6 }
0x1560   : > { %v2573_v56 = vsel %vm598_vm4, %v5742_v23, inf  ;;  %v2490_v61 = vpack.c.bf16 %v4252_v57, %v4251_v39 }
0x1561   : > { %2574 = vmin.xlane.f32.xlu0 %v2573_v56 }
0x1562   : > { %4559 = vmatmul.mubr.msk.bf16.vlgmr.msra.gmra.mxu0 %vm598_vm4, %v2490_v61 }
0x1563   : > { %4563 = vmatpush3.bf16.msra.mxu0 %v5642_v46  ;;  %4564 = vmatprep.mubr.msk.bf16.mxu0 %vm4927_vm10, %v4926_v6 }
0x1564   : > { %4574 = vmatprep.subr.bf16.mxu0 %v4926_v6 }
0x15e8   : > { %v2578_v55 = vpop.xlane.xlu1 %2577 }
0x15e9   : > { %vm2580_vm15 = vcmp.eq.f32.partialorder %v5735_v40, %v2578_v55 }
0x15ea   : > { %v2582_v63 = vsel %vm2580_vm15, %v5099_v8, 16  ;;  %v2575_v51 = vpop.xlane.xlu0 %2574 }
0x15eb   : > { %v2598_v25 = vsel %vm598_vm4, %v2582_v63, 2147483647  ;;  %vm2579_vm0 = vcmp.eq.f32.partialorder %v5742_v23, %v2575_v51 }
0x15ec   : > { %v2581_v0 = vsel %vm2579_vm0, %v5099_v8, 16  ;;  %v2600_v1 = vshra.s32 %v2598_v25, 16  ;;  %v2599_v37 = vand.u32 65535, %v2598_v25 }
0x15ed   : > { %v2583_v20 = vsel %vm598_vm4, %v2581_v0, 2147483647 }
0x15ee   : > { %v2602_v2 = vcvt.s32.f32 %v2600_v1  ;;  %v2585_v3 = vshra.s32 %v2583_v20, 16  ;;  %v2584_v41 = vand.u32 65535, %v2583_v20  ;;  %v2601_v32 = vcvt.s32.f32 %v2599_v37 }
0x15f0   : > { %2603 = vmin.xlane.f32.xlu1 %v2602_v2  ;;  %v2587_v4 = vcvt.s32.f32 %v2585_v3  ;;  %v2586_v17 = vcvt.s32.f32 %v2584_v41 }
0x15f2   : > { %2588 = vmin.xlane.f32.xlu0 %v2587_v4 }
0x1622   : > { %v2559_v24 = vpop.f32.mrf.mxu0 }
0x1623   : > { %v2560_v26 = vadd.f32 %v2559_v24, %v5762_v11 }
0x1624   : > { %v4560_v15 = vpop.f32.mrf.mxu0 }
0x1625   : > { %v2566_v34 = vmax.f32 %v2560_v26, 0.0 }
0x1626   : > { %v2562_v29 = vpop.f32.mrf.mxu0 }
0x1627   : > { %v2563_v31 = vadd.f32 %v2562_v29, %v5764_v16 }
0x1628   : > { %v4561_v33 = vpop.f32.mrf.mxu0 }
0x1629   : > { %v2567_v35 = vmax.f32 %v2563_v31, 0.0  ;;  %v4258_v33 = vsel %vm2646_vm8, 1.0, %v4926_v6 }
0x162b   : > { %v2568_v36 = vpack.c.bf16 %v2567_v35, %v2566_v34  ;;  %v4259_v34 = vsel %vm2647_vm5, 1.0, %v4926_v6 }
0x162c   : > { %v2652_v37 = vpack.c.bf16 %v4259_v34, %v4258_v33  ;;  %v4265_v34 = vsel %vm2865_vm11, 1.0, %v4926_v6 }
0x1679   : > { %v2604_v22 = vpop.xlane.xlu1 %2603 }
0x167a   : > { %vm2605_vm13 = vcmp.eq.f32.partialorder %v2602_v2, %v2604_v22  ;;  %v2610_v45 = vcvt.f32.s32 %v2604_v22 }
0x167b   : > { %v2589_v43 = vpop.xlane.xlu0 %2588  ;;  %v2606_v18 = vsel %vm2605_vm13, %v2601_v32, inf }
0x167c   : > { %2607 = vmin.xlane.f32.xlu1 %v2606_v18  ;;  %vm2590_vm14 = vcmp.eq.f32.partialorder %v2587_v4, %v2589_v43  ;;  %v2595_v48 = vcvt.f32.s32 %v2589_v43  ;;  %v2611_v50 = vshll.u32 %v2610_v45, 16 }
0x167d   : > { %v2591_v28 = vsel %vm2590_vm14, %v2586_v17, inf }
0x167e   : > { %2592 = vmin.xlane.f32.xlu0 %v2591_v28  ;;  %v2596_v38 = vshll.u32 %v2595_v48, 16 }
0x1705   : > { %v2608_v49 = vpop.xlane.xlu1 %2607 }
0x1706   : > { %v2609_v53 = vcvt.f32.s32 %v2608_v49 }
0x1707   : > { %v2593_v21 = vpop.xlane.xlu0 %2592 }
0x1708   : > { %v2612_v52 = vadd.s32 %v2611_v50, %v2609_v53  ;;  %v2594_v42 = vcvt.f32.s32 %v2593_v21 }
0x170a   : > { %v2597_v30 = vadd.s32 %v2596_v38, %v2594_v42  ;;  %vm2614_vm3 = vcmp.eq.s32.totalorder %v5099_v8, %v2612_v52 }
0x170b   : > { %v5770_v44 = vsel %vm2614_vm3, inf, %v5735_v40  ;;  %v4257_v14 = vsel %vm2614_vm3, 1.0, %v4926_v6  ;;  %v4253_v40 = vsel %vm2515_vm7, 1.0, %v4926_v6 }
0x170c   : > { %v2795_v54 = vsel %vm598_vm4, %v5770_v44, inf  ;;  %vm2613_vm15 = vcmp.eq.s32.totalorder %v5099_v8, %v2597_v30 }
0x170d   : > { %2796 = vmin.xlane.f32.xlu1 %v2795_v54  ;;  %v5777_v58 = vsel %vm2613_vm15, inf, %v5742_v23  ;;  %v4256_v59 = vsel %vm2613_vm15, 1.0, %v4926_v6  ;;  %v4254_v23 = vsel %vm2516_vm6, 1.0, %v4926_v6 }
0x170e   : > { %v2792_v60 = vsel %vm598_vm4, %v5777_v58, inf  ;;  %v2619_v57 = vpack.c.bf16 %v4257_v14, %v4256_v59  ;;  %v2521_v39 = vpack.c.bf16 %v4254_v23, %v4253_v40 }
0x170f   : > { %2793 = vmin.xlane.f32.xlu0 %v2792_v60 }
0x1710   : > { %4565 = vmatmul.mubr.msk.bf16.vlgmr.msra.gmra.mxu0 %vm598_vm4, %v2619_v57 }
0x1711   : > { %4575 = vmatpush3.bf16.msra.mxu0 %v2568_v36  ;;  %4576 = vmatprep.mubr.msk.bf16.mxu0 %vm4927_vm10, %v4926_v6 }
0x1712   : > { %4586 = vmatprep.subr.bf16.mxu0 %v4926_v6 }
0x1718   : > { %4577 = vmatmul.mubr.msk.bf16.vlgmr.msra.gmra.mxu0 %vm598_vm4, %v2521_v39 }
0x1719   : > { %4588 = vmatprep.mubr.msk.bf16.mxu0 %vm4927_vm10, %v4926_v6 }
0x1796   : > { %v2797_v56 = vpop.xlane.xlu1 %2796 }
0x1797   : > { %vm2799_vm0 = vcmp.eq.f32.partialorder %v5770_v44, %v2797_v56 }
0x1798   : > { %v2801_v61 = vsel %vm2799_vm0, %v5099_v8, 16  ;;  %v2794_v55 = vpop.xlane.xlu0 %2793 }
0x1799   : > { %v2817_v63 = vsel %vm598_vm4, %v2801_v61, 2147483647  ;;  %vm2798_vm7 = vcmp.eq.f32.partialorder %v5777_v58, %v2794_v55 }
0x179a   : > { %v2800_v51 = vsel %vm2798_vm7, %v5099_v8, 16  ;;  %v2819_v9 = vshra.s32 %v2817_v63, 16  ;;  %v2818_v22 = vand.u32 65535, %v2817_v63 }
0x179b   : > { %v2802_v25 = vsel %vm598_vm4, %v2800_v51, 2147483647 }
0x179c   : > { %v2821_v0 = vcvt.s32.f32 %v2819_v9  ;;  %v2804_v1 = vshra.s32 %v2802_v25, 16  ;;  %v2803_v47 = vand.u32 65535, %v2802_v25  ;;  %v2820_v43 = vcvt.s32.f32 %v2818_v22 }
0x179e   : > { %2822 = vmin.xlane.f32.xlu1 %v2821_v0  ;;  %v2806_v20 = vcvt.s32.f32 %v2804_v1  ;;  %v2805_v28 = vcvt.s32.f32 %v2803_v47 }
0x17a0   : > { %2807 = vmin.xlane.f32.xlu0 %v2806_v20 }
0x17d0   : > { %v2690_v2 = vpop.f32.mrf.mxu0 }
0x17d1   : > { %v2691_v4 = vadd.f32 %v2690_v2, %v5762_v11 }
0x17d2   : > { %v4566_v3 = vpop.f32.mrf.mxu0 }
0x17d3   : > { %v2697_v15 = vmax.f32 %v2691_v4, 0.0 }
0x17d4   : > { %v2693_v7 = vpop.f32.mrf.mxu0 }
0x17d5   : > { %v2694_v5 = vadd.f32 %v2693_v7, %v5764_v16 }
0x17d6   : > { %v4567_v24 = vpop.f32.mrf.mxu0 }
0x17d7   : > { %v2698_v26 = vmax.f32 %v2694_v5, 0.0 }
0x17d8   : > { %v5805_v29 = vpop.f32.mrf.mxu0 }
0x17d9   : > { %v2699_v31 = vpack.c.bf16 %v2698_v26, %v2697_v15 }
0x17da   : > { %v4578_v35 = vpop.f32.mrf.mxu0 }
0x17db   : > { %4569 = vmatpush3.bf16.msra.mxu1 %v2699_v31  ;;  %v4266_v35 = vsel %vm2866_vm12, 1.0, %v4926_v6 }
0x17dc   : > { %v5815_v36 = vpop.f32.mrf.mxu0  ;;  %4580 = vmatprep.subr.bf16.mxu1 %v4926_v6 }
0x17de   : > { %4571 = vmatmul.mubr.msk.bf16.vlgmr.msra.gmra.mxu1 %vm598_vm4, %v2652_v37  ;;  %v4579_v41 = vpop.f32.mrf.mxu0  ;;  %v2871_v37 = vpack.c.bf16 %v4266_v35, %v4265_v34  ;;  %v3149_v34 = vld [vmem:[#allocation7 + $0x38] sm:$0xff]  ;;  %v3148_v35 = vld [vmem:[#allocation7 + $0x30] sm:$0xff] }
0x17df   : > { %4581 = vmatpush3.bf16.msra.mxu1 %v5642_v46  ;;  %4582 = vmatprep.mubr.msk.bf16.mxu1 %vm4927_vm10, %v4926_v6 }
0x17e0   : > { %4592 = vmatprep.subr.bf16.mxu1 %v4926_v6 }
0x1827   : > { %v2823_v32 = vpop.xlane.xlu1 %2822 }
0x1828   : > { %vm2824_vm6 = vcmp.eq.f32.partialorder %v2821_v0, %v2823_v32  ;;  %v2829_v21 = vcvt.f32.s32 %v2823_v32 }
0x1829   : > { %v2808_v18 = vpop.xlane.xlu0 %2807  ;;  %v2825_v17 = vsel %vm2824_vm6, %v2820_v43, inf }
0x182a   : > { %2826 = vmin.xlane.f32.xlu1 %v2825_v17  ;;  %vm2809_vm8 = vcmp.eq.f32.partialorder %v2806_v20, %v2808_v18  ;;  %v2814_v38 = vcvt.f32.s32 %v2808_v18  ;;  %v2830_v42 = vshll.u32 %v2829_v21, 16 }
0x182b   : > { %v2810_v45 = vsel %vm2809_vm8, %v2805_v28, inf }
0x182c   : > { %2811 = vmin.xlane.f32.xlu0 %v2810_v45  ;;  %v2815_v14 = vshll.u32 %v2814_v38, 16 }
0x189e   : > { %v5823_v48 = vpop.f32.mrf.mxu1 }
0x189f   : > { %v2782_v28 = vadd.f32 %v5805_v29, %v5823_v48 }
0x18a0   : > { %v4572_v49 = vpop.f32.mrf.mxu1 }
0x18a2   : > { %v5825_v50 = vpop.f32.mrf.mxu1 }
0x18a3   : > { %v2785_v21 = vadd.f32 %v5815_v36, %v5825_v50 }
0x18a4   : > { %v4573_v53 = vpop.f32.mrf.mxu1 }
0x18b3   : > { %v2827_v52 = vpop.xlane.xlu1 %2826 }
0x18b4   : > { %v2828_v30 = vcvt.f32.s32 %v2827_v52 }
0x18b5   : > { %v2812_v54 = vpop.xlane.xlu0 %2811 }
0x18b6   : > { %v2831_v59 = vadd.s32 %v2830_v42, %v2828_v30  ;;  %v2813_v60 = vcvt.f32.s32 %v2812_v54 }
0x18b8   : > { %v2816_v57 = vadd.s32 %v2815_v14, %v2813_v60  ;;  %vm2833_vm5 = vcmp.eq.s32.totalorder %v5099_v8, %v2831_v59 }
0x18b9   : > { %v2966_v40 = vsel %vm2833_vm5, inf, %v5770_v44  ;;  %v4264_v39 = vsel %vm2833_vm5, 1.0, %v4926_v6 }
0x18ba   : > { %v2972_v23 = vsel %vm598_vm4, %v2966_v40, inf  ;;  %vm2832_vm13 = vcmp.eq.s32.totalorder %v5099_v8, %v2816_v57 }
0x18bb   : > { %2973 = vmin.xlane.f32.xlu1 %v2972_v23  ;;  %v2965_v56 = vsel %vm2832_vm13, inf, %v5777_v58  ;;  %v4263_v61 = vsel %vm2832_vm13, 1.0, %v4926_v6 }
0x18bc   : > { %v2969_v55 = vsel %vm598_vm4, %v2965_v56, inf  ;;  %v2838_v63 = vpack.c.bf16 %v4264_v39, %v4263_v61 }
0x18bd   : > { %2970 = vmin.xlane.f32.xlu0 %v2969_v55 }
0x18be   : > { %4583 = vmatmul.mubr.msk.bf16.vlgmr.msra.gmra.mxu1 %vm598_vm4, %v2838_v63 }
0x18bf   : > { %4593 = vmatpush3.bf16.msra.mxu1 %v5642_v46  ;;  %4594 = vmatprep.mubr.msk.bf16.mxu1 %vm4927_vm10, %v4926_v6 }
0x1944   : > { %v2974_v44 = vpop.xlane.xlu1 %2973 }
0x1945   : > { %vm2976_vm14 = vcmp.eq.f32.partialorder %v2966_v40, %v2974_v44 }
0x1946   : > { %v2978_v51 = vsel %vm2976_vm14, %v5099_v8, 16  ;;  %v2971_v9 = vpop.xlane.xlu0 %2970 }
0x1947   : > { %v2994_v58 = vsel %vm598_vm4, %v2978_v51, 2147483647  ;;  %vm2975_vm3 = vcmp.eq.f32.partialorder %v2965_v56, %v2971_v9  ;;  %v3033_v56 = vrot.slane %v5725_v27, 4 }
0x1948   : > { %v2977_v25 = vsel %vm2975_vm3, %v5099_v8, 16  ;;  %v2996_v0 = vshra.s32 %v2994_v58, 16  ;;  %v2995_v41 = vand.u32 65535, %v2994_v58 }
0x1949   : > { %v2979_v1 = vsel %vm598_vm4, %v2977_v25, 2147483647  ;;  %vm3034_vm7 = vcmp.lt.s32.totalorder %v5725_v27, %v3033_v56 }
0x194a   : > { %v2998_v20 = vcvt.s32.f32 %v2996_v0  ;;  %v2981_v2 = vshra.s32 %v2979_v1, 16  ;;  %v2980_v22 = vand.u32 65535, %v2979_v1  ;;  %v2997_v32 = vcvt.s32.f32 %v2995_v41  ;;  %v3146_v41 = vld [vmem:[#allocation7 + $0x20] sm:$0xff] }
0x194b   : > { %v3035_v61 = vsel %vm3034_vm7, %v5725_v27, %v3033_v56 }
0x194c   : > { %2999 = vmin.xlane.f32.xlu1 %v2998_v20  ;;  %v2983_v46 = vcvt.s32.f32 %v2981_v2  ;;  %v2982_v17 = vcvt.s32.f32 %v2980_v22  ;;  %v3036_v55 = vrot.slane %v3035_v61, 2  ;;  %v3145_v22 = vld [vmem:[#allocation7 + $0x18] sm:$0xff] }
0x194e   : > { %2984 = vmin.xlane.f32.xlu0 %v2983_v46  ;;  %vm3037_vm6 = vcmp.lt.s32.totalorder %v3035_v61, %v3036_v55 }
0x194f   : > { %v3038_v63 = vsel %vm3037_vm6, %v3035_v61, %v3036_v55 }
0x1950   : > { %v3039_v44 = vrot.slane %v3038_v63, 1 }
0x1952   : > { %vm3040_vm8 = vcmp.lt.s32.totalorder %v3038_v63, %v3039_v44 }
0x1953   : > { %v3041_v25 = vsel %vm3040_vm8, %v3038_v63, %v3039_v44 }
0x1954   : > { %vm3042_vm5 = vcmp.eq.s32.totalorder %v5101_v10, %v3041_v25  ;;  %vm3043_vm13 = vcmp.eq.s32.totalorder %v5115_v19, %v3041_v25 }
0x197e   : > { %v2909_v3 = vpop.f32.mrf.mxu1 }
0x197f   : > { %v2910_v7 = vadd.f32 %v2909_v3, %v5762_v11  ;;  %v4271_v3 = vsel %vm3042_vm5, 1.0, %v4926_v6 }
0x1980   : > { %v4584_v4 = vpop.f32.mrf.mxu1 }
0x1981   : > { %v2916_v26 = vmax.f32 %v2910_v7, 0.0  ;;  %v4272_v4 = vsel %vm3043_vm13, 1.0, %v4926_v6  ;;  %v3157_v7 = vld [vmem:[#allocation7 + $0x78] sm:$0xff] }
0x1982   : > { %v2912_v5 = vpop.f32.mrf.mxu1 }
0x1983   : > { %v2913_v24 = vadd.f32 %v2912_v5, %v5764_v16  ;;  %v3048_v5 = vpack.c.bf16 %v4272_v4, %v4271_v3 }
0x1984   : > { %v4585_v15 = vpop.f32.mrf.mxu1 }
0x1985   : > { %v2917_v31 = vmax.f32 %v2913_v24, 0.0  ;;  %v3154_v24 = vld [vmem:[#allocation7 + $0x60] sm:$0xff]  ;;  %v3153_v15 = vld [vmem:[#allocation7 + $0x58] sm:$0xff] }
0x1987   : > { %v2918_v33 = vpack.c.bf16 %v2917_v31, %v2916_v26  ;;  %v3152_v26 = vld [vmem:[#allocation7 + $0x50] sm:$0xff]  ;;  %v3151_v31 = vld [vmem:[#allocation7 + $0x48] sm:$0xff] }
0x1989   : > { %4587 = vmatpush3.bf16.msra.mxu0 %v2918_v33  ;;  %v3150_v33 = vld [vmem:[#allocation7 + $0x40] sm:$0xff] }
0x198a   : > { %4598 = vmatprep.subr.bf16.mxu0 %v4926_v6 }
0x198c   : > { %4589 = vmatmul.mubr.msk.bf16.vlgmr.msra.gmra.mxu0 %vm598_vm4, %v2871_v37  ;;  %v3147_v37 = vld [vmem:[#allocation7 + $0x28] sm:$0xff] }
0x198d   : > { %4600 = vmatprep.mubr.msk.bf16.mxu0 %vm4927_vm10, %v4926_v6 }
0x19d5   : > { %v3000_v47 = vpop.xlane.xlu1 %2999 }
0x19d6   : > { %vm3001_vm15 = vcmp.eq.f32.partialorder %v2998_v20, %v3000_v47  ;;  %v3006_v30 = vcvt.f32.s32 %v3000_v47  ;;  %v3144_v47 = vld [vmem:[#allocation7 + $0x10] sm:$0xff] }
0x19d7   : > { %v2985_v43 = vpop.xlane.xlu0 %2984  ;;  %v3002_v18 = vsel %vm3001_vm15, %v2997_v32, inf  ;;  %v3143_v32 = vld [vmem:[#allocation7 + $0x8] sm:$0xff] }
0x19d8   : > { %3003 = vmin.xlane.f32.xlu1 %v3002_v18  ;;  %vm2986_vm11 = vcmp.eq.f32.partialorder %v2983_v46, %v2985_v43  ;;  %v2991_v54 = vcvt.f32.s32 %v2985_v43  ;;  %v3007_v59 = vshll.u32 %v3006_v30, 16  ;;  %v3142_v43 = vld [vmem:[#allocation7] sm:$0xff] }
0x19d9   : > { %v2987_v62 = vsel %vm2986_vm11, %v2982_v17, inf }
0x19da   : > { %2988 = vmin.xlane.f32.xlu0 %v2987_v62  ;;  %v2992_v40 = vshll.u32 %v2991_v54, 16 }
0x1a4c   : > { %v2956_v45 = vpop.f32.mrf.mxu0 }
0x1a4d   : > { %v5859_v49 = vadd.f32 %v2956_v45, %v2782_v28 }
0x1a4e   : > { %v4590_v53 = vpop.f32.mrf.mxu0 }
0x1a50   : > { %v2959_v38 = vpop.f32.mrf.mxu0 }
0x1a51   : > { %v5863_v52 = vadd.f32 %v2959_v38, %v2785_v21 }
0x1a52   : > { %v4591_v42 = vpop.f32.mrf.mxu0 }
0x1a61   : > { %v3004_v14 = vpop.xlane.xlu1 %3003 }
0x1a62   : > { %v3005_v60 = vcvt.f32.s32 %v3004_v14 }
0x1a63   : > { %v2989_v57 = vpop.xlane.xlu0 %2988 }
0x1a64   : > { %v3008_v23 = vadd.s32 %v3007_v59, %v3005_v60  ;;  %v2990_v29 = vcvt.f32.s32 %v2989_v57 }
0x1a66   : > { %vm3010_vm12 = vcmp.eq.s32.totalorder %v5099_v8, %v3008_v23  ;;  %v2993_v48 = vadd.s32 %v2992_v40, %v2990_v29 }
0x1a67   : > { %v4270_v36 = vsel %vm3010_vm12, 1.0, %v4926_v6 }
0x1a68   : > { %vm3009_vm0 = vcmp.eq.s32.totalorder %v5099_v8, %v2993_v48 }
0x1a69   : > { %v4269_v50 = vsel %vm3009_vm0, 1.0, %v4926_v6 }
0x1a6a   : > { %v3015_v39 = vpack.c.bf16 %v4270_v36, %v4269_v50 }
0x1a6c   : > { %4595 = vmatmul.mubr.msk.bf16.vlgmr.msra.gmra.mxu1 %vm598_vm4, %v3015_v39 }
0x1b2c   : > { %v3086_v51 = vpop.f32.mrf.mxu1 }
0x1b2d   : > { %v3087_v58 = vadd.f32 %v3086_v51, %v5762_v11  ;;  %v3156_v11 = vld [vmem:[#allocation7 + $0x70] sm:$0xff] }
0x1b2e   : > { %v4596_v9 = vpop.f32.mrf.mxu1 }
0x1b2f   : > { %v3093_v2 = vmax.f32 %v3087_v58, 0.0 }
0x1b30   : > { %v3089_v0 = vpop.f32.mrf.mxu1 }
0x1b31   : > { %v3090_v1 = vadd.f32 %v3089_v0, %v5764_v16  ;;  %v3155_v16 = vld [vmem:[#allocation7 + $0x68] sm:$0xff] }
0x1b32   : > { %v4597_v20 = vpop.f32.mrf.mxu1 }
0x1b33   : > { %v3094_v27 = vmax.f32 %v3090_v1, 0.0 }
0x1b35   : > { %v3095_v46 = vpack.c.bf16 %v3094_v27, %v3093_v2 }
0x1b37   : > { %4599 = vmatpush3.bf16.msra.mxu0 %v3095_v46 }
0x1b38   : > { %4611 = vmatprep.subr.mxu0 %v3157_v7 }
0x1b3a   : > { %4601 = vmatmul.mubr.msk.bf16.vlgmr.msra.gmra.mxu0 %vm598_vm4, %v3048_v5 }
0x1b3b   : > { %4612 = vmatpush3.msra.mxu0 %v3157_v7 }
0x1b3c   : > { %4613 = vmatprep.subr.mxu0 %v3156_v11 }
0x1b3d   : > { %4614 = vmatpush3.msra.mxu0 %v3156_v11 }
0x1b3e   : > { %4615 = vmatprep.subr.mxu0 %v3155_v16 }
0x1b3f   : > { %4616 = vmatpush3.msra.mxu0 %v3155_v16 }
0x1b40   : > { %4617 = vmatprep.subr.mxu0 %v3154_v24 }
0x1b41   : > { %4618 = vmatpush3.msra.mxu0 %v3154_v24 }
0x1b42   : > { %4619 = vmatprep.subr.mxu0 %v3153_v15 }
0x1b43   : > { %4620 = vmatpush3.msra.mxu0 %v3153_v15 }
0x1b44   : > { %4621 = vmatprep.subr.mxu0 %v3152_v26 }
0x1b45   : > { %4622 = vmatpush3.msra.mxu0 %v3152_v26 }
0x1b46   : > { %4623 = vmatprep.subr.mxu0 %v3151_v31 }
0x1b47   : > { %4624 = vmatpush3.msra.mxu0 %v3151_v31 }
0x1b48   : > { %4625 = vmatprep.subr.mxu0 %v3150_v33 }
0x1b49   : > { %4626 = vmatpush3.msra.mxu0 %v3150_v33 }
0x1b4a   : > { %4627 = vmatprep.subr.mxu0 %v3149_v34 }
0x1b4b   : > { %4628 = vmatpush3.msra.mxu0 %v3149_v34 }
0x1b4c   : > { %4629 = vmatprep.subr.mxu0 %v3148_v35 }
0x1b4d   : > { %4630 = vmatpush3.msra.mxu0 %v3148_v35 }
0x1b4e   : > { %4631 = vmatprep.subr.mxu0 %v3147_v37 }
0x1b4f   : > { %4632 = vmatpush3.msra.mxu0 %v3147_v37 }
0x1b50   : > { %4633 = vmatprep.subr.mxu0 %v3146_v41 }
0x1b51   : > { %4634 = vmatpush3.msra.mxu0 %v3146_v41 }
0x1b52   : > { %4635 = vmatprep.subr.mxu0 %v3145_v22 }
0x1b53   : > { %4636 = vmatpush3.msra.mxu0 %v3145_v22 }
0x1b54   : > { %4637 = vmatprep.subr.mxu0 %v3144_v47 }
0x1b55   : > { %4638 = vmatpush3.msra.mxu0 %v3144_v47 }
0x1b56   : > { %4639 = vmatprep.subr.mxu0 %v3143_v32 }
0x1b57   : > { %4640 = vmatpush3.msra.mxu0 %v3143_v32 }
0x1b58   : > { %4641 = vmatprep.subr.mxu0 %v3142_v43 }
0x1b59   : > { %4642 = vmatpush3.msra.mxu0 %v3142_v43 }
0x1b5a   : > { %4670 = vmatprep.subr.bf16.mxu0 %v4926_v6 }
0x1bfa   : > { %v3133_v18 = vpop.f32.mrf.mxu0 }
0x1bfb   : > { %v3140_v17 = vadd.f32 %v3133_v18, %v5859_v49 }
0x1bfc   : > { %v4602_v62 = vpop.f32.mrf.mxu0 }
0x1bfd   : > { %4608 = vmatprep.mubr.f32.mxu1 %v3140_v17  ;;  %4643 = vmatprep.mubr.f32.mxu0 %v3140_v17  ;;  %v3234_v28 = vmul.f32 %v3140_v17, %v3140_v17 }
0x1bfe   : > { %v3136_v45 = vpop.f32.mrf.mxu0 }
0x1bff   : > { %v3141_v53 = vadd.f32 %v3136_v45, %v5863_v52  ;;  %3236 = vadd.xlane.f32.xlu0 %v3234_v28 }
0x1c00   : > { %v4603_v21 = vpop.f32.mrf.mxu0 }
0x1c01   : > { %4604 = vmatprep.subr.mxu1 %v3141_v53  ;;  %4644 = vmatmul.mubr.f32.vlgmr.msra.gmra.mxu0 %v3141_v53  ;;  %v3235_v38 = vmul.f32 %v3141_v53, %v3141_v53 }
0x1c02   : > { %4605 = vmatpush3.xpose.msra.mxu1 %v3141_v53  ;;  %4672 = vmatprep.mubr.msk.bf16.mxu0 %vm4927_vm10, %v4926_v6 }
0x1c03   : > { %3238 = vadd.xlane.f32.xlu1 %v3235_v38  ;;  %4606 = vmatprep.subr.mxu1 %v3140_v17 }
0x1c06   : > { %4607 = vmatpush3.xpose.msra.mxu1 %v3140_v17 }
0x1c07   : > { %4646 = vmatprep.subr.bf16.mxu1 %v4926_v6 }
0x1c09   : > { %4609 = vmatmul.mubr.f32.vlgmr.msra.gmra.mxu1 %v3141_v53 }
0x1c0a   : > { %4648 = vmatprep.mubr.msk.bf16.mxu1 %vm4927_vm10, %v4926_v6 }
0x1c88   : > { %v3237_v42 = vpop.xlane.xlu0 %3236 }
0x1c89   : > { %v3245_v59 = vrot.slane %v3237_v42, %v5106_v12 }
0x1c8c   : > { %v3239_v49 = vpop.xlane.xlu1 %3238 }
0x1c8d   : > { %v3249_v30 = vrot.slane %v3239_v49, %v5109_v13 }
0x1c8f   : > { %v3250_v60 = vsel %vm482_vm1, %v3249_v30, %v3245_v59  ;;  %vm6159_vm1 = vcmp.eq.s32.totalorder %v5101_v10, %v5099_v8 }
0x1c90   : > { %v3259_v13 = vadd.f32 %v3250_v60, %v3239_v49  ;;  %v3258_v29 = vadd.f32 %v3250_v60, %v3237_v42 }
0x1cc1   : > { %v5888_v52 = vpop.f32.mrf.mxu0 }
0x1cc3   : > { %v5891_v54 = vpop.f32.mrf.mxu0 }
0x1cc4   : > { %v5895_v14 = vpack.c.bf16 %v5888_v52, %v5891_v54 }
0x1cc6   : > { %4647 = vmatpush3.bf16.msra.mxu1 %v5895_v14  ;;  %4671 = vmatpush3.bf16.msra.mxu0 %v5895_v14 }
0x1cc7   : > { %4652 = vmatprep.subr.bf16.mxu1 %v4926_v6  ;;  %4682 = vmatprep.subr.bf16.mxu0 %v4926_v6 }
0x1cc9   : > { %v4610_v57 = vpop.f32.mrf.mxu1 }
0x1cca   : > { %v3261_v40 = vmul.f32 2.0, %v4610_v57 }
0x1ccb   : > { %v3225_v23 = vpop.f32.mrf.mxu1 }
0x1ccc   : > { %v3263_v48 = vsub.f32 %v3259_v13, %v3261_v40  ;;  %v3260_v36 = vmul.f32 2.0, %v3225_v23 }
0x1cce   : > { %v3265_v50 = vmax.f32 %v3263_v48, 0.0  ;;  %v3262_v39 = vsub.f32 %v3258_v29, %v3260_v36 }
0x1cd0   : > { %v5906_v12 = vsel %vm509_vm2, inf, %v3265_v50  ;;  %v3264_v56 = vmax.f32 %v3262_v39, 0.0 }
0x1cd1   : > { %v3357_v61 = vsel %vm598_vm4, %v5906_v12, inf }
0x1cd2   : > { %v5913_v55 = vsel %vm6159_vm1, inf, %v3264_v56  ;;  %3358 = vmin.xlane.f32.xlu1 %v3357_v61 }
0x1cd3   : > { %v3354_v63 = vsel %vm598_vm4, %v5913_v55, inf }
0x1cd4   : > { %3355 = vmin.xlane.f32.xlu0 %v3354_v63  ;;  %v5917_v44 = vmin.f32 %v3354_v63, %v3357_v61 }
0x1d5b   : > { %v3359_v51 = vpop.xlane.xlu1 %3358 }
0x1d5c   : > { %vm3361_vm2 = vcmp.eq.f32.partialorder %v5906_v12, %v3359_v51 }
0x1d5d   : > { %v3363_v9 = vsel %vm3361_vm2, %v5099_v8, 16  ;;  %v3356_v58 = vpop.xlane.xlu0 %3355 }
0x1d5e   : > { %v3379_v25 = vsel %vm598_vm4, %v3363_v9, 2147483647  ;;  %vm3360_vm14 = vcmp.eq.f32.partialorder %v5913_v55, %v3356_v58 }
0x1d5f   : > { %v3362_v0 = vsel %vm3360_vm14, %v5099_v8, 16  ;;  %v3381_v1 = vshra.s32 %v3379_v25, 16  ;;  %v3380_v3 = vand.u32 65535, %v3379_v25 }
0x1d60   : > { %v3364_v20 = vsel %vm598_vm4, %v3362_v0, 2147483647 }
0x1d61   : > { %v3383_v2 = vcvt.s32.f32 %v3381_v1  ;;  %v3366_v27 = vshra.s32 %v3364_v20, 16  ;;  %v3365_v4 = vand.u32 65535, %v3364_v20  ;;  %v3382_v5 = vcvt.s32.f32 %v3380_v3 }
0x1d63   : > { %3384 = vmin.xlane.f32.xlu1 %v3383_v2  ;;  %v3368_v46 = vcvt.s32.f32 %v3366_v27  ;;  %v3367_v24 = vcvt.s32.f32 %v3365_v4 }
0x1d65   : > { %3369 = vmin.xlane.f32.xlu0 %v3368_v46 }
0x1dec   : > { %v3385_v7 = vpop.xlane.xlu1 %3384 }
0x1ded   : > { %vm3386_vm3 = vcmp.eq.f32.partialorder %v3383_v2, %v3385_v7  ;;  %v3391_v26 = vcvt.f32.s32 %v3385_v7 }
0x1dee   : > { %v3370_v11 = vpop.xlane.xlu0 %3369  ;;  %v3387_v16 = vsel %vm3386_vm3, %v3382_v5, inf }
0x1def   : > { %3388 = vmin.xlane.f32.xlu1 %v3387_v16  ;;  %vm3371_vm15 = vcmp.eq.f32.partialorder %v3368_v46, %v3370_v11  ;;  %v3376_v31 = vcvt.f32.s32 %v3370_v11  ;;  %v3392_v34 = vshll.u32 %v3391_v26, 16 }
0x1df0   : > { %v3372_v15 = vsel %vm3371_vm15, %v3367_v24, inf }
0x1df1   : > { %3373 = vmin.xlane.f32.xlu0 %v3372_v15  ;;  %v3377_v41 = vshll.u32 %v3376_v31, 16 }
0x1e78   : > { %v3389_v33 = vpop.xlane.xlu1 %3388 }
0x1e79   : > { %v3390_v35 = vcvt.f32.s32 %v3389_v33 }
0x1e7a   : > { %v3374_v37 = vpop.xlane.xlu0 %3373 }
0x1e7b   : > { %v3393_v22 = vadd.s32 %v3392_v34, %v3390_v35  ;;  %v3375_v47 = vcvt.f32.s32 %v3374_v37 }
0x1e7d   : > { %v3378_v32 = vadd.s32 %v3377_v41, %v3375_v47  ;;  %vm3395_vm11 = vcmp.eq.s32.totalorder %v5099_v8, %v3393_v22 }
0x1e7e   : > { %v3488_v43 = vsel %vm3395_vm11, inf, %v5906_v12  ;;  %v4277_v17 = vsel %vm3395_vm11, 1.0, %v4926_v6 }
0x1e7f   : > { %v3494_v18 = vsel %vm598_vm4, %v3488_v43, inf  ;;  %vm3394_vm12 = vcmp.eq.s32.totalorder %v5099_v8, %v3378_v32 }
0x1e80   : > { %3495 = vmin.xlane.f32.xlu1 %v3494_v18  ;;  %v3487_v62 = vsel %vm3394_vm12, inf, %v5913_v55  ;;  %v4276_v28 = vsel %vm3394_vm12, 1.0, %v4926_v6 }
0x1e81   : > { %v3491_v45 = vsel %vm598_vm4, %v3487_v62, inf  ;;  %v3400_v53 = vpack.c.bf16 %v4277_v17, %v4276_v28 }
0x1e82   : > { %3492 = vmin.xlane.f32.xlu0 %v3491_v45 }
0x1e83   : > { %4649 = vmatmul.mubr.msk.bf16.vlgmr.msra.gmra.mxu1 %vm598_vm4, %v3400_v53 }
0x1e84   : > { %4653 = vmatpush3.bf16.msra.mxu1 %v5895_v14  ;;  %4654 = vmatprep.mubr.msk.bf16.mxu1 %vm4927_vm10, %v4926_v6 }
0x1e85   : > { %4658 = vmatprep.subr.bf16.mxu1 %v4926_v6 }
0x1f09   : > { %v3496_v21 = vpop.xlane.xlu1 %3495 }
0x1f0a   : > { %vm3498_vm0 = vcmp.eq.f32.partialorder %v3488_v43, %v3496_v21 }
0x1f0b   : > { %v3500_v38 = vsel %vm3498_vm0, %v5099_v8, 16  ;;  %v3493_v49 = vpop.xlane.xlu0 %3492 }
0x1f0c   : > { %v3516_v42 = vsel %vm598_vm4, %v3500_v38, 2147483647  ;;  %vm3497_vm7 = vcmp.eq.f32.partialorder %v3487_v62, %v3493_v49 }
0x1f0d   : > { %v3499_v30 = vsel %vm3497_vm7, %v5099_v8, 16  ;;  %v3518_v59 = vshra.s32 %v3516_v42, 16  ;;  %v3517_v50 = vand.u32 65535, %v3516_v42 }
0x1f0e   : > { %v3501_v60 = vsel %vm598_vm4, %v3499_v30, 2147483647 }
0x1f0f   : > { %v3520_v57 = vcvt.s32.f32 %v3518_v59  ;;  %v3503_v13 = vshra.s32 %v3501_v60, 16  ;;  %v3502_v39 = vand.u32 65535, %v3501_v60  ;;  %v3519_v61 = vcvt.s32.f32 %v3517_v50 }
0x1f11   : > { %3521 = vmin.xlane.f32.xlu1 %v3520_v57  ;;  %v3505_v40 = vcvt.s32.f32 %v3503_v13  ;;  %v3504_v9 = vcvt.s32.f32 %v3502_v39 }
0x1f13   : > { %3506 = vmin.xlane.f32.xlu0 %v3505_v40 }
0x1f43   : > { %v5942_v23 = vpop.f32.mrf.mxu1 }
0x1f45   : > { %v4650_v29 = vpop.f32.mrf.mxu1 }
0x1f47   : > { %v5944_v48 = vpop.f32.mrf.mxu1 }
0x1f49   : > { %v4651_v36 = vpop.f32.mrf.mxu1 }
0x1f9a   : > { %v3522_v56 = vpop.xlane.xlu1 %3521 }
0x1f9b   : > { %vm3523_vm6 = vcmp.eq.f32.partialorder %v3520_v57, %v3522_v56  ;;  %v3528_v25 = vcvt.f32.s32 %v3522_v56 }
0x1f9c   : > { %v3507_v63 = vpop.xlane.xlu0 %3506  ;;  %v3524_v51 = vsel %vm3523_vm6, %v3519_v61, inf }
0x1f9d   : > { %3525 = vmin.xlane.f32.xlu1 %v3524_v51  ;;  %vm3508_vm8 = vcmp.eq.f32.partialorder %v3505_v40, %v3507_v63  ;;  %v3513_v0 = vcvt.f32.s32 %v3507_v63  ;;  %v3529_v20 = vshll.u32 %v3528_v25, 16 }
0x1f9e   : > { %v3509_v58 = vsel %vm3508_vm8, %v3504_v9, inf }
0x1f9f   : > { %3510 = vmin.xlane.f32.xlu0 %v3509_v58  ;;  %v3514_v46 = vshll.u32 %v3513_v0, 16 }
0x2026   : > { %v3526_v1 = vpop.xlane.xlu1 %3525 }
0x2027   : > { %v3527_v2 = vcvt.f32.s32 %v3526_v1 }
0x2028   : > { %v3511_v27 = vpop.xlane.xlu0 %3510 }
0x2029   : > { %v3530_v3 = vadd.s32 %v3529_v20, %v3527_v2  ;;  %v3512_v4 = vcvt.f32.s32 %v3511_v27 }
0x202b   : > { %vm3532_vm5 = vcmp.eq.s32.totalorder %v5099_v8, %v3530_v3  ;;  %v3515_v7 = vadd.s32 %v3514_v46, %v3512_v4 }
0x202c   : > { %v3707_v5 = vsel %vm3532_vm5, inf, %v3488_v43  ;;  %v4282_v16 = vsel %vm3532_vm5, 1.0, %v4926_v6 }
0x202d   : > { %vm3531_vm13 = vcmp.eq.s32.totalorder %v5099_v8, %v3515_v7  ;;  %v3713_v11 = vsel %vm598_vm4, %v3707_v5, inf }
0x202e   : > { %v4281_v24 = vsel %vm3531_vm13, 1.0, %v4926_v6  ;;  %3714 = vmin.xlane.f32.xlu1 %v3713_v11  ;;  %v3706_v15 = vsel %vm3531_vm13, inf, %v3487_v62 }
0x202f   : > { %v3537_v26 = vpack.c.bf16 %v4282_v16, %v4281_v24  ;;  %v3710_v31 = vsel %vm598_vm4, %v3706_v15, inf }
0x2030   : > { %3711 = vmin.xlane.f32.xlu0 %v3710_v31 }
0x2031   : > { %4655 = vmatmul.mubr.msk.bf16.vlgmr.msra.gmra.mxu1 %vm598_vm4, %v3537_v26 }
0x2032   : > { %4660 = vmatprep.mubr.msk.bf16.mxu1 %vm4927_vm10, %v4926_v6 }
0x20b7   : > { %v3715_v33 = vpop.xlane.xlu1 %3714 }
0x20b8   : > { %vm3717_vm1 = vcmp.eq.f32.partialorder %v3707_v5, %v3715_v33 }
0x20b9   : > { %v3719_v34 = vsel %vm3717_vm1, %v5099_v8, 16  ;;  %v3712_v35 = vpop.xlane.xlu0 %3711 }
0x20ba   : > { %v3735_v37 = vsel %vm598_vm4, %v3719_v34, 2147483647  ;;  %vm3716_vm2 = vcmp.eq.f32.partialorder %v3706_v15, %v3712_v35 }
0x20bb   : > { %v3737_v41 = vshra.s32 %v3735_v37, 16  ;;  %v3718_v22 = vsel %vm3716_vm2, %v5099_v8, 16  ;;  %v3736_v53 = vand.u32 65535, %v3735_v37 }
0x20bc   : > { %v3720_v47 = vsel %vm598_vm4, %v3718_v22, 2147483647 }
0x20bd   : > { %v3722_v32 = vshra.s32 %v3720_v47, 16  ;;  %v3739_v43 = vcvt.s32.f32 %v3737_v41  ;;  %v3721_v21 = vand.u32 65535, %v3720_v47  ;;  %v3738_v49 = vcvt.s32.f32 %v3736_v53 }
0x20bf   : > { %3740 = vmin.xlane.f32.xlu1 %v3739_v43  ;;  %v3724_v18 = vcvt.s32.f32 %v3722_v32  ;;  %v3723_v59 = vcvt.s32.f32 %v3721_v21 }
0x20c1   : > { %3725 = vmin.xlane.f32.xlu0 %v3724_v18 }
0x20f1   : > { %v5959_v17 = vpop.f32.mrf.mxu1 }
0x20f3   : > { %v4656_v62 = vpop.f32.mrf.mxu1 }
0x20f5   : > { %v5961_v28 = vpop.f32.mrf.mxu1 }
0x20f7   : > { %v4657_v45 = vpop.f32.mrf.mxu1 }
0x2148   : > { %v3741_v38 = vpop.xlane.xlu1 %3740 }
0x2149   : > { %vm3742_vm14 = vcmp.eq.f32.partialorder %v3739_v43, %v3741_v38  ;;  %v3747_v57 = vcvt.f32.s32 %v3741_v38  ;;  %v4275_v43 = vld [vmem:[%s6145_s8] ss:$0 sm:$0xff] }
0x214a   : > { %v3726_v42 = vpop.xlane.xlu0 %3725  ;;  %v3743_v30 = vsel %vm3742_vm14, %v3738_v49, inf }
0x214b   : > { %vm3727_vm3 = vcmp.eq.f32.partialorder %v3724_v18, %v3726_v42  ;;  %3744 = vmin.xlane.f32.xlu1 %v3743_v30  ;;  %v3732_v13 = vcvt.f32.s32 %v3726_v42  ;;  %v3748_v29 = vshll.u32 %v3747_v57, 16  ;;  %v3402_v18 = vrot.slane %v5917_v44, 4 }
0x214c   : > { %v3728_v60 = vsel %vm3727_vm3, %v3723_v59, inf }
0x214d   : > { %3729 = vmin.xlane.f32.xlu0 %v3728_v60  ;;  %v3733_v39 = vshll.u32 %v3732_v13, 16  ;;  %v3403_v62 = vmin.f32 %v5917_v44, %v3402_v18 }
0x214f   : > { %v3404_v45 = vrot.slane %v3403_v62, 2 }
0x2151   : > { %v3405_v53 = vmin.f32 %v3403_v62, %v3404_v45 }
0x2153   : > { %v3406_v21 = vrot.slane %v3405_v53, 1 }
0x2155   : > { %v3407_v38 = vmin.f32 %v3405_v53, %v3406_v21 }
0x2157   : > { %vm3408_vm8 = vcmp.eq.f32.partialorder %v5913_v55, %v3407_v38  ;;  %vm3409_vm5 = vcmp.eq.f32.partialorder %v5906_v12, %v3407_v38 }
0x2158   : > { %v3410_v49 = vsel %vm3408_vm8, %v5101_v10, 16  ;;  %v3411_v42 = vsel %vm3409_vm5, %v5115_v19, 16 }
0x2159   : > { %v3412_v30 = vsel %vm598_vm4, %v3410_v49, 2147483647  ;;  %v3413_v59 = vsel %vm598_vm4, %v3411_v42, 2147483647 }
0x215a   : > { %vm3414_vm13 = vcmp.lt.s32.totalorder %v3412_v30, %v3413_v59 }
0x215b   : > { %v3415_v60 = vsel %vm3414_vm13, %v3412_v30, %v3413_v59 }
0x215c   : > { %v3416_v57 = vrot.slane %v3415_v60, 4 }
0x215e   : > { %vm3417_vm1 = vcmp.lt.s32.totalorder %v3415_v60, %v3416_v57 }
0x215f   : > { %v3418_v44 = vsel %vm3417_vm1, %v3415_v60, %v3416_v57 }
0x2160   : > { %v3419_v13 = vrot.slane %v3418_v44, 2 }
0x2162   : > { %vm3420_vm2 = vcmp.lt.s32.totalorder %v3418_v44, %v3419_v13 }
0x21d4   : > { %v3745_v40 = vpop.xlane.xlu1 %3744 }
0x21d5   : > { %v3746_v36 = vcvt.f32.s32 %v3745_v40  ;;  %v3421_v40 = vsel %vm3420_vm2, %v3418_v44, %v3419_v13 }
0x21d6   : > { %v3730_v50 = vpop.xlane.xlu0 %3729 }
0x21d7   : > { %v3749_v56 = vadd.s32 %v3748_v29, %v3746_v36  ;;  %v3731_v61 = vcvt.f32.s32 %v3730_v50  ;;  %v3422_v29 = vrot.slane %v3421_v40, 1 }
0x21d9   : > { %v3734_v63 = vadd.s32 %v3733_v39, %v3731_v61  ;;  %vm3751_vm15 = vcmp.eq.s32.totalorder %v5099_v8, %v3749_v56  ;;  %vm3423_vm14 = vcmp.lt.s32.totalorder %v3421_v40, %v3422_v29 }
0x21da   : > { %v3884_v51 = vsel %vm3751_vm15, inf, %v3707_v5  ;;  %v4289_v58 = vsel %vm3751_vm15, 1.0, %v4926_v6  ;;  %v5993_v36 = vsel %vm3423_vm14, %v3421_v40, %v3422_v29 }
0x21db   : > { %v3890_v9 = vsel %vm598_vm4, %v3884_v51, inf  ;;  %vm3750_vm11 = vcmp.eq.s32.totalorder %v5099_v8, %v3734_v63  ;;  %vm3425_vm3 = vcmp.eq.s32.totalorder %v5101_v10, %v5993_v36  ;;  %vm3426_vm15 = vcmp.eq.s32.totalorder %v5115_v19, %v5993_v36 }
0x21dc   : > { %3891 = vmin.xlane.f32.xlu1 %v3890_v9  ;;  %v3883_v25 = vsel %vm3750_vm11, inf, %v3706_v15  ;;  %v4288_v0 = vsel %vm3750_vm11, 1.0, %v4926_v6  ;;  %v3489_v50 = vsel %vm3425_vm3, inf, %v5913_v55  ;;  %v3490_v39 = vsel %vm3426_vm15, inf, %v5906_v12 }
0x21dd   : > { %v3887_v1 = vsel %vm598_vm4, %v3883_v25, inf  ;;  %v3756_v20 = vpack.c.bf16 %v4289_v58, %v4288_v0  ;;  %v3538_v56 = vsel %vm598_vm4, %v3489_v50, inf  ;;  %v3539_v61 = vsel %vm598_vm4, %v3490_v39, inf }
0x21de   : > { %3888 = vmin.xlane.f32.xlu0 %v3887_v1  ;;  %v3540_v63 = vmin.f32 %v3538_v56, %v3539_v61 }
0x21df   : > { %4673 = vmatmul.mubr.msk.bf16.vlgmr.msra.gmra.mxu0 %vm598_vm4, %v3756_v20 }
0x21e0   : > { %4683 = vmatpush3.bf16.msra.mxu0 %v5895_v14  ;;  %4684 = vmatprep.mubr.msk.bf16.mxu0 %vm4927_vm10, %v4926_v6 }
0x2265   : > { %v3892_v2 = vpop.xlane.xlu1 %3891 }
0x2266   : > { %vm3894_vm12 = vcmp.eq.f32.partialorder %v3884_v51, %v3892_v2  ;;  %v3541_v51 = vrot.slane %v3540_v63, 4 }
0x2267   : > { %v3896_v27 = vsel %vm3894_vm12, %v5099_v8, 16  ;;  %v3889_v46 = vpop.xlane.xlu0 %3888 }
0x2268   : > { %v3912_v3 = vsel %vm598_vm4, %v3896_v27, 2147483647  ;;  %vm3893_vm0 = vcmp.eq.f32.partialorder %v3883_v25, %v3889_v46  ;;  %v3542_v9 = vmin.f32 %v3540_v63, %v3541_v51 }
0x2269   : > { %v3914_v4 = vshra.s32 %v3912_v3, 16  ;;  %v3895_v7 = vsel %vm3893_vm0, %v5099_v8, 16  ;;  %v3913_v33 = vand.u32 65535, %v3912_v3 }
0x226a   : > { %v3897_v5 = vsel %vm598_vm4, %v3895_v7, 2147483647  ;;  %v3543_v58 = vrot.slane %v3542_v9, 2 }
0x226b   : > { %v3899_v11 = vshra.s32 %v3897_v5, 16  ;;  %v3916_v16 = vcvt.s32.f32 %v3914_v4  ;;  %v3898_v34 = vand.u32 65535, %v3897_v5  ;;  %v3915_v37 = vcvt.s32.f32 %v3913_v33 }
0x226c   : > { %v3544_v25 = vmin.f32 %v3542_v9, %v3543_v58 }
0x226d   : > { %3917 = vmin.xlane.f32.xlu1 %v3916_v16  ;;  %v3901_v14 = vcvt.s32.f32 %v3899_v11  ;;  %v3900_v47 = vcvt.s32.f32 %v3898_v34 }
0x226e   : > { %v3545_v0 = vrot.slane %v3544_v25, 1 }
0x226f   : > { %3902 = vmin.xlane.f32.xlu0 %v3901_v14 }
0x2270   : > { %v3546_v1 = vmin.f32 %v3544_v25, %v3545_v0 }
0x2272   : > { %vm3547_vm11 = vcmp.eq.f32.partialorder %v3489_v50, %v3546_v1  ;;  %vm3548_vm12 = vcmp.eq.f32.partialorder %v3490_v39, %v3546_v1 }
0x2273   : > { %v3549_v12 = vsel %vm3547_vm11, %v5101_v10, 16  ;;  %v3550_v3 = vsel %vm3548_vm12, %v5115_v19, 16 }
0x229f   : > { %v5977_v24 = vpop.f32.mrf.mxu0 }
0x22a1   : > { %v4674_v15 = vpop.f32.mrf.mxu0 }
0x22a3   : > { %v5979_v26 = vpop.f32.mrf.mxu0 }
0x22a5   : > { %v4675_v31 = vpop.f32.mrf.mxu0 }
0x22f6   : > { %v3918_v35 = vpop.xlane.xlu1 %3917 }
0x22f7   : > { %vm3919_vm7 = vcmp.eq.f32.partialorder %v3916_v16, %v3918_v35  ;;  %v3924_v20 = vcvt.f32.s32 %v3918_v35  ;;  %v3551_v16 = vsel %vm598_vm4, %v3549_v12, 2147483647 }
0x22f8   : > { %v3903_v41 = vpop.xlane.xlu0 %3902  ;;  %v3920_v22 = vsel %vm3919_vm7, %v3915_v37, inf }
0x22f9   : > { %vm3904_vm6 = vcmp.eq.f32.partialorder %v3901_v14, %v3903_v41  ;;  %3921 = vmin.xlane.f32.xlu1 %v3920_v22  ;;  %v3909_v55 = vcvt.f32.s32 %v3903_v41  ;;  %v3925_v27 = vshll.u32 %v3924_v20, 16  ;;  %v3552_v14 = vsel %vm598_vm4, %v3550_v3, 2147483647 }
0x22fa   : > { %v3905_v32 = vsel %vm3904_vm6, %v3900_v47, inf  ;;  %vm3553_vm6 = vcmp.lt.s32.totalorder %v3551_v16, %v3552_v14 }
0x22fb   : > { %3906 = vmin.xlane.f32.xlu0 %v3905_v32  ;;  %v3910_v7 = vshll.u32 %v3909_v55, 16  ;;  %v3554_v41 = vsel %vm3553_vm6, %v3551_v16, %v3552_v14 }
0x22fc   : > { %v3555_v47 = vrot.slane %v3554_v41, 4 }
0x22fe   : > { %vm3556_vm8 = vcmp.lt.s32.totalorder %v3554_v41, %v3555_v47 }
0x2311   : > { %3349 = vrot.lane.b32.xlu0 %v4275_v43, %s4928_s28 }
0x2382   : > { %v3922_v2 = vpop.xlane.xlu1 %3921 }
0x2383   : > { %v3923_v46 = vcvt.f32.s32 %v3922_v2 }
0x2384   : > { %v3907_v4 = vpop.xlane.xlu0 %3906 }
0x2385   : > { %v3926_v5 = vadd.s32 %v3925_v27, %v3923_v46  ;;  %v3908_v11 = vcvt.f32.s32 %v3907_v4 }
0x2387   : > { %vm3928_vm0 = vcmp.eq.s32.totalorder %v5099_v8, %v3926_v5  ;;  %v3911_v15 = vadd.s32 %v3910_v7, %v3908_v11 }
0x2388   : > { %v3350_v31 = vpop.permute.xlu0 %3349  ;;  %v4295_v34 = vsel %vm3928_vm0, 1.0, %v4926_v6 }
0x2389   : > { %vm3927_vm7 = vcmp.eq.s32.totalorder %v5099_v8, %v3911_v15  ;;  %v3352_v33 = vadd.f32 %v3350_v31, %v5891_v54  ;;  %v3353_v22 = vadd.f32 %v5888_v52, %v3350_v31  ;;  %v3557_v8 = vsel %vm3556_vm8, %v3554_v41, %v3555_v47 }
0x238a   : > { %v4294_v35 = vsel %vm3927_vm7, 1.0, %v4926_v6  ;;  %v3558_v32 = vrot.slane %v3557_v8, 2  ;;  %v4278_v31 = vsel %vm3425_vm3, 1.0, %v4926_v6 }
0x238b   : > { %v3933_v37 = vpack.c.bf16 %v4295_v34, %v4294_v35  ;;  %3434 = vrot.lane.b32.xlu1 %v3352_v33, %s4928_s28 }
0x238c   : > { %vm3559_vm5 = vcmp.lt.s32.totalorder %v3557_v8, %v3558_v32 }
0x238d   : > { %4685 = vmatmul.mubr.msk.bf16.vlgmr.msra.gmra.mxu0 %vm598_vm4, %v3933_v37  ;;  %v3560_v54 = vsel %vm3559_vm5, %v3557_v8, %v3558_v32 }
0x238e   : > { %v3561_v43 = vrot.slane %v3560_v54, 1 }
0x238f   : > { %3436 = vrot.lane.b32.xlu1 %v3353_v22, %s4928_s28  ;;  %s4082_s28 = scalar_lea.hbm %s6146_s9, %s4300_s17 }
0x2390   : > { %vm3562_vm13 = vcmp.lt.s32.totalorder %v3560_v54, %v3561_v43 }
0x2391   : > { %v3563_v18 = vsel %vm3562_vm13, %v3560_v54, %v3561_v43 }
0x2392   : > { %vm3564_vm1 = vcmp.eq.s32.totalorder %v5101_v10, %v3563_v18  ;;  %vm3565_vm2 = vcmp.eq.s32.totalorder %v5115_v19, %v3563_v18 }
0x2393   : > { %v3708_v52 = vsel %vm3564_vm1, inf, %v3489_v50  ;;  %v3709_v62 = vsel %vm3565_vm2, inf, %v3490_v39 }
0x2394   : > { %v3757_v45 = vsel %vm598_vm4, %v3708_v52, inf  ;;  %v3758_v53 = vsel %vm598_vm4, %v3709_v62, inf }
0x2395   : > { %v3759_v21 = vmin.f32 %v3757_v45, %v3758_v53 }
0x2397   : > { %v3760_v38 = vrot.slane %v3759_v21, 4 }
0x2399   : > { %v3761_v49 = vmin.f32 %v3759_v21, %v3760_v38 }
0x239b   : > { %v3762_v42 = vrot.slane %v3761_v49, 2 }
0x239d   : > { %v3763_v30 = vmin.f32 %v3761_v49, %v3762_v42 }
0x239f   : > { %v3764_v59 = vrot.slane %v3763_v30, 1 }
0x23a1   : > { %v3765_v60 = vmin.f32 %v3763_v30, %v3764_v59 }
0x23a3   : > { %vm3767_vm14 = vcmp.eq.f32.partialorder %v3709_v62, %v3765_v60  ;;  %vm3766_vm11 = vcmp.eq.f32.partialorder %v3708_v52, %v3765_v60 }
0x23a4   : > { %v3769_v57 = vsel %vm3767_vm14, %v5115_v19, 16  ;;  %v3768_v44 = vsel %vm3766_vm11, %v5101_v10, 16 }
0x23a5   : > { %v3771_v13 = vsel %vm598_vm4, %v3769_v57, 2147483647  ;;  %v3770_v40 = vsel %vm598_vm4, %v3768_v44, 2147483647 }
0x23a6   : > { %vm3772_vm12 = vcmp.lt.s32.totalorder %v3770_v40, %v3771_v13 }
0x23a7   : > { %v3773_v29 = vsel %vm3772_vm12, %v3770_v40, %v3771_v13 }
0x23a8   : > { %v3774_v50 = vrot.slane %v3773_v29, 4 }
0x23aa   : > { %vm3775_vm0 = vcmp.lt.s32.totalorder %v3773_v29, %v3774_v50 }
0x23ab   : > { %v3776_v39 = vsel %vm3775_vm0, %v3773_v29, %v3774_v50 }
0x23ac   : > { %v3777_v56 = vrot.slane %v3776_v39, 2 }
0x23ae   : > { %vm3778_vm7 = vcmp.lt.s32.totalorder %v3776_v39, %v3777_v56 }
0x23af   : > { %v3779_v61 = vsel %vm3778_vm7, %v3776_v39, %v3777_v56 }
0x23b0   : > { %v3780_v63 = vrot.slane %v3779_v61, 1 }
0x23b2   : > { %vm3781_vm6 = vcmp.lt.s32.totalorder %v3779_v61, %v3780_v63 }
0x23b3   : > { %v3782_v9 = vsel %vm3781_vm6, %v3779_v61, %v3780_v63 }
0x23b4   : > { %vm3783_vm8 = vcmp.eq.s32.totalorder %v5101_v10, %v3782_v9  ;;  %vm3784_vm5 = vcmp.eq.s32.totalorder %v5115_v19, %v3782_v9 }
0x23b5   : > { %v3885_v20 = vsel %vm3783_vm8, inf, %v3708_v52  ;;  %v3886_v27 = vsel %vm3784_vm5, inf, %v3709_v62  ;;  %v4290_v41 = vsel %vm3783_vm8, 1.0, %v4926_v6  ;;  %v4291_v36 = vsel %vm3784_vm5, 1.0, %v4926_v6 }
0x23b6   : > { %v3934_v3 = vsel %vm598_vm4, %v3885_v20, inf  ;;  %v3935_v4 = vsel %vm598_vm4, %v3886_v27, inf  ;;  %v3789_v47 = vpack.c.bf16 %v4291_v36, %v4290_v41 }
0x23b7   : > { %v3936_v16 = vmin.f32 %v3934_v3, %v3935_v4 }
0x23b9   : > { %v3937_v33 = vrot.slane %v3936_v16, 4 }
0x23bb   : > { %v3938_v37 = vmin.f32 %v3936_v16, %v3937_v33 }
0x23bd   : > { %v3939_v22 = vrot.slane %v3938_v37, 2 }
0x23bf   : > { %v3940_v8 = vmin.f32 %v3938_v37, %v3939_v22 }
0x23c1   : > { %v3941_v32 = vrot.slane %v3940_v8, 1 }
0x23c3   : > { %v3942_v54 = vmin.f32 %v3940_v8, %v3941_v32 }
0x23c5   : > { %vm3943_vm3 = vcmp.eq.f32.partialorder %v3885_v20, %v3942_v54 }
0x23c6   : > { %v3945_v43 = vsel %vm3943_vm3, %v5101_v10, 16 }
0x23c7   : > { %v3947_v52 = vsel %vm598_vm4, %v3945_v43, 2147483647 }
0x23fd   : > { %v6034_v51 = vpop.permute.xlu1 %3434 }
0x23fe   : > { %v3609_v58 = vadd.f32 %v5959_v17, %v6034_v51  ;;  %v3478_v55 = vadd.f32 %v5942_v23, %v6034_v51  ;;  %v3828_v14 = vadd.f32 %v5977_v24, %v6034_v51 }
0x2400   : > { %v3615_v2 = vmax.f32 %v3609_v58, 0.0  ;;  %v3484_v23 = vmax.f32 %v3478_v55, 0.0  ;;  %v3834_v34 = vmax.f32 %v3828_v14, 0.0 }
0x2401   : > { %v6039_v25 = vpop.permute.xlu1 %3436 }
0x2402   : > { %v3481_v0 = vadd.f32 %v5944_v48, %v6039_v25  ;;  %v3612_v1 = vadd.f32 %v5961_v28, %v6039_v25  ;;  %v4283_v48 = vsel %vm3564_vm1, 1.0, %v4926_v6  ;;  %v4284_v28 = vsel %vm3565_vm2, 1.0, %v4926_v6 }
0x2403   : > { %v3570_v7 = vpack.c.bf16 %v4284_v28, %v4283_v48  ;;  %v3831_v11 = vadd.f32 %v5979_v26, %v6039_v25  ;;  %v4279_v26 = vsel %vm3426_vm15, 1.0, %v4926_v6  ;;  %vm3944_vm15 = vcmp.eq.f32.partialorder %v3886_v27, %v3942_v54 }
0x2404   : > { %v3616_v17 = vmax.f32 %v3612_v1, 0.0  ;;  %v3485_v46 = vmax.f32 %v3481_v0, 0.0  ;;  %v3431_v24 = vpack.c.bf16 %v4279_v26, %v4278_v31  ;;  %v3946_v18 = vsel %vm3944_vm15, %v5115_v19, 16 }
0x2405   : > { %v3835_v15 = vmax.f32 %v3831_v11, 0.0  ;;  %v3948_v62 = vsel %vm598_vm4, %v3946_v18, 2147483647 }
0x2406   : > { %v3617_v12 = vpack.c.bf16 %v3616_v17, %v3615_v2  ;;  %v3486_v5 = vpack.c.bf16 %v3485_v46, %v3484_v23  ;;  %vm3949_vm13 = vcmp.lt.s32.totalorder %v3947_v52, %v3948_v62 }
0x2407   : > { %v3836_v35 = vpack.c.bf16 %v3835_v15, %v3834_v34  ;;  %v3950_v45 = vsel %vm3949_vm13, %v3947_v52, %v3948_v62 }
0x2408   : > { %4659 = vmatpush3.bf16.msra.mxu1 %v3617_v12  ;;  %v3951_v53 = vrot.slane %v3950_v45, 4 }
0x2409   : > { %4664 = vmatprep.subr.bf16.mxu1 %v4926_v6 }
0x240a   : > { %vm3952_vm1 = vcmp.lt.s32.totalorder %v3950_v45, %v3951_v53 }
0x240b   : > { %4661 = vmatmul.mubr.msk.bf16.vlgmr.msra.gmra.mxu1 %vm598_vm4, %v3570_v7  ;;  %v3953_v21 = vsel %vm3952_vm1, %v3950_v45, %v3951_v53 }
0x240c   : > { %4665 = vmatpush3.bf16.msra.mxu1 %v3486_v5  ;;  %4666 = vmatprep.mubr.msk.bf16.mxu1 %vm4927_vm10, %v4926_v6  ;;  %v3954_v38 = vrot.slane %v3953_v21, 2 }
0x240d   : > { %4676 = vmatprep.subr.bf16.mxu1 %v4926_v6 }
0x240e   : > { %vm3955_vm2 = vcmp.lt.s32.totalorder %v3953_v21, %v3954_v38 }
0x240f   : > { %v3956_v49 = vsel %vm3955_vm2, %v3953_v21, %v3954_v38 }
0x2410   : > { %v3957_v42 = vrot.slane %v3956_v49, 1 }
0x2413   : > { %4667 = vmatmul.mubr.msk.bf16.vlgmr.msra.gmra.mxu1 %vm598_vm4, %v3431_v24 }
0x2414   : > { %4677 = vmatpush3.bf16.msra.mxu1 %v3836_v35  ;;  %4678 = vmatprep.mubr.msk.bf16.mxu1 %vm4927_vm10, %v4926_v6 }
0x2415   : > { %4688 = vmatprep.subr.bf16.mxu1 %v4926_v6 }
0x241b   : > { %4679 = vmatmul.mubr.msk.bf16.vlgmr.msra.gmra.mxu1 %vm598_vm4, %v3789_v47 }
0x241c   : > { %4690 = vmatprep.mubr.msk.bf16.mxu1 %vm4927_vm10, %v4926_v6  ;;  %vm3958_vm10 = vcmp.lt.s32.totalorder %v3956_v49, %v3957_v42 }
0x241d   : > { %v3959_v57 = vsel %vm3958_vm10, %v3956_v49, %v3957_v42 }
0x241e   : > { %vm3960_vm14 = vcmp.eq.s32.totalorder %v5101_v10, %v3959_v57  ;;  %vm3961_vm11 = vcmp.eq.s32.totalorder %v5115_v19, %v3959_v57 }
0x241f   : > { %v4296_v56 = vsel %vm3960_vm14, 1.0, %v4926_v6  ;;  %v4297_v61 = vsel %vm3961_vm11, 1.0, %v4926_v6 }
0x2420   : > { %v3966_v63 = vpack.c.bf16 %v4297_v61, %v4296_v56 }
0x244d   : > { %v4004_v30 = vpop.f32.mrf.mxu0 }
0x244e   : > { %v4005_v60 = vadd.f32 %v4004_v30, %v6034_v51 }
0x244f   : > { %v4686_v59 = vpop.f32.mrf.mxu0 }
0x2450   : > { %v4011_v29 = vmax.f32 %v4005_v60, 0.0 }
0x2451   : > { %v4007_v44 = vpop.f32.mrf.mxu0 }
0x2452   : > { %v4008_v13 = vadd.f32 %v4007_v44, %v6039_v25 }
0x2453   : > { %v4687_v40 = vpop.f32.mrf.mxu0 }
0x2454   : > { %v4012_v50 = vmax.f32 %v4008_v13, 0.0 }
0x2456   : > { %v4013_v39 = vpack.c.bf16 %v4012_v50, %v4011_v29 }
0x2458   : > { %4689 = vmatpush3.bf16.msra.mxu1 %v4013_v39 }
0x245b   : > { %4691 = vmatmul.mubr.msk.bf16.vlgmr.msra.gmra.mxu1 %vm598_vm4, %v3966_v63  ;;  %vm4069_vm4 = vcmask 516096  }
0x24cb   : > { %v3655_v51 = vpop.f32.mrf.mxu1 }
0x24cd   : > { %v4662_v9 = vpop.f32.mrf.mxu1 }
0x24cf   : > { %v3658_v58 = vpop.f32.mrf.mxu1 }
0x24d1   : > { %v4663_v25 = vpop.f32.mrf.mxu1 }
0x24d3   : > { %v3699_v0 = vpop.f32.mrf.mxu1 }
0x24d4   : > { %v3700_v1 = vadd.f32 %v3699_v0, %v3655_v51 }
0x24d5   : > { %v4668_v10 = vpop.f32.mrf.mxu1 }
0x24d7   : > { %v3702_v20 = vpop.f32.mrf.mxu1 }
0x24d8   : > { %v3703_v19 = vadd.f32 %v3702_v20, %v3658_v58 }
0x24d9   : > { %v4669_v55 = vpop.f32.mrf.mxu1 }
0x24db   : > { %v3874_v2 = vpop.f32.mrf.mxu1 }
0x24dc   : > { %v3881_v17 = vadd.f32 %v3874_v2, %v3700_v1 }
0x24dd   : > { %v4680_v27 = vpop.f32.mrf.mxu1 }
0x24df   : > { %v3877_v46 = vpop.f32.mrf.mxu1 }
0x24e0   : > { %v3882_v28 = vadd.f32 %v3877_v46, %v3703_v19 }
0x24e1   : > { %v4681_v6 = vpop.f32.mrf.mxu1 }
0x251b   : > { %v4051_v12 = vpop.f32.mrf.mxu1 }
0x251c   : > { %v4058_v3 = vadd.f32 %v4051_v12, %v3881_v17 }
0x251d   : > { %v4692_v48 = vpop.f32.mrf.mxu1 }
0x251e   : > { %v4060_v5 = vsel %vm1314_vm9, %v4058_v3, -inf }
0x251f   : > { %v4054_v4 = vpop.f32.mrf.mxu1 }
0x2520   : > { %v4059_v23 = vadd.f32 %v4054_v4, %v3882_v28 }
0x2521   : > { %v4693_v7 = vpop.f32.mrf.mxu1 }
0x2522   : > { %v4061_v11 = vsel %vm1314_vm9, %v4059_v23, -inf }
0x2523   : > { %v4062_v16 = vmax.f32 %v4060_v5, %v4061_v11 }
0x2525   : > { %v4063_v14 = vrot.slane %v4062_v16, 4 }
0x2527   : > { %v4064_v15 = vmax.f32 %v4062_v16, %v4063_v14 }
0x2529   : > { %v4065_v31 = vrot.slane %v4064_v15, 2 }
0x252b   : > { %v4066_v26 = vmax.f32 %v4064_v15, %v4065_v31 }
0x252d   : > { %v4067_v33 = vrot.slane %v4066_v26, 1 }
0x252f   : > { %v4068_v34 = vmax.f32 %v4066_v26, %v4067_v33 }
0x2531   : > { %4070 = vst.msk [vmem:[%s368_s22] sm:$0x1] %vm4069_vm4, %v4068_v34 }
0x2532   : > { %4862 = shalt.err (!%p4859_p11)
}
0x2533   : > { %s4863_s24 = scalar_lea.hbm %s4082_s28, 16  ;;  %s4867_s17 = scalar_lea.hbm %s6146_s9, 32 }
0x2534   : > { %p4864_p0 = scmp.ne.s32.totalorder %s4082_s28, %s4863_s24  ;;  %p4868_p3 = scmp.lt.s32.totalorder %s4082_s28, %s6146_s9 }
0x2535   : > { %p4869_p2 = scmp.lt.s32.totalorder %s4867_s17, %s4863_s24 }
0x2536   : > { %p4865_p1 = pnand %p4864_p0, %p5018_p5 }
0x2537   : > { %p4870_p4 = por %p4869_p2, %p4868_p3 }
0x2538   : > { %p4866_p13 = pneg %p4865_p1 }
0x253a   : > { %p4871_p10 = pnand %p4870_p4, %p4866_p13 }
0x253c   : > { %4874 = shalt.err (!%p4871_p10)
}
0x253d   : > { %4706 = dma.vmem_to_hbm [thread:$0]  (%p5018_p5), %s4085_s25, 16, %s4082_s28, %s4072_s29  }
0x253e PF: > { %p4728_p12 = scmp.ge.s32.totalorder %s4917_s12, 2  ;;  %s4096_s23 = sand.u32 1, %s4905_s30  }
0x253f   : > { %p6160_p7 = scmp.ne.s32.totalorder %s6151_s20, 0  ;;  %s4097_s14 = scalar_lea.sflag [#allocation4], %s4096_s23 }
0x2541   : > { %p4719_p6 = pnand %p4728_p12, %p6160_p7 }
0x2543   : > { %p4720_p9 = pneg %p4719_p6 }
0x2545   : > { %4900 = dma.done.wait (%p4720_p9), %s4097_s14, 16  }
0x2546   : > { %4902 = vsyncadd (%p4720_p9), %s4097_s14, 4294967280  ;;  %s6161_s16 = sld [smem:[#allocation12_spill]]  ;;  %p21_p8 = scmp.ge.s32.totalorder %s5005_s15, 4  }
0x2547   : > { %s6162_s30 = smov %s4909_s10  ;;  %s6163_s10 = smov %s4913_s11 }
0x2548   : > { %s6165_s12 = smov %s5005_s15  ;;  %23 = sbr.rel (!%p21_p8) target bundleno = 5 (0x5), region = 104 }
0x254c   : > { %s6164_s11 = smov %s6161_s16 }
0x254d   :  { %4101 = vsyncpa [#allocation3], 1 }
0x254e   :  { %4103 = vsyncpa [#allocation3 + $0x1], 1 }
0x254f   :  { %4104 = vsyncpa [#allocation6], 1 }
0x2550   :  { %4105 = vsyncpa [#allocation4], 1 }
0x2551   :  { %4107 = vsyncpa [#allocation4 + $0x1], 1 }

</bundles_post_ra>
